<compile_context>
chip_gen: v7x
topology: tpu7x:2x2x1
jax: 0.10.0
libtpu: 0.0.40
codegen_flags: <defaults>
</compile_context>

<pallas_src>
import jax
import jax.numpy as jnp
import numpy as np
from jax import lax
from jax.experimental import pallas as pl
from jax.experimental.pallas import tpu as pltpu

IN_DIM = 16
OUT_DIM = 32            # conv channel dim C (must be divisible by GROUPS)
KERNEL_SIZE = 31
GROUPS = 16
PAD = KERNEL_SIZE // 2  # 15
LPAD = 16               # zero guard rows each side of the pad buffer (> PAD, mult of 8)
N_R = 8                 # tap j = 8*q + r ; r-shift done with pltpu.roll (XLU)
N_Q = 4                 # 8*q-shift done with 8-aligned static sublane slices
LANE_GROUP = 4          # batch items packed along lanes (4 * 32 = 128 lanes)


# ---------------------------------------------------------------------------
# Activation helpers
# ---------------------------------------------------------------------------
def _mish(v):
    """mish(x) = x*tanh(softplus(x)) = x*(z^2-1)/(z^2+1), z = 1+e^x.
    |x|-stable rational form: 1 EUP exp + 1 approx EUP reciprocal."""
    u = jnp.exp(-jnp.abs(v))
    pos_n = 1.0 + 2.0 * u
    pos_d = pos_n + 2.0 * u * u          # 1 + 2u + 2u^2   (x >= 0, u = e^-x)
    neg_n = u * (2.0 + u)                # 2u + u^2        (x <  0, u = e^x)
    neg_d = 2.0 + neg_n                  # 2 + 2u + u^2
    num = jnp.where(v >= 0, pos_n, neg_n)
    den = jnp.where(v >= 0, pos_d, neg_d)
    return v * num * pl.reciprocal(den, approx=True)


def _softplus(v):
    return jnp.log1p(jnp.exp(-jnp.abs(v))) + jnp.maximum(v, 0.0)


# ---------------------------------------------------------------------------
# Pallas kernel factory.  One grid step = LANE_GROUP batch items (lane-packed),
# full time axis.  gc = LANE_GROUP * C = 128 lanes.
# ---------------------------------------------------------------------------
def _make_kernel(t, gc):
    t_pad = t + 2 * LPAD

    def kernel(xcp_ref, wp_ref, pb_ref, w1_ref, b1_ref, w2_ref, b2_ref,
               o_ref, pad_ref):
        # ---- Linear: one lane-dense (t, G*2*in_dim) @ (.., G*C) dot
        #      (weight is block-diagonal over the lane group).  Kept in f32.
        h = jnp.dot(xcp_ref[...].astype(jnp.float32), wp_ref[...],
                    preferred_element_type=jnp.float32) + pb_ref[...]
        # Park h in the output block: frees its registers across both convs;
        # re-read once for the residual.  (Exact when the output is f32.)
        o_ref[...] = h.astype(o_ref.dtype)

        # ---- zero only the guard rows of the conv pad buffer (the interior
        #      is fully overwritten before each conv; both convs share guards).
        zguard = jnp.zeros((LPAD, gc), jnp.float32)
        pad_ref[0:LPAD, :] = zguard
        pad_ref[LPAD + t:t_pad, :] = zguard

        # ---- grouped Conv1d(k=31, pad=15): pad buffer row (LPAD + time),
        #      tap j = 8q + r = k+1 reads pad[time + j]; the r-shift is one
        #      shared pltpu.roll (XLU), the 8q-shift an 8-aligned slice.
        #      Each tap is a lane-dense bf16 (t,128)@(128,128) dot, f32 acc.
        def conv(v, w_ref, b_ref):
            pad_ref[LPAD:LPAD + t, :] = v          # one unmasked (t,128) store
            p = pad_ref[...]                       # (t_pad, gc) f32
            acc = None
            for r in range(N_R):
                pr = p if r == 0 else pltpu.roll(p, t_pad - r, axis=0)
                wr = w_ref[r]                      # (N_Q*gc, gc) bf16
                for q in range(N_Q):
                    if 8 * q + r == 0:             # dummy tap (k = -1): skip
                        continue
                    lhs = pr[8 * q:8 * q + t, :].astype(jnp.bfloat16)
                    d = jnp.dot(lhs, wr[q * gc:(q + 1) * gc, :],
                                preferred_element_type=jnp.float32)
                    acc = d if acc is None else acc + d
            return acc + b_ref[...]

        c1 = _mish(conv(h, w1_ref, b1_ref))        # (t, gc) f32
        c2 = _mish(conv(c1, w2_ref, b2_ref))       # (t, gc) f32

        # residual + final lane-dense store
        o_ref[...] = (c2 + o_ref[...].astype(jnp.float32)).astype(o_ref.dtype)

    return kernel


# ---------------------------------------------------------------------------
# Host-side (numpy) weight preparation — done once, outside the forward path.
# ---------------------------------------------------------------------------
def _pack_conv_weight(w, groups, lane_group):
    """PyTorch grouped Conv1d weight (C_out, C_in//g, K) ->
    (N_R, N_Q*lane_group*C_in, lane_group*C_out), block-diagonal over the lane
    group, row block (q*lane_group + b)*C_in <-> tap j = 8q + r = k + 1."""
    c_out, cin_g, k = w.shape
    c_in = cin_g * groups
    out_g = c_out // groups
    gc_in = lane_group * c_in
    gc_out = lane_group * c_out
    wd = np.zeros((k, c_in, c_out), np.float32)        # dense per-tap weight
    for co in range(c_out):
        g = co // out_g
        wd[:, g * cin_g:(g + 1) * cin_g, co] = w[co].T
    wpk = np.zeros((N_R, N_Q * gc_in, gc_out), np.float32)
    for kk in range(k):
        j = kk + 1
        q, r = j // N_R, j % N_R
        for b in range(lane_group):
            r0 = q * gc_in + b * c_in
            wpk[r, r0:r0 + c_in, b * c_out:(b + 1) * c_out] = wd[kk]
    return wpk


def prepare_params(params, lane_group=LANE_GROUP):
    pw = np.asarray(params["proj_w"], np.float32)      # (C, 2*in_dim)
    pb = np.asarray(params["proj_b"], np.float32)
    c = pw.shape[0]
    f = pw.shape[1]
    wp = np.zeros((lane_group * f, lane_group * c), np.float32)
    for b in range(lane_group):                        # block-diag proj weight
        wp[b * f:(b + 1) * f, b * c:(b + 1) * c] = pw.T

    def tiled_bias(bias):
        return jnp.asarray(np.tile(np.asarray(bias, np.float32), lane_group)[None, :])

    return {
        "wp": jnp.asarray(wp),
        "pb": tiled_bias(pb),
        "w1": jnp.asarray(_pack_conv_weight(
            np.asarray(params["conv1_w"], np.float32), GROUPS, lane_group)
        ).astype(jnp.bfloat16),
        "b1": tiled_bias(params["conv1_b"]),
        "w2": jnp.asarray(_pack_conv_weight(
            np.asarray(params["conv2_w"], np.float32), GROUPS, lane_group)
        ).astype(jnp.bfloat16),
        "b2": tiled_bias(params["conv2_b"]),
    }


# ---------------------------------------------------------------------------
# pallas_call wrapper
# ---------------------------------------------------------------------------
def audio_embedding(x, cond, prepared, drop_audio_cond=False):
    B, T, in_dim = x.shape
    G = LANE_GROUP
    F = 2 * in_dim
    gf = G * F
    gc = prepared["pb"].shape[1]
    C = gc // G
    t_pad = T + 2 * LPAD

    assert T % 8 == 0, "T must be a multiple of 8 (sublane alignment)"
    assert prepared["wp"].shape == (gf, gc), "prepared params do not match in_dim"
    assert gf % 128 == 0 and gc % 128 == 0, (
        "lane-dense packing needs LANE_GROUP*2*in_dim and LANE_GROUP*out_dim "
        "to be multiples of 128")
    # TODO(synk): ragged T (pad + row-mask h/c1) and general in_dim/out_dim.

    # drop_audio_cond == zero the condition (same kernel; mirrors the module).
    cond_eff = jnp.zeros_like(cond) if drop_audio_cond else cond
    xc = jnp.concatenate(
        [x.astype(jnp.float32), cond_eff.astype(jnp.float32)], axis=-1)

    # pad B to a multiple of the lane group (handles any B, including prime).
    Bp = ((B + G - 1) // G) * G
    if Bp != B:
        xc = jnp.pad(xc, ((0, Bp - B), (0, 0), (0, 0)))
    # layout plumbing (batch -> lanes) so every kernel load/store is lane-dense
    xcp = jnp.transpose(xc, (1, 0, 2)).reshape(T, Bp * F)

    n_groups = Bp // G
    kernel = _make_kernel(T, gc)

    conv_w_bytes = N_R * N_Q * gc * gc * 2                    # bf16
    step_bytes = (2 * T * gf * 4 + 2 * T * gc * 4             # in/out (double-buffered)
                  + 2 * 2 * conv_w_bytes + gf * gc * 4        # weights
                  + t_pad * gc * 4)                           # pad scratch
    cp_kwargs = dict(dimension_semantics=("parallel",))
    if step_bytes > 12 * 2**20:
        # TODO(synk): time-tile T with a 2*PAD halo for very long T / v7x
        # instead of only raising the scoped-VMEM limit.
        cp_kwargs["vmem_limit_bytes"] = min(int(step_bytes * 3 // 2), 64 * 2**20)

    outp = pl.pallas_call(
        kernel,
        out_shape=jax.ShapeDtypeStruct((T, Bp * C), x.dtype),
        grid_spec=pltpu.PrefetchScalarGridSpec(
            num_scalar_prefetch=0,
            grid=(n_groups,),
            in_specs=[
                pl.BlockSpec((T, gf), lambda i: (0, i)),            # x|cond packed
                pl.BlockSpec((gf, gc), lambda i: (0, 0)),           # proj weight
                pl.BlockSpec((1, gc), lambda i: (0, 0)),            # proj bias
                pl.BlockSpec((N_R, N_Q * gc, gc), lambda i: (0, 0, 0)),  # conv1 w
                pl.BlockSpec((1, gc), lambda i: (0, 0)),            # conv1 bias
                pl.BlockSpec((N_R, N_Q * gc, gc), lambda i: (0, 0, 0)),  # conv2 w
                pl.BlockSpec((1, gc), lambda i: (0, 0)),            # conv2 bias
            ],
            out_specs=pl.BlockSpec((T, gc), lambda i: (0, i)),
            scratch_shapes=[pltpu.VMEM((t_pad, gc), jnp.float32)],  # conv pad buf
        ),
        compiler_params=pltpu.CompilerParams(**cp_kwargs),
    )(xcp, prepared["wp"], prepared["pb"],
      prepared["w1"], prepared["b1"], prepared["w2"], prepared["b2"])

    out = outp.reshape(T, Bp, C).transpose(1, 0, 2)
    return out[:B]


# ---------------------------------------------------------------------------
# Pure-JAX reference (mirrors the PyTorch module exactly)
# ---------------------------------------------------------------------------
def ref_forward(x, cond, params, drop_audio_cond=False):
    if drop_audio_cond:
        cond = jnp.zeros_like(cond)
    h = jnp.concatenate([x, cond], axis=-1) @ params["proj_w"].T + params["proj_b"]

    def conv(inp, w, b):
        y = lax.conv_general_dilated(
            inp.transpose(0, 2, 1), w, window_strides=(1,),
            padding=[(PAD, PAD)], feature_group_count=GROUPS,
            dimension_numbers=("NCH", "OIH", "NCH"),
            precision=lax.Precision.HIGHEST)
        return y.transpose(0, 2, 1) + b

    def mish_exact(v):
        return v * jnp.tanh(_softplus(v))

    c = mish_exact(conv(h, params["conv1_w"], params["conv1_b"]))
    c = mish_exact(conv(c, params["conv2_w"], params["conv2_b"]))
    return c + h


def init_params(key, in_dim, out_dim):
    ks = jax.random.split(key, 6)
    s = 0.05
    return {
        "proj_w": s * jax.random.normal(ks[0], (out_dim, 2 * in_dim), jnp.float32),
        "proj_b": s * jax.random.normal(ks[1], (out_dim,), jnp.float32),
        "conv1_w": s * jax.random.normal(
            ks[2], (out_dim, out_dim // GROUPS, KERNEL_SIZE), jnp.float32),
        "conv1_b": s * jax.random.normal(ks[3], (out_dim,), jnp.float32),
        "conv2_w": s * jax.random.normal(
            ks[4], (out_dim, out_dim // GROUPS, KERNEL_SIZE), jnp.float32),
        "conv2_b": s * jax.random.normal(ks[5], (out_dim,), jnp.float32),
    }


if __name__ == "__main__":
    B, T = 2, 16
    key = jax.random.PRNGKey(0)
    kx, kc, kp = jax.random.split(key, 3)

    x = jax.random.normal(kx, (B, T, IN_DIM), jnp.float32)
    cond = jax.random.normal(kc, (B, T, IN_DIM), jnp.float32)
    params = init_params(kp, IN_DIM, OUT_DIM)
    prepared = prepare_params(params)          # one-time host-side weight prep

    out = jax.block_until_ready(
        audio_embedding(x, cond, prepared, drop_audio_cond=False))
    ref = ref_forward(x, cond, params, drop_audio_cond=False)
    np.testing.assert_allclose(np.asarray(out), np.asarray(ref),
                               rtol=1e-2, atol=1e-2)

    # drop_audio_cond path (cond zeroed, identical kernel)
    out_drop = jax.block_until_ready(
        audio_embedding(x, cond, prepared, drop_audio_cond=True))
    ref_drop = ref_forward(x, cond, params, drop_audio_cond=True)
    np.testing.assert_allclose(np.asarray(out_drop), np.asarray(ref_drop),
                               rtol=1e-2, atol=1e-2)

    print("KERNEL_OK")
</pallas_src>

<mosaic_0001>
module attributes {stable_mosaic.version = 11 : i64} {
  func.func @kernel(%arg0: i32, %arg1: memref<16x128xf32, #tpu.memory_space<vmem>>, %arg2: memref<128x128xf32, #tpu.memory_space<vmem>>, %arg3: memref<1x128xf32, #tpu.memory_space<vmem>>, %arg4: memref<8x512x128xbf16, #tpu.memory_space<vmem>>, %arg5: memref<1x128xf32, #tpu.memory_space<vmem>>, %arg6: memref<8x512x128xbf16, #tpu.memory_space<vmem>>, %arg7: memref<1x128xf32, #tpu.memory_space<vmem>>, %arg8: memref<16x128xf32, #tpu.memory_space<vmem>>, %arg9: memref<48x128xf32, #tpu.memory_space<vmem>>) attributes {dimension_semantics = [#tpu.dimension_semantics<parallel>], iteration_bounds = array<i64: 1>, scalar_prefetch = 0 : i64, scratch_operands = 1 : i64, tpu.core_type = #tpu.core_type<tc>, window_params = [{transform_indices = @transform_0, window_bounds = array<i64: 16, 128>}, {pipeline_mode = #tpu.pipeline_mode<synchronous>, transform_indices = @transform_1, window_bounds = array<i64: 128, 128>}, {pipeline_mode = #tpu.pipeline_mode<synchronous>, transform_indices = @transform_2, window_bounds = array<i64: 1, 128>}, {pipeline_mode = #tpu.pipeline_mode<synchronous>, transform_indices = @transform_3, window_bounds = array<i64: 8, 512, 128>}, {pipeline_mode = #tpu.pipeline_mode<synchronous>, transform_indices = @transform_4, window_bounds = array<i64: 1, 128>}, {pipeline_mode = #tpu.pipeline_mode<synchronous>, transform_indices = @transform_5, window_bounds = array<i64: 8, 512, 128>}, {pipeline_mode = #tpu.pipeline_mode<synchronous>, transform_indices = @transform_6, window_bounds = array<i64: 1, 128>}, {transform_indices = @transform_7, window_bounds = array<i64: 16, 128>}]} {
    %c0 = arith.constant 0 : index
    %c0_0 = arith.constant 0 : index
    %0 = vector.load %arg1[%c0, %c0_0] : memref<16x128xf32, #tpu.memory_space<vmem>>, vector<16x128xf32>
    %c0_1 = arith.constant 0 : index
    %c0_2 = arith.constant 0 : index
    %1 = vector.load %arg2[%c0_1, %c0_2] : memref<128x128xf32, #tpu.memory_space<vmem>>, vector<128x128xf32>
    %cst = arith.constant dense<0.000000e+00> : vector<16x128xf32>
    %2 = tpu.matmul %0, %1, %cst {dimension_numbers = #tpu.dot_dimension_numbers<[1], [0], [0], [1], [0, 0, 1, 1], [], []>} : vector<16x128xf32>, vector<128x128xf32>, vector<16x128xf32> -> vector<16x128xf32>
    %c0_3 = arith.constant 0 : index
    %c0_4 = arith.constant 0 : index
    %3 = vector.load %arg3[%c0_3, %c0_4] : memref<1x128xf32, #tpu.memory_space<vmem>>, vector<1x128xf32>
    %4 = vector.broadcast %3 : vector<1x128xf32> to vector<16x128xf32>
    %5 = arith.addf %2, %4 : vector<16x128xf32>
    %c0_5 = arith.constant 0 : index
    %c0_6 = arith.constant 0 : index
    %6 = vector.load %arg8[%c0_5, %c0_6] : memref<16x128xf32, #tpu.memory_space<vmem>>, vector<16x128xf32>
    tpu.vector_store %arg8[%c0_5, %c0_6], %5 {strides = array<i32>} : memref<16x128xf32, #tpu.memory_space<vmem>>, vector<16x128xf32>,
    %cst_7 = arith.constant 0.000000e+00 : f32
    %7 = vector.broadcast %cst_7 : f32 to vector<16x128xf32>
    %c0_8 = arith.constant 0 : index
    %c0_9 = arith.constant 0 : index
    %8 = vector.load %arg9[%c0_8, %c0_9] : memref<48x128xf32, #tpu.memory_space<vmem>>, vector<16x128xf32>
    tpu.vector_store %arg9[%c0_8, %c0_9], %7 {strides = array<i32>} : memref<48x128xf32, #tpu.memory_space<vmem>>, vector<16x128xf32>,
    %c32 = arith.constant 32 : index
    %c0_10 = arith.constant 0 : index
    %9 = vector.load %arg9[%c32, %c0_10] : memref<48x128xf32, #tpu.memory_space<vmem>>, vector<16x128xf32>
    tpu.vector_store %arg9[%c32, %c0_10], %7 {strides = array<i32>} : memref<48x128xf32, #tpu.memory_space<vmem>>, vector<16x128xf32>,
    %c16 = arith.constant 16 : index
    %c0_11 = arith.constant 0 : index
    %10 = vector.load %arg9[%c16, %c0_11] : memref<48x128xf32, #tpu.memory_space<vmem>>, vector<16x128xf32>
    tpu.vector_store %arg9[%c16, %c0_11], %5 {strides = array<i32>} : memref<48x128xf32, #tpu.memory_space<vmem>>, vector<16x128xf32>,
    %c0_12 = arith.constant 0 : index
    %c0_13 = arith.constant 0 : index
    %11 = vector.load %arg9[%c0_12, %c0_13] : memref<48x128xf32, #tpu.memory_space<vmem>>, vector<48x128xf32>
    %c0_14 = arith.constant 0 : index
    %c0_15 = arith.constant 0 : index
    %c0_16 = arith.constant 0 : index
    %12 = vector.load %arg4[%c0_14, %c0_15, %c0_16] : memref<8x512x128xbf16, #tpu.memory_space<vmem>>, vector<1x512x128xbf16>
    %13 = vector.shape_cast %12 : vector<1x512x128xbf16> to vector<512x128xbf16>
    %14 = vector.extract_strided_slice %11 {offsets = [8, 0], sizes = [16, 128], strides = [1, 1]} : vector<48x128xf32> to vector<16x128xf32>
    %15 = arith.truncf %14 : vector<16x128xf32> to vector<16x128xbf16>
    %16 = vector.extract_strided_slice %13 {offsets = [128, 0], sizes = [128, 128], strides = [1, 1]} : vector<512x128xbf16> to vector<128x128xbf16>
    %cst_17 = arith.constant dense<0.000000e+00> : vector<16x128xf32>
    %17 = tpu.matmul %15, %16, %cst_17 {dimension_numbers = #tpu.dot_dimension_numbers<[1], [0], [0], [1], [0, 0, 1, 1], [], []>} : vector<16x128xbf16>, vector<128x128xbf16>, vector<16x128xf32> -> vector<16x128xf32>
    %18 = vector.extract_strided_slice %11 {offsets = [16, 0], sizes = [16, 128], strides = [1, 1]} : vector<48x128xf32> to vector<16x128xf32>
    %19 = arith.truncf %18 : vector<16x128xf32> to vector<16x128xbf16>
    %20 = vector.extract_strided_slice %13 {offsets = [256, 0], sizes = [128, 128], strides = [1, 1]} : vector<512x128xbf16> to vector<128x128xbf16>
    %cst_18 = arith.constant dense<0.000000e+00> : vector<16x128xf32>
    %21 = tpu.matmul %19, %20, %cst_18 {dimension_numbers = #tpu.dot_dimension_numbers<[1], [0], [0], [1], [0, 0, 1, 1], [], []>} : vector<16x128xbf16>, vector<128x128xbf16>, vector<16x128xf32> -> vector<16x128xf32>
    %22 = arith.addf %17, %21 : vector<16x128xf32>
    %23 = vector.extract_strided_slice %11 {offsets = [24, 0], sizes = [16, 128], strides = [1, 1]} : vector<48x128xf32> to vector<16x128xf32>
    %24 = arith.truncf %23 : vector<16x128xf32> to vector<16x128xbf16>
    %25 = vector.extract_strided_slice %13 {offsets = [384, 0], sizes = [128, 128], strides = [1, 1]} : vector<512x128xbf16> to vector<128x128xbf16>
    %cst_19 = arith.constant dense<0.000000e+00> : vector<16x128xf32>
    %26 = tpu.matmul %24, %25, %cst_19 {dimension_numbers = #tpu.dot_dimension_numbers<[1], [0], [0], [1], [0, 0, 1, 1], [], []>} : vector<16x128xbf16>, vector<128x128xbf16>, vector<16x128xf32> -> vector<16x128xf32>
    %27 = arith.addf %22, %26 : vector<16x128xf32>
    %c47_i32 = arith.constant 47 : i32
    %28 = tpu.dynamic_rotate %11 by %c47_i32 dim 0 : vector<48x128xf32>, i32 -> vector<48x128xf32>
    %c1 = arith.constant 1 : index
    %c0_20 = arith.constant 0 : index
    %c0_21 = arith.constant 0 : index
    %29 = vector.load %arg4[%c1, %c0_20, %c0_21] : memref<8x512x128xbf16, #tpu.memory_space<vmem>>, vector<1x512x128xbf16>
    %30 = vector.shape_cast %29 : vector<1x512x128xbf16> to vector<512x128xbf16>
    %31 = vector.extract_strided_slice %28 {offsets = [0, 0], sizes = [16, 128], strides = [1, 1]} : vector<48x128xf32> to vector<16x128xf32>
    %32 = arith.truncf %31 : vector<16x128xf32> to vector<16x128xbf16>
    %33 = vector.extract_strided_slice %30 {offsets = [0, 0], sizes = [128, 128], strides = [1, 1]} : vector<512x128xbf16> to vector<128x128xbf16>
    %cst_22 = arith.constant dense<0.000000e+00> : vector<16x128xf32>
    %34 = tpu.matmul %32, %33, %cst_22 {dimension_numbers = #tpu.dot_dimension_numbers<[1], [0], [0], [1], [0, 0, 1, 1], [], []>} : vector<16x128xbf16>, vector<128x128xbf16>, vector<16x128xf32> -> vector<16x128xf32>
    %35 = arith.addf %27, %34 : vector<16x128xf32>
    %36 = vector.extract_strided_slice %28 {offsets = [8, 0], sizes = [16, 128], strides = [1, 1]} : vector<48x128xf32> to vector<16x128xf32>
    %37 = arith.truncf %36 : vector<16x128xf32> to vector<16x128xbf16>
    %38 = vector.extract_strided_slice %30 {offsets = [128, 0], sizes = [128, 128], strides = [1, 1]} : vector<512x128xbf16> to vector<128x128xbf16>
    %cst_23 = arith.constant dense<0.000000e+00> : vector<16x128xf32>
    %39 = tpu.matmul %37, %38, %cst_23 {dimension_numbers = #tpu.dot_dimension_numbers<[1], [0], [0], [1], [0, 0, 1, 1], [], []>} : vector<16x128xbf16>, vector<128x128xbf16>, vector<16x128xf32> -> vector<16x128xf32>
    %40 = arith.addf %35, %39 : vector<16x128xf32>
    %41 = vector.extract_strided_slice %28 {offsets = [16, 0], sizes = [16, 128], strides = [1, 1]} : vector<48x128xf32> to vector<16x128xf32>
    %42 = arith.truncf %41 : vector<16x128xf32> to vector<16x128xbf16>
    %43 = vector.extract_strided_slice %30 {offsets = [256, 0], sizes = [128, 128], strides = [1, 1]} : vector<512x128xbf16> to vector<128x128xbf16>
    %cst_24 = arith.constant dense<0.000000e+00> : vector<16x128xf32>
    %44 = tpu.matmul %42, %43, %cst_24 {dimension_numbers = #tpu.dot_dimension_numbers<[1], [0], [0], [1], [0, 0, 1, 1], [], []>} : vector<16x128xbf16>, vector<128x128xbf16>, vector<16x128xf32> -> vector<16x128xf32>
    %45 = arith.addf %40, %44 : vector<16x128xf32>
    %46 = vector.extract_strided_slice %28 {offsets = [24, 0], sizes = [16, 128], strides = [1, 1]} : vector<48x128xf32> to vector<16x128xf32>
    %47 = arith.truncf %46 : vector<16x128xf32> to vector<16x128xbf16>
    %48 = vector.extract_strided_slice %30 {offsets = [384, 0], sizes = [128, 128], strides = [1, 1]} : vector<512x128xbf16> to vector<128x128xbf16>
    %cst_25 = arith.constant dense<0.000000e+00> : vector<16x128xf32>
    %49 = tpu.matmul %47, %48, %cst_25 {dimension_numbers = #tpu.dot_dimension_numbers<[1], [0], [0], [1], [0, 0, 1, 1], [], []>} : vector<16x128xbf16>, vector<128x128xbf16>, vector<16x128xf32> -> vector<16x128xf32>
    %50 = arith.addf %45, %49 : vector<16x128xf32>
    %c46_i32 = arith.constant 46 : i32
    %51 = tpu.dynamic_rotate %11 by %c46_i32 dim 0 : vector<48x128xf32>, i32 -> vector<48x128xf32>
    %c2 = arith.constant 2 : index
    %c0_26 = arith.constant 0 : index
    %c0_27 = arith.constant 0 : index
    %52 = vector.load %arg4[%c2, %c0_26, %c0_27] : memref<8x512x128xbf16, #tpu.memory_space<vmem>>, vector<1x512x128xbf16>
    %53 = vector.shape_cast %52 : vector<1x512x128xbf16> to vector<512x128xbf16>
    %54 = vector.extract_strided_slice %51 {offsets = [0, 0], sizes = [16, 128], strides = [1, 1]} : vector<48x128xf32> to vector<16x128xf32>
    %55 = arith.truncf %54 : vector<16x128xf32> to vector<16x128xbf16>
    %56 = vector.extract_strided_slice %53 {offsets = [0, 0], sizes = [128, 128], strides = [1, 1]} : vector<512x128xbf16> to vector<128x128xbf16>
    %cst_28 = arith.constant dense<0.000000e+00> : vector<16x128xf32>
    %57 = tpu.matmul %55, %56, %cst_28 {dimension_numbers = #tpu.dot_dimension_numbers<[1], [0], [0], [1], [0, 0, 1, 1], [], []>} : vector<16x128xbf16>, vector<128x128xbf16>, vector<16x128xf32> -> vector<16x128xf32>
    %58 = arith.addf %50, %57 : vector<16x128xf32>
    %59 = vector.extract_strided_slice %51 {offsets = [8, 0], sizes = [16, 128], strides = [1, 1]} : vector<48x128xf32> to vector<16x128xf32>
    %60 = arith.truncf %59 : vector<16x128xf32> to vector<16x128xbf16>
    %61 = vector.extract_strided_slice %53 {offsets = [128, 0], sizes = [128, 128], strides = [1, 1]} : vector<512x128xbf16> to vector<128x128xbf16>
    %cst_29 = arith.constant dense<0.000000e+00> : vector<16x128xf32>
    %62 = tpu.matmul %60, %61, %cst_29 {dimension_numbers = #tpu.dot_dimension_numbers<[1], [0], [0], [1], [0, 0, 1, 1], [], []>} : vector<16x128xbf16>, vector<128x128xbf16>, vector<16x128xf32> -> vector<16x128xf32>
    %63 = arith.addf %58, %62 : vector<16x128xf32>
    %64 = vector.extract_strided_slice %51 {offsets = [16, 0], sizes = [16, 128], strides = [1, 1]} : vector<48x128xf32> to vector<16x128xf32>
    %65 = arith.truncf %64 : vector<16x128xf32> to vector<16x128xbf16>
    %66 = vector.extract_strided_slice %53 {offsets = [256, 0], sizes = [128, 128], strides = [1, 1]} : vector<512x128xbf16> to vector<128x128xbf16>
    %cst_30 = arith.constant dense<0.000000e+00> : vector<16x128xf32>
    %67 = tpu.matmul %65, %66, %cst_30 {dimension_numbers = #tpu.dot_dimension_numbers<[1], [0], [0], [1], [0, 0, 1, 1], [], []>} : vector<16x128xbf16>, vector<128x128xbf16>, vector<16x128xf32> -> vector<16x128xf32>
    %68 = arith.addf %63, %67 : vector<16x128xf32>
    %69 = vector.extract_strided_slice %51 {offsets = [24, 0], sizes = [16, 128], strides = [1, 1]} : vector<48x128xf32> to vector<16x128xf32>
    %70 = arith.truncf %69 : vector<16x128xf32> to vector<16x128xbf16>
    %71 = vector.extract_strided_slice %53 {offsets = [384, 0], sizes = [128, 128], strides = [1, 1]} : vector<512x128xbf16> to vector<128x128xbf16>
    %cst_31 = arith.constant dense<0.000000e+00> : vector<16x128xf32>
    %72 = tpu.matmul %70, %71, %cst_31 {dimension_numbers = #tpu.dot_dimension_numbers<[1], [0], [0], [1], [0, 0, 1, 1], [], []>} : vector<16x128xbf16>, vector<128x128xbf16>, vector<16x128xf32> -> vector<16x128xf32>
    %73 = arith.addf %68, %72 : vector<16x128xf32>
    %c45_i32 = arith.constant 45 : i32
    %74 = tpu.dynamic_rotate %11 by %c45_i32 dim 0 : vector<48x128xf32>, i32 -> vector<48x128xf32>
    %c3 = arith.constant 3 : index
    %c0_32 = arith.constant 0 : index
    %c0_33 = arith.constant 0 : index
    %75 = vector.load %arg4[%c3, %c0_32, %c0_33] : memref<8x512x128xbf16, #tpu.memory_space<vmem>>, vector<1x512x128xbf16>
    %76 = vector.shape_cast %75 : vector<1x512x128xbf16> to vector<512x128xbf16>
    %77 = vector.extract_strided_slice %74 {offsets = [0, 0], sizes = [16, 128], strides = [1, 1]} : vector<48x128xf32> to vector<16x128xf32>
    %78 = arith.truncf %77 : vector<16x128xf32> to vector<16x128xbf16>
    %79 = vector.extract_strided_slice %76 {offsets = [0, 0], sizes = [128, 128], strides = [1, 1]} : vector<512x128xbf16> to vector<128x128xbf16>
    %cst_34 = arith.constant dense<0.000000e+00> : vector<16x128xf32>
    %80 = tpu.matmul %78, %79, %cst_34 {dimension_numbers = #tpu.dot_dimension_numbers<[1], [0], [0], [1], [0, 0, 1, 1], [], []>} : vector<16x128xbf16>, vector<128x128xbf16>, vector<16x128xf32> -> vector<16x128xf32>
    %81 = arith.addf %73, %80 : vector<16x128xf32>
    %82 = vector.extract_strided_slice %74 {offsets = [8, 0], sizes = [16, 128], strides = [1, 1]} : vector<48x128xf32> to vector<16x128xf32>
    %83 = arith.truncf %82 : vector<16x128xf32> to vector<16x128xbf16>
    %84 = vector.extract_strided_slice %76 {offsets = [128, 0], sizes = [128, 128], strides = [1, 1]} : vector<512x128xbf16> to vector<128x128xbf16>
    %cst_35 = arith.constant dense<0.000000e+00> : vector<16x128xf32>
    %85 = tpu.matmul %83, %84, %cst_35 {dimension_numbers = #tpu.dot_dimension_numbers<[1], [0], [0], [1], [0, 0, 1, 1], [], []>} : vector<16x128xbf16>, vector<128x128xbf16>, vector<16x128xf32> -> vector<16x128xf32>
    %86 = arith.addf %81, %85 : vector<16x128xf32>
    %87 = vector.extract_strided_slice %74 {offsets = [16, 0], sizes = [16, 128], strides = [1, 1]} : vector<48x128xf32> to vector<16x128xf32>
    %88 = arith.truncf %87 : vector<16x128xf32> to vector<16x128xbf16>
    %89 = vector.extract_strided_slice %76 {offsets = [256, 0], sizes = [128, 128], strides = [1, 1]} : vector<512x128xbf16> to vector<128x128xbf16>
    %cst_36 = arith.constant dense<0.000000e+00> : vector<16x128xf32>
    %90 = tpu.matmul %88, %89, %cst_36 {dimension_numbers = #tpu.dot_dimension_numbers<[1], [0], [0], [1], [0, 0, 1, 1], [], []>} : vector<16x128xbf16>, vector<128x128xbf16>, vector<16x128xf32> -> vector<16x128xf32>
    %91 = arith.addf %86, %90 : vector<16x128xf32>
    %92 = vector.extract_strided_slice %74 {offsets = [24, 0], sizes = [16, 128], strides = [1, 1]} : vector<48x128xf32> to vector<16x128xf32>
    %93 = arith.truncf %92 : vector<16x128xf32> to vector<16x128xbf16>
    %94 = vector.extract_strided_slice %76 {offsets = [384, 0], sizes = [128, 128], strides = [1, 1]} : vector<512x128xbf16> to vector<128x128xbf16>
    %cst_37 = arith.constant dense<0.000000e+00> : vector<16x128xf32>
    %95 = tpu.matmul %93, %94, %cst_37 {dimension_numbers = #tpu.dot_dimension_numbers<[1], [0], [0], [1], [0, 0, 1, 1], [], []>} : vector<16x128xbf16>, vector<128x128xbf16>, vector<16x128xf32> -> vector<16x128xf32>
    %96 = arith.addf %91, %95 : vector<16x128xf32>
    %c44_i32 = arith.constant 44 : i32
    %97 = tpu.dynamic_rotate %11 by %c44_i32 dim 0 : vector<48x128xf32>, i32 -> vector<48x128xf32>
    %c4 = arith.constant 4 : index
    %c0_38 = arith.constant 0 : index
    %c0_39 = arith.constant 0 : index
    %98 = vector.load %arg4[%c4, %c0_38, %c0_39] : memref<8x512x128xbf16, #tpu.memory_space<vmem>>, vector<1x512x128xbf16>
    %99 = vector.shape_cast %98 : vector<1x512x128xbf16> to vector<512x128xbf16>
    %100 = vector.extract_strided_slice %97 {offsets = [0, 0], sizes = [16, 128], strides = [1, 1]} : vector<48x128xf32> to vector<16x128xf32>
    %101 = arith.truncf %100 : vector<16x128xf32> to vector<16x128xbf16>
    %102 = vector.extract_strided_slice %99 {offsets = [0, 0], sizes = [128, 128], strides = [1, 1]} : vector<512x128xbf16> to vector<128x128xbf16>
    %cst_40 = arith.constant dense<0.000000e+00> : vector<16x128xf32>
    %103 = tpu.matmul %101, %102, %cst_40 {dimension_numbers = #tpu.dot_dimension_numbers<[1], [0], [0], [1], [0, 0, 1, 1], [], []>} : vector<16x128xbf16>, vector<128x128xbf16>, vector<16x128xf32> -> vector<16x128xf32>
    %104 = arith.addf %96, %103 : vector<16x128xf32>
    %105 = vector.extract_strided_slice %97 {offsets = [8, 0], sizes = [16, 128], strides = [1, 1]} : vector<48x128xf32> to vector<16x128xf32>
    %106 = arith.truncf %105 : vector<16x128xf32> to vector<16x128xbf16>
    %107 = vector.extract_strided_slice %99 {offsets = [128, 0], sizes = [128, 128], strides = [1, 1]} : vector<512x128xbf16> to vector<128x128xbf16>
    %cst_41 = arith.constant dense<0.000000e+00> : vector<16x128xf32>
    %108 = tpu.matmul %106, %107, %cst_41 {dimension_numbers = #tpu.dot_dimension_numbers<[1], [0], [0], [1], [0, 0, 1, 1], [], []>} : vector<16x128xbf16>, vector<128x128xbf16>, vector<16x128xf32> -> vector<16x128xf32>
    %109 = arith.addf %104, %108 : vector<16x128xf32>
    %110 = vector.extract_strided_slice %97 {offsets = [16, 0], sizes = [16, 128], strides = [1, 1]} : vector<48x128xf32> to vector<16x128xf32>
    %111 = arith.truncf %110 : vector<16x128xf32> to vector<16x128xbf16>
    %112 = vector.extract_strided_slice %99 {offsets = [256, 0], sizes = [128, 128], strides = [1, 1]} : vector<512x128xbf16> to vector<128x128xbf16>
    %cst_42 = arith.constant dense<0.000000e+00> : vector<16x128xf32>
    %113 = tpu.matmul %111, %112, %cst_42 {dimension_numbers = #tpu.dot_dimension_numbers<[1], [0], [0], [1], [0, 0, 1, 1], [], []>} : vector<16x128xbf16>, vector<128x128xbf16>, vector<16x128xf32> -> vector<16x128xf32>
    %114 = arith.addf %109, %113 : vector<16x128xf32>
    %115 = vector.extract_strided_slice %97 {offsets = [24, 0], sizes = [16, 128], strides = [1, 1]} : vector<48x128xf32> to vector<16x128xf32>
    %116 = arith.truncf %115 : vector<16x128xf32> to vector<16x128xbf16>
    %117 = vector.extract_strided_slice %99 {offsets = [384, 0], sizes = [128, 128], strides = [1, 1]} : vector<512x128xbf16> to vector<128x128xbf16>
    %cst_43 = arith.constant dense<0.000000e+00> : vector<16x128xf32>
    %118 = tpu.matmul %116, %117, %cst_43 {dimension_numbers = #tpu.dot_dimension_numbers<[1], [0], [0], [1], [0, 0, 1, 1], [], []>} : vector<16x128xbf16>, vector<128x128xbf16>, vector<16x128xf32> -> vector<16x128xf32>
    %119 = arith.addf %114, %118 : vector<16x128xf32>
    %c43_i32 = arith.constant 43 : i32
    %120 = tpu.dynamic_rotate %11 by %c43_i32 dim 0 : vector<48x128xf32>, i32 -> vector<48x128xf32>
    %c5 = arith.constant 5 : index
    %c0_44 = arith.constant 0 : index
    %c0_45 = arith.constant 0 : index
    %121 = vector.load %arg4[%c5, %c0_44, %c0_45] : memref<8x512x128xbf16, #tpu.memory_space<vmem>>, vector<1x512x128xbf16>
    %122 = vector.shape_cast %121 : vector<1x512x128xbf16> to vector<512x128xbf16>
    %123 = vector.extract_strided_slice %120 {offsets = [0, 0], sizes = [16, 128], strides = [1, 1]} : vector<48x128xf32> to vector<16x128xf32>
    %124 = arith.truncf %123 : vector<16x128xf32> to vector<16x128xbf16>
    %125 = vector.extract_strided_slice %122 {offsets = [0, 0], sizes = [128, 128], strides = [1, 1]} : vector<512x128xbf16> to vector<128x128xbf16>
    %cst_46 = arith.constant dense<0.000000e+00> : vector<16x128xf32>
    %126 = tpu.matmul %124, %125, %cst_46 {dimension_numbers = #tpu.dot_dimension_numbers<[1], [0], [0], [1], [0, 0, 1, 1], [], []>} : vector<16x128xbf16>, vector<128x128xbf16>, vector<16x128xf32> -> vector<16x128xf32>
    %127 = arith.addf %119, %126 : vector<16x128xf32>
    %128 = vector.extract_strided_slice %120 {offsets = [8, 0], sizes = [16, 128], strides = [1, 1]} : vector<48x128xf32> to vector<16x128xf32>
    %129 = arith.truncf %128 : vector<16x128xf32> to vector<16x128xbf16>
    %130 = vector.extract_strided_slice %122 {offsets = [128, 0], sizes = [128, 128], strides = [1, 1]} : vector<512x128xbf16> to vector<128x128xbf16>
    %cst_47 = arith.constant dense<0.000000e+00> : vector<16x128xf32>
    %131 = tpu.matmul %129, %130, %cst_47 {dimension_numbers = #tpu.dot_dimension_numbers<[1], [0], [0], [1], [0, 0, 1, 1], [], []>} : vector<16x128xbf16>, vector<128x128xbf16>, vector<16x128xf32> -> vector<16x128xf32>
    %132 = arith.addf %127, %131 : vector<16x128xf32>
    %133 = vector.extract_strided_slice %120 {offsets = [16, 0], sizes = [16, 128], strides = [1, 1]} : vector<48x128xf32> to vector<16x128xf32>
    %134 = arith.truncf %133 : vector<16x128xf32> to vector<16x128xbf16>
    %135 = vector.extract_strided_slice %122 {offsets = [256, 0], sizes = [128, 128], strides = [1, 1]} : vector<512x128xbf16> to vector<128x128xbf16>
    %cst_48 = arith.constant dense<0.000000e+00> : vector<16x128xf32>
    %136 = tpu.matmul %134, %135, %cst_48 {dimension_numbers = #tpu.dot_dimension_numbers<[1], [0], [0], [1], [0, 0, 1, 1], [], []>} : vector<16x128xbf16>, vector<128x128xbf16>, vector<16x128xf32> -> vector<16x128xf32>
    %137 = arith.addf %132, %136 : vector<16x128xf32>
    %138 = vector.extract_strided_slice %120 {offsets = [24, 0], sizes = [16, 128], strides = [1, 1]} : vector<48x128xf32> to vector<16x128xf32>
    %139 = arith.truncf %138 : vector<16x128xf32> to vector<16x128xbf16>
    %140 = vector.extract_strided_slice %122 {offsets = [384, 0], sizes = [128, 128], strides = [1, 1]} : vector<512x128xbf16> to vector<128x128xbf16>
    %cst_49 = arith.constant dense<0.000000e+00> : vector<16x128xf32>
    %141 = tpu.matmul %139, %140, %cst_49 {dimension_numbers = #tpu.dot_dimension_numbers<[1], [0], [0], [1], [0, 0, 1, 1], [], []>} : vector<16x128xbf16>, vector<128x128xbf16>, vector<16x128xf32> -> vector<16x128xf32>
    %142 = arith.addf %137, %141 : vector<16x128xf32>
    %c42_i32 = arith.constant 42 : i32
    %143 = tpu.dynamic_rotate %11 by %c42_i32 dim 0 : vector<48x128xf32>, i32 -> vector<48x128xf32>
    %c6 = arith.constant 6 : index
    %c0_50 = arith.constant 0 : index
    %c0_51 = arith.constant 0 : index
    %144 = vector.load %arg4[%c6, %c0_50, %c0_51] : memref<8x512x128xbf16, #tpu.memory_space<vmem>>, vector<1x512x128xbf16>
    %145 = vector.shape_cast %144 : vector<1x512x128xbf16> to vector<512x128xbf16>
    %146 = vector.extract_strided_slice %143 {offsets = [0, 0], sizes = [16, 128], strides = [1, 1]} : vector<48x128xf32> to vector<16x128xf32>
    %147 = arith.truncf %146 : vector<16x128xf32> to vector<16x128xbf16>
    %148 = vector.extract_strided_slice %145 {offsets = [0, 0], sizes = [128, 128], strides = [1, 1]} : vector<512x128xbf16> to vector<128x128xbf16>
    %cst_52 = arith.constant dense<0.000000e+00> : vector<16x128xf32>
    %149 = tpu.matmul %147, %148, %cst_52 {dimension_numbers = #tpu.dot_dimension_numbers<[1], [0], [0], [1], [0, 0, 1, 1], [], []>} : vector<16x128xbf16>, vector<128x128xbf16>, vector<16x128xf32> -> vector<16x128xf32>
    %150 = arith.addf %142, %149 : vector<16x128xf32>
    %151 = vector.extract_strided_slice %143 {offsets = [8, 0], sizes = [16, 128], strides = [1, 1]} : vector<48x128xf32> to vector<16x128xf32>
    %152 = arith.truncf %151 : vector<16x128xf32> to vector<16x128xbf16>
    %153 = vector.extract_strided_slice %145 {offsets = [128, 0], sizes = [128, 128], strides = [1, 1]} : vector<512x128xbf16> to vector<128x128xbf16>
    %cst_53 = arith.constant dense<0.000000e+00> : vector<16x128xf32>
    %154 = tpu.matmul %152, %153, %cst_53 {dimension_numbers = #tpu.dot_dimension_numbers<[1], [0], [0], [1], [0, 0, 1, 1], [], []>} : vector<16x128xbf16>, vector<128x128xbf16>, vector<16x128xf32> -> vector<16x128xf32>
    %155 = arith.addf %150, %154 : vector<16x128xf32>
    %156 = vector.extract_strided_slice %143 {offsets = [16, 0], sizes = [16, 128], strides = [1, 1]} : vector<48x128xf32> to vector<16x128xf32>
    %157 = arith.truncf %156 : vector<16x128xf32> to vector<16x128xbf16>
    %158 = vector.extract_strided_slice %145 {offsets = [256, 0], sizes = [128, 128], strides = [1, 1]} : vector<512x128xbf16> to vector<128x128xbf16>
    %cst_54 = arith.constant dense<0.000000e+00> : vector<16x128xf32>
    %159 = tpu.matmul %157, %158, %cst_54 {dimension_numbers = #tpu.dot_dimension_numbers<[1], [0], [0], [1], [0, 0, 1, 1], [], []>} : vector<16x128xbf16>, vector<128x128xbf16>, vector<16x128xf32> -> vector<16x128xf32>
    %160 = arith.addf %155, %159 : vector<16x128xf32>
    %161 = vector.extract_strided_slice %143 {offsets = [24, 0], sizes = [16, 128], strides = [1, 1]} : vector<48x128xf32> to vector<16x128xf32>
    %162 = arith.truncf %161 : vector<16x128xf32> to vector<16x128xbf16>
    %163 = vector.extract_strided_slice %145 {offsets = [384, 0], sizes = [128, 128], strides = [1, 1]} : vector<512x128xbf16> to vector<128x128xbf16>
    %cst_55 = arith.constant dense<0.000000e+00> : vector<16x128xf32>
    %164 = tpu.matmul %162, %163, %cst_55 {dimension_numbers = #tpu.dot_dimension_numbers<[1], [0], [0], [1], [0, 0, 1, 1], [], []>} : vector<16x128xbf16>, vector<128x128xbf16>, vector<16x128xf32> -> vector<16x128xf32>
    %165 = arith.addf %160, %164 : vector<16x128xf32>
    %c41_i32 = arith.constant 41 : i32
    %166 = tpu.dynamic_rotate %11 by %c41_i32 dim 0 : vector<48x128xf32>, i32 -> vector<48x128xf32>
    %c7 = arith.constant 7 : index
    %c0_56 = arith.constant 0 : index
    %c0_57 = arith.constant 0 : index
    %167 = vector.load %arg4[%c7, %c0_56, %c0_57] : memref<8x512x128xbf16, #tpu.memory_space<vmem>>, vector<1x512x128xbf16>
    %168 = vector.shape_cast %167 : vector<1x512x128xbf16> to vector<512x128xbf16>
    %169 = vector.extract_strided_slice %166 {offsets = [0, 0], sizes = [16, 128], strides = [1, 1]} : vector<48x128xf32> to vector<16x128xf32>
    %170 = arith.truncf %169 : vector<16x128xf32> to vector<16x128xbf16>
    %171 = vector.extract_strided_slice %168 {offsets = [0, 0], sizes = [128, 128], strides = [1, 1]} : vector<512x128xbf16> to vector<128x128xbf16>
    %cst_58 = arith.constant dense<0.000000e+00> : vector<16x128xf32>
    %172 = tpu.matmul %170, %171, %cst_58 {dimension_numbers = #tpu.dot_dimension_numbers<[1], [0], [0], [1], [0, 0, 1, 1], [], []>} : vector<16x128xbf16>, vector<128x128xbf16>, vector<16x128xf32> -> vector<16x128xf32>
    %173 = arith.addf %165, %172 : vector<16x128xf32>
    %174 = vector.extract_strided_slice %166 {offsets = [8, 0], sizes = [16, 128], strides = [1, 1]} : vector<48x128xf32> to vector<16x128xf32>
    %175 = arith.truncf %174 : vector<16x128xf32> to vector<16x128xbf16>
    %176 = vector.extract_strided_slice %168 {offsets = [128, 0], sizes = [128, 128], strides = [1, 1]} : vector<512x128xbf16> to vector<128x128xbf16>
    %cst_59 = arith.constant dense<0.000000e+00> : vector<16x128xf32>
    %177 = tpu.matmul %175, %176, %cst_59 {dimension_numbers = #tpu.dot_dimension_numbers<[1], [0], [0], [1], [0, 0, 1, 1], [], []>} : vector<16x128xbf16>, vector<128x128xbf16>, vector<16x128xf32> -> vector<16x128xf32>
    %178 = arith.addf %173, %177 : vector<16x128xf32>
    %179 = vector.extract_strided_slice %166 {offsets = [16, 0], sizes = [16, 128], strides = [1, 1]} : vector<48x128xf32> to vector<16x128xf32>
    %180 = arith.truncf %179 : vector<16x128xf32> to vector<16x128xbf16>
    %181 = vector.extract_strided_slice %168 {offsets = [256, 0], sizes = [128, 128], strides = [1, 1]} : vector<512x128xbf16> to vector<128x128xbf16>
    %cst_60 = arith.constant dense<0.000000e+00> : vector<16x128xf32>
    %182 = tpu.matmul %180, %181, %cst_60 {dimension_numbers = #tpu.dot_dimension_numbers<[1], [0], [0], [1], [0, 0, 1, 1], [], []>} : vector<16x128xbf16>, vector<128x128xbf16>, vector<16x128xf32> -> vector<16x128xf32>
    %183 = arith.addf %178, %182 : vector<16x128xf32>
    %184 = vector.extract_strided_slice %166 {offsets = [24, 0], sizes = [16, 128], strides = [1, 1]} : vector<48x128xf32> to vector<16x128xf32>
    %185 = arith.truncf %184 : vector<16x128xf32> to vector<16x128xbf16>
    %186 = vector.extract_strided_slice %168 {offsets = [384, 0], sizes = [128, 128], strides = [1, 1]} : vector<512x128xbf16> to vector<128x128xbf16>
    %cst_61 = arith.constant dense<0.000000e+00> : vector<16x128xf32>
    %187 = tpu.matmul %185, %186, %cst_61 {dimension_numbers = #tpu.dot_dimension_numbers<[1], [0], [0], [1], [0, 0, 1, 1], [], []>} : vector<16x128xbf16>, vector<128x128xbf16>, vector<16x128xf32> -> vector<16x128xf32>
    %188 = arith.addf %183, %187 : vector<16x128xf32>
    %c0_62 = arith.constant 0 : index
    %c0_63 = arith.constant 0 : index
    %189 = vector.load %arg5[%c0_62, %c0_63] : memref<1x128xf32, #tpu.memory_space<vmem>>, vector<1x128xf32>
    %190 = vector.broadcast %189 : vector<1x128xf32> to vector<16x128xf32>
    %191 = arith.addf %188, %190 : vector<16x128xf32>
    %192 = math.absf %191 : vector<16x128xf32>
    %cst_64 = arith.constant 0.000000e+00 : f32
    %193 = vector.broadcast %cst_64 : f32 to vector<16x128xf32>
    %194 = arith.subf %193, %192 : vector<16x128xf32>
    %195 = math.exp %194 : vector<16x128xf32>
    %cst_65 = arith.constant 2.000000e+00 : f32
    %196 = vector.broadcast %cst_65 : f32 to vector<16x128xf32>
    %197 = arith.mulf %196, %195 : vector<16x128xf32>
    %cst_66 = arith.constant 1.000000e+00 : f32
    %198 = vector.broadcast %cst_66 : f32 to vector<16x128xf32>
    %199 = arith.addf %198, %197 : vector<16x128xf32>
    %cst_67 = arith.constant 2.000000e+00 : f32
    %200 = vector.broadcast %cst_67 : f32 to vector<16x128xf32>
    %201 = arith.mulf %200, %195 : vector<16x128xf32>
    %202 = arith.mulf %201, %195 : vector<16x128xf32>
    %203 = arith.addf %199, %202 : vector<16x128xf32>
    %cst_68 = arith.constant 2.000000e+00 : f32
    %204 = vector.broadcast %cst_68 : f32 to vector<16x128xf32>
    %205 = arith.addf %204, %195 : vector<16x128xf32>
    %206 = arith.mulf %195, %205 : vector<16x128xf32>
    %cst_69 = arith.constant 2.000000e+00 : f32
    %207 = vector.broadcast %cst_69 : f32 to vector<16x128xf32>
    %208 = arith.addf %207, %206 : vector<16x128xf32>
    %cst_70 = arith.constant 0.000000e+00 : f32
    %209 = vector.broadcast %cst_70 : f32 to vector<16x128xf32>
    %210 = arith.cmpf oge, %191, %209 : vector<16x128xf32>
    %211 = arith.select %210, %199, %206 : vector<16x128xi1>, vector<16x128xf32>
    %cst_71 = arith.constant 0.000000e+00 : f32
    %212 = vector.broadcast %cst_71 : f32 to vector<16x128xf32>
    %213 = arith.cmpf oge, %191, %212 : vector<16x128xf32>
    %214 = arith.select %213, %203, %208 : vector<16x128xi1>, vector<16x128xf32>
    %215 = arith.mulf %191, %211 : vector<16x128xf32>
    %216 = tpu.reciprocal %214 {approx = true} : vector<16x128xf32> -> vector<16x128xf32>
    %217 = arith.mulf %215, %216 : vector<16x128xf32>
    %c16_72 = arith.constant 16 : index
    %c0_73 = arith.constant 0 : index
    %218 = vector.load %arg9[%c16_72, %c0_73] : memref<48x128xf32, #tpu.memory_space<vmem>>, vector<16x128xf32>
    tpu.vector_store %arg9[%c16_72, %c0_73], %217 {strides = array<i32>} : memref<48x128xf32, #tpu.memory_space<vmem>>, vector<16x128xf32>,
    %c0_74 = arith.constant 0 : index
    %c0_75 = arith.constant 0 : index
    %219 = vector.load %arg9[%c0_74, %c0_75] : memref<48x128xf32, #tpu.memory_space<vmem>>, vector<48x128xf32>
    %c0_76 = arith.constant 0 : index
    %c0_77 = arith.constant 0 : index
    %c0_78 = arith.constant 0 : index
    %220 = vector.load %arg6[%c0_76, %c0_77, %c0_78] : memref<8x512x128xbf16, #tpu.memory_space<vmem>>, vector<1x512x128xbf16>
    %221 = vector.shape_cast %220 : vector<1x512x128xbf16> to vector<512x128xbf16>
    %222 = vector.extract_strided_slice %219 {offsets = [8, 0], sizes = [16, 128], strides = [1, 1]} : vector<48x128xf32> to vector<16x128xf32>
    %223 = arith.truncf %222 : vector<16x128xf32> to vector<16x128xbf16>
    %224 = vector.extract_strided_slice %221 {offsets = [128, 0], sizes = [128, 128], strides = [1, 1]} : vector<512x128xbf16> to vector<128x128xbf16>
    %cst_79 = arith.constant dense<0.000000e+00> : vector<16x128xf32>
    %225 = tpu.matmul %223, %224, %cst_79 {dimension_numbers = #tpu.dot_dimension_numbers<[1], [0], [0], [1], [0, 0, 1, 1], [], []>} : vector<16x128xbf16>, vector<128x128xbf16>, vector<16x128xf32> -> vector<16x128xf32>
    %226 = vector.extract_strided_slice %219 {offsets = [16, 0], sizes = [16, 128], strides = [1, 1]} : vector<48x128xf32> to vector<16x128xf32>
    %227 = arith.truncf %226 : vector<16x128xf32> to vector<16x128xbf16>
    %228 = vector.extract_strided_slice %221 {offsets = [256, 0], sizes = [128, 128], strides = [1, 1]} : vector<512x128xbf16> to vector<128x128xbf16>
    %cst_80 = arith.constant dense<0.000000e+00> : vector<16x128xf32>
    %229 = tpu.matmul %227, %228, %cst_80 {dimension_numbers = #tpu.dot_dimension_numbers<[1], [0], [0], [1], [0, 0, 1, 1], [], []>} : vector<16x128xbf16>, vector<128x128xbf16>, vector<16x128xf32> -> vector<16x128xf32>
    %230 = arith.addf %225, %229 : vector<16x128xf32>
    %231 = vector.extract_strided_slice %219 {offsets = [24, 0], sizes = [16, 128], strides = [1, 1]} : vector<48x128xf32> to vector<16x128xf32>
    %232 = arith.truncf %231 : vector<16x128xf32> to vector<16x128xbf16>
    %233 = vector.extract_strided_slice %221 {offsets = [384, 0], sizes = [128, 128], strides = [1, 1]} : vector<512x128xbf16> to vector<128x128xbf16>
    %cst_81 = arith.constant dense<0.000000e+00> : vector<16x128xf32>
    %234 = tpu.matmul %232, %233, %cst_81 {dimension_numbers = #tpu.dot_dimension_numbers<[1], [0], [0], [1], [0, 0, 1, 1], [], []>} : vector<16x128xbf16>, vector<128x128xbf16>, vector<16x128xf32> -> vector<16x128xf32>
    %235 = arith.addf %230, %234 : vector<16x128xf32>
    %c47_i32_82 = arith.constant 47 : i32
    %236 = tpu.dynamic_rotate %219 by %c47_i32_82 dim 0 : vector<48x128xf32>, i32 -> vector<48x128xf32>
    %c1_83 = arith.constant 1 : index
    %c0_84 = arith.constant 0 : index
    %c0_85 = arith.constant 0 : index
    %237 = vector.load %arg6[%c1_83, %c0_84, %c0_85] : memref<8x512x128xbf16, #tpu.memory_space<vmem>>, vector<1x512x128xbf16>
    %238 = vector.shape_cast %237 : vector<1x512x128xbf16> to vector<512x128xbf16>
    %239 = vector.extract_strided_slice %236 {offsets = [0, 0], sizes = [16, 128], strides = [1, 1]} : vector<48x128xf32> to vector<16x128xf32>
    %240 = arith.truncf %239 : vector<16x128xf32> to vector<16x128xbf16>
    %241 = vector.extract_strided_slice %238 {offsets = [0, 0], sizes = [128, 128], strides = [1, 1]} : vector<512x128xbf16> to vector<128x128xbf16>
    %cst_86 = arith.constant dense<0.000000e+00> : vector<16x128xf32>
    %242 = tpu.matmul %240, %241, %cst_86 {dimension_numbers = #tpu.dot_dimension_numbers<[1], [0], [0], [1], [0, 0, 1, 1], [], []>} : vector<16x128xbf16>, vector<128x128xbf16>, vector<16x128xf32> -> vector<16x128xf32>
    %243 = arith.addf %235, %242 : vector<16x128xf32>
    %244 = vector.extract_strided_slice %236 {offsets = [8, 0], sizes = [16, 128], strides = [1, 1]} : vector<48x128xf32> to vector<16x128xf32>
    %245 = arith.truncf %244 : vector<16x128xf32> to vector<16x128xbf16>
    %246 = vector.extract_strided_slice %238 {offsets = [128, 0], sizes = [128, 128], strides = [1, 1]} : vector<512x128xbf16> to vector<128x128xbf16>
    %cst_87 = arith.constant dense<0.000000e+00> : vector<16x128xf32>
    %247 = tpu.matmul %245, %246, %cst_87 {dimension_numbers = #tpu.dot_dimension_numbers<[1], [0], [0], [1], [0, 0, 1, 1], [], []>} : vector<16x128xbf16>, vector<128x128xbf16>, vector<16x128xf32> -> vector<16x128xf32>
    %248 = arith.addf %243, %247 : vector<16x128xf32>
    %249 = vector.extract_strided_slice %236 {offsets = [16, 0], sizes = [16, 128], strides = [1, 1]} : vector<48x128xf32> to vector<16x128xf32>
    %250 = arith.truncf %249 : vector<16x128xf32> to vector<16x128xbf16>
    %251 = vector.extract_strided_slice %238 {offsets = [256, 0], sizes = [128, 128], strides = [1, 1]} : vector<512x128xbf16> to vector<128x128xbf16>
    %cst_88 = arith.constant dense<0.000000e+00> : vector<16x128xf32>
    %252 = tpu.matmul %250, %251, %cst_88 {dimension_numbers = #tpu.dot_dimension_numbers<[1], [0], [0], [1], [0, 0, 1, 1], [], []>} : vector<16x128xbf16>, vector<128x128xbf16>, vector<16x128xf32> -> vector<16x128xf32>
    %253 = arith.addf %248, %252 : vector<16x128xf32>
    %254 = vector.extract_strided_slice %236 {offsets = [24, 0], sizes = [16, 128], strides = [1, 1]} : vector<48x128xf32> to vector<16x128xf32>
    %255 = arith.truncf %254 : vector<16x128xf32> to vector<16x128xbf16>
    %256 = vector.extract_strided_slice %238 {offsets = [384, 0], sizes = [128, 128], strides = [1, 1]} : vector<512x128xbf16> to vector<128x128xbf16>
    %cst_89 = arith.constant dense<0.000000e+00> : vector<16x128xf32>
    %257 = tpu.matmul %255, %256, %cst_89 {dimension_numbers = #tpu.dot_dimension_numbers<[1], [0], [0], [1], [0, 0, 1, 1], [], []>} : vector<16x128xbf16>, vector<128x128xbf16>, vector<16x128xf32> -> vector<16x128xf32>
    %258 = arith.addf %253, %257 : vector<16x128xf32>
    %c46_i32_90 = arith.constant 46 : i32
    %259 = tpu.dynamic_rotate %219 by %c46_i32_90 dim 0 : vector<48x128xf32>, i32 -> vector<48x128xf32>
    %c2_91 = arith.constant 2 : index
    %c0_92 = arith.constant 0 : index
    %c0_93 = arith.constant 0 : index
    %260 = vector.load %arg6[%c2_91, %c0_92, %c0_93] : memref<8x512x128xbf16, #tpu.memory_space<vmem>>, vector<1x512x128xbf16>
    %261 = vector.shape_cast %260 : vector<1x512x128xbf16> to vector<512x128xbf16>
    %262 = vector.extract_strided_slice %259 {offsets = [0, 0], sizes = [16, 128], strides = [1, 1]} : vector<48x128xf32> to vector<16x128xf32>
    %263 = arith.truncf %262 : vector<16x128xf32> to vector<16x128xbf16>
    %264 = vector.extract_strided_slice %261 {offsets = [0, 0], sizes = [128, 128], strides = [1, 1]} : vector<512x128xbf16> to vector<128x128xbf16>
    %cst_94 = arith.constant dense<0.000000e+00> : vector<16x128xf32>
    %265 = tpu.matmul %263, %264, %cst_94 {dimension_numbers = #tpu.dot_dimension_numbers<[1], [0], [0], [1], [0, 0, 1, 1], [], []>} : vector<16x128xbf16>, vector<128x128xbf16>, vector<16x128xf32> -> vector<16x128xf32>
    %266 = arith.addf %258, %265 : vector<16x128xf32>
    %267 = vector.extract_strided_slice %259 {offsets = [8, 0], sizes = [16, 128], strides = [1, 1]} : vector<48x128xf32> to vector<16x128xf32>
    %268 = arith.truncf %267 : vector<16x128xf32> to vector<16x128xbf16>
    %269 = vector.extract_strided_slice %261 {offsets = [128, 0], sizes = [128, 128], strides = [1, 1]} : vector<512x128xbf16> to vector<128x128xbf16>
    %cst_95 = arith.constant dense<0.000000e+00> : vector<16x128xf32>
    %270 = tpu.matmul %268, %269, %cst_95 {dimension_numbers = #tpu.dot_dimension_numbers<[1], [0], [0], [1], [0, 0, 1, 1], [], []>} : vector<16x128xbf16>, vector<128x128xbf16>, vector<16x128xf32> -> vector<16x128xf32>
    %271 = arith.addf %266, %270 : vector<16x128xf32>
    %272 = vector.extract_strided_slice %259 {offsets = [16, 0], sizes = [16, 128], strides = [1, 1]} : vector<48x128xf32> to vector<16x128xf32>
    %273 = arith.truncf %272 : vector<16x128xf32> to vector<16x128xbf16>
    %274 = vector.extract_strided_slice %261 {offsets = [256, 0], sizes = [128, 128], strides = [1, 1]} : vector<512x128xbf16> to vector<128x128xbf16>
    %cst_96 = arith.constant dense<0.000000e+00> : vector<16x128xf32>
    %275 = tpu.matmul %273, %274, %cst_96 {dimension_numbers = #tpu.dot_dimension_numbers<[1], [0], [0], [1], [0, 0, 1, 1], [], []>} : vector<16x128xbf16>, vector<128x128xbf16>, vector<16x128xf32> -> vector<16x128xf32>
    %276 = arith.addf %271, %275 : vector<16x128xf32>
    %277 = vector.extract_strided_slice %259 {offsets = [24, 0], sizes = [16, 128], strides = [1, 1]} : vector<48x128xf32> to vector<16x128xf32>
    %278 = arith.truncf %277 : vector<16x128xf32> to vector<16x128xbf16>
    %279 = vector.extract_strided_slice %261 {offsets = [384, 0], sizes = [128, 128], strides = [1, 1]} : vector<512x128xbf16> to vector<128x128xbf16>
    %cst_97 = arith.constant dense<0.000000e+00> : vector<16x128xf32>
    %280 = tpu.matmul %278, %279, %cst_97 {dimension_numbers = #tpu.dot_dimension_numbers<[1], [0], [0], [1], [0, 0, 1, 1], [], []>} : vector<16x128xbf16>, vector<128x128xbf16>, vector<16x128xf32> -> vector<16x128xf32>
    %281 = arith.addf %276, %280 : vector<16x128xf32>
    %c45_i32_98 = arith.constant 45 : i32
    %282 = tpu.dynamic_rotate %219 by %c45_i32_98 dim 0 : vector<48x128xf32>, i32 -> vector<48x128xf32>
    %c3_99 = arith.constant 3 : index
    %c0_100 = arith.constant 0 : index
    %c0_101 = arith.constant 0 : index
    %283 = vector.load %arg6[%c3_99, %c0_100, %c0_101] : memref<8x512x128xbf16, #tpu.memory_space<vmem>>, vector<1x512x128xbf16>
    %284 = vector.shape_cast %283 : vector<1x512x128xbf16> to vector<512x128xbf16>
    %285 = vector.extract_strided_slice %282 {offsets = [0, 0], sizes = [16, 128], strides = [1, 1]} : vector<48x128xf32> to vector<16x128xf32>
    %286 = arith.truncf %285 : vector<16x128xf32> to vector<16x128xbf16>
    %287 = vector.extract_strided_slice %284 {offsets = [0, 0], sizes = [128, 128], strides = [1, 1]} : vector<512x128xbf16> to vector<128x128xbf16>
    %cst_102 = arith.constant dense<0.000000e+00> : vector<16x128xf32>
    %288 = tpu.matmul %286, %287, %cst_102 {dimension_numbers = #tpu.dot_dimension_numbers<[1], [0], [0], [1], [0, 0, 1, 1], [], []>} : vector<16x128xbf16>, vector<128x128xbf16>, vector<16x128xf32> -> vector<16x128xf32>
    %289 = arith.addf %281, %288 : vector<16x128xf32>
    %290 = vector.extract_strided_slice %282 {offsets = [8, 0], sizes = [16, 128], strides = [1, 1]} : vector<48x128xf32> to vector<16x128xf32>
    %291 = arith.truncf %290 : vector<16x128xf32> to vector<16x128xbf16>
    %292 = vector.extract_strided_slice %284 {offsets = [128, 0], sizes = [128, 128], strides = [1, 1]} : vector<512x128xbf16> to vector<128x128xbf16>
    %cst_103 = arith.constant dense<0.000000e+00> : vector<16x128xf32>
    %293 = tpu.matmul %291, %292, %cst_103 {dimension_numbers = #tpu.dot_dimension_numbers<[1], [0], [0], [1], [0, 0, 1, 1], [], []>} : vector<16x128xbf16>, vector<128x128xbf16>, vector<16x128xf32> -> vector<16x128xf32>
    %294 = arith.addf %289, %293 : vector<16x128xf32>
    %295 = vector.extract_strided_slice %282 {offsets = [16, 0], sizes = [16, 128], strides = [1, 1]} : vector<48x128xf32> to vector<16x128xf32>
    %296 = arith.truncf %295 : vector<16x128xf32> to vector<16x128xbf16>
    %297 = vector.extract_strided_slice %284 {offsets = [256, 0], sizes = [128, 128], strides = [1, 1]} : vector<512x128xbf16> to vector<128x128xbf16>
    %cst_104 = arith.constant dense<0.000000e+00> : vector<16x128xf32>
    %298 = tpu.matmul %296, %297, %cst_104 {dimension_numbers = #tpu.dot_dimension_numbers<[1], [0], [0], [1], [0, 0, 1, 1], [], []>} : vector<16x128xbf16>, vector<128x128xbf16>, vector<16x128xf32> -> vector<16x128xf32>
    %299 = arith.addf %294, %298 : vector<16x128xf32>
    %300 = vector.extract_strided_slice %282 {offsets = [24, 0], sizes = [16, 128], strides = [1, 1]} : vector<48x128xf32> to vector<16x128xf32>
    %301 = arith.truncf %300 : vector<16x128xf32> to vector<16x128xbf16>
    %302 = vector.extract_strided_slice %284 {offsets = [384, 0], sizes = [128, 128], strides = [1, 1]} : vector<512x128xbf16> to vector<128x128xbf16>
    %cst_105 = arith.constant dense<0.000000e+00> : vector<16x128xf32>
    %303 = tpu.matmul %301, %302, %cst_105 {dimension_numbers = #tpu.dot_dimension_numbers<[1], [0], [0], [1], [0, 0, 1, 1], [], []>} : vector<16x128xbf16>, vector<128x128xbf16>, vector<16x128xf32> -> vector<16x128xf32>
    %304 = arith.addf %299, %303 : vector<16x128xf32>
    %c44_i32_106 = arith.constant 44 : i32
    %305 = tpu.dynamic_rotate %219 by %c44_i32_106 dim 0 : vector<48x128xf32>, i32 -> vector<48x128xf32>
    %c4_107 = arith.constant 4 : index
    %c0_108 = arith.constant 0 : index
    %c0_109 = arith.constant 0 : index
    %306 = vector.load %arg6[%c4_107, %c0_108, %c0_109] : memref<8x512x128xbf16, #tpu.memory_space<vmem>>, vector<1x512x128xbf16>
    %307 = vector.shape_cast %306 : vector<1x512x128xbf16> to vector<512x128xbf16>
    %308 = vector.extract_strided_slice %305 {offsets = [0, 0], sizes = [16, 128], strides = [1, 1]} : vector<48x128xf32> to vector<16x128xf32>
    %309 = arith.truncf %308 : vector<16x128xf32> to vector<16x128xbf16>
    %310 = vector.extract_strided_slice %307 {offsets = [0, 0], sizes = [128, 128], strides = [1, 1]} : vector<512x128xbf16> to vector<128x128xbf16>
    %cst_110 = arith.constant dense<0.000000e+00> : vector<16x128xf32>
    %311 = tpu.matmul %309, %310, %cst_110 {dimension_numbers = #tpu.dot_dimension_numbers<[1], [0], [0], [1], [0, 0, 1, 1], [], []>} : vector<16x128xbf16>, vector<128x128xbf16>, vector<16x128xf32> -> vector<16x128xf32>
    %312 = arith.addf %304, %311 : vector<16x128xf32>
    %313 = vector.extract_strided_slice %305 {offsets = [8, 0], sizes = [16, 128], strides = [1, 1]} : vector<48x128xf32> to vector<16x128xf32>
    %314 = arith.truncf %313 : vector<16x128xf32> to vector<16x128xbf16>
    %315 = vector.extract_strided_slice %307 {offsets = [128, 0], sizes = [128, 128], strides = [1, 1]} : vector<512x128xbf16> to vector<128x128xbf16>
    %cst_111 = arith.constant dense<0.000000e+00> : vector<16x128xf32>
    %316 = tpu.matmul %314, %315, %cst_111 {dimension_numbers = #tpu.dot_dimension_numbers<[1], [0], [0], [1], [0, 0, 1, 1], [], []>} : vector<16x128xbf16>, vector<128x128xbf16>, vector<16x128xf32> -> vector<16x128xf32>
    %317 = arith.addf %312, %316 : vector<16x128xf32>
    %318 = vector.extract_strided_slice %305 {offsets = [16, 0], sizes = [16, 128], strides = [1, 1]} : vector<48x128xf32> to vector<16x128xf32>
    %319 = arith.truncf %318 : vector<16x128xf32> to vector<16x128xbf16>
    %320 = vector.extract_strided_slice %307 {offsets = [256, 0], sizes = [128, 128], strides = [1, 1]} : vector<512x128xbf16> to vector<128x128xbf16>
    %cst_112 = arith.constant dense<0.000000e+00> : vector<16x128xf32>
    %321 = tpu.matmul %319, %320, %cst_112 {dimension_numbers = #tpu.dot_dimension_numbers<[1], [0], [0], [1], [0, 0, 1, 1], [], []>} : vector<16x128xbf16>, vector<128x128xbf16>, vector<16x128xf32> -> vector<16x128xf32>
    %322 = arith.addf %317, %321 : vector<16x128xf32>
    %323 = vector.extract_strided_slice %305 {offsets = [24, 0], sizes = [16, 128], strides = [1, 1]} : vector<48x128xf32> to vector<16x128xf32>
    %324 = arith.truncf %323 : vector<16x128xf32> to vector<16x128xbf16>
    %325 = vector.extract_strided_slice %307 {offsets = [384, 0], sizes = [128, 128], strides = [1, 1]} : vector<512x128xbf16> to vector<128x128xbf16>
    %cst_113 = arith.constant dense<0.000000e+00> : vector<16x128xf32>
    %326 = tpu.matmul %324, %325, %cst_113 {dimension_numbers = #tpu.dot_dimension_numbers<[1], [0], [0], [1], [0, 0, 1, 1], [], []>} : vector<16x128xbf16>, vector<128x128xbf16>, vector<16x128xf32> -> vector<16x128xf32>
    %327 = arith.addf %322, %326 : vector<16x128xf32>
    %c43_i32_114 = arith.constant 43 : i32
    %328 = tpu.dynamic_rotate %219 by %c43_i32_114 dim 0 : vector<48x128xf32>, i32 -> vector<48x128xf32>
    %c5_115 = arith.constant 5 : index
    %c0_116 = arith.constant 0 : index
    %c0_117 = arith.constant 0 : index
    %329 = vector.load %arg6[%c5_115, %c0_116, %c0_117] : memref<8x512x128xbf16, #tpu.memory_space<vmem>>, vector<1x512x128xbf16>
    %330 = vector.shape_cast %329 : vector<1x512x128xbf16> to vector<512x128xbf16>
    %331 = vector.extract_strided_slice %328 {offsets = [0, 0], sizes = [16, 128], strides = [1, 1]} : vector<48x128xf32> to vector<16x128xf32>
    %332 = arith.truncf %331 : vector<16x128xf32> to vector<16x128xbf16>
    %333 = vector.extract_strided_slice %330 {offsets = [0, 0], sizes = [128, 128], strides = [1, 1]} : vector<512x128xbf16> to vector<128x128xbf16>
    %cst_118 = arith.constant dense<0.000000e+00> : vector<16x128xf32>
    %334 = tpu.matmul %332, %333, %cst_118 {dimension_numbers = #tpu.dot_dimension_numbers<[1], [0], [0], [1], [0, 0, 1, 1], [], []>} : vector<16x128xbf16>, vector<128x128xbf16>, vector<16x128xf32> -> vector<16x128xf32>
    %335 = arith.addf %327, %334 : vector<16x128xf32>
    %336 = vector.extract_strided_slice %328 {offsets = [8, 0], sizes = [16, 128], strides = [1, 1]} : vector<48x128xf32> to vector<16x128xf32>
    %337 = arith.truncf %336 : vector<16x128xf32> to vector<16x128xbf16>
    %338 = vector.extract_strided_slice %330 {offsets = [128, 0], sizes = [128, 128], strides = [1, 1]} : vector<512x128xbf16> to vector<128x128xbf16>
    %cst_119 = arith.constant dense<0.000000e+00> : vector<16x128xf32>
    %339 = tpu.matmul %337, %338, %cst_119 {dimension_numbers = #tpu.dot_dimension_numbers<[1], [0], [0], [1], [0, 0, 1, 1], [], []>} : vector<16x128xbf16>, vector<128x128xbf16>, vector<16x128xf32> -> vector<16x128xf32>
    %340 = arith.addf %335, %339 : vector<16x128xf32>
    %341 = vector.extract_strided_slice %328 {offsets = [16, 0], sizes = [16, 128], strides = [1, 1]} : vector<48x128xf32> to vector<16x128xf32>
    %342 = arith.truncf %341 : vector<16x128xf32> to vector<16x128xbf16>
    %343 = vector.extract_strided_slice %330 {offsets = [256, 0], sizes = [128, 128], strides = [1, 1]} : vector<512x128xbf16> to vector<128x128xbf16>
    %cst_120 = arith.constant dense<0.000000e+00> : vector<16x128xf32>
    %344 = tpu.matmul %342, %343, %cst_120 {dimension_numbers = #tpu.dot_dimension_numbers<[1], [0], [0], [1], [0, 0, 1, 1], [], []>} : vector<16x128xbf16>, vector<128x128xbf16>, vector<16x128xf32> -> vector<16x128xf32>
    %345 = arith.addf %340, %344 : vector<16x128xf32>
    %346 = vector.extract_strided_slice %328 {offsets = [24, 0], sizes = [16, 128], strides = [1, 1]} : vector<48x128xf32> to vector<16x128xf32>
    %347 = arith.truncf %346 : vector<16x128xf32> to vector<16x128xbf16>
    %348 = vector.extract_strided_slice %330 {offsets = [384, 0], sizes = [128, 128], strides = [1, 1]} : vector<512x128xbf16> to vector<128x128xbf16>
    %cst_121 = arith.constant dense<0.000000e+00> : vector<16x128xf32>
    %349 = tpu.matmul %347, %348, %cst_121 {dimension_numbers = #tpu.dot_dimension_numbers<[1], [0], [0], [1], [0, 0, 1, 1], [], []>} : vector<16x128xbf16>, vector<128x128xbf16>, vector<16x128xf32> -> vector<16x128xf32>
    %350 = arith.addf %345, %349 : vector<16x128xf32>
    %c42_i32_122 = arith.constant 42 : i32
    %351 = tpu.dynamic_rotate %219 by %c42_i32_122 dim 0 : vector<48x128xf32>, i32 -> vector<48x128xf32>
    %c6_123 = arith.constant 6 : index
    %c0_124 = arith.constant 0 : index
    %c0_125 = arith.constant 0 : index
    %352 = vector.load %arg6[%c6_123, %c0_124, %c0_125] : memref<8x512x128xbf16, #tpu.memory_space<vmem>>, vector<1x512x128xbf16>
    %353 = vector.shape_cast %352 : vector<1x512x128xbf16> to vector<512x128xbf16>
    %354 = vector.extract_strided_slice %351 {offsets = [0, 0], sizes = [16, 128], strides = [1, 1]} : vector<48x128xf32> to vector<16x128xf32>
    %355 = arith.truncf %354 : vector<16x128xf32> to vector<16x128xbf16>
    %356 = vector.extract_strided_slice %353 {offsets = [0, 0], sizes = [128, 128], strides = [1, 1]} : vector<512x128xbf16> to vector<128x128xbf16>
    %cst_126 = arith.constant dense<0.000000e+00> : vector<16x128xf32>
    %357 = tpu.matmul %355, %356, %cst_126 {dimension_numbers = #tpu.dot_dimension_numbers<[1], [0], [0], [1], [0, 0, 1, 1], [], []>} : vector<16x128xbf16>, vector<128x128xbf16>, vector<16x128xf32> -> vector<16x128xf32>
    %358 = arith.addf %350, %357 : vector<16x128xf32>
    %359 = vector.extract_strided_slice %351 {offsets = [8, 0], sizes = [16, 128], strides = [1, 1]} : vector<48x128xf32> to vector<16x128xf32>
    %360 = arith.truncf %359 : vector<16x128xf32> to vector<16x128xbf16>
    %361 = vector.extract_strided_slice %353 {offsets = [128, 0], sizes = [128, 128], strides = [1, 1]} : vector<512x128xbf16> to vector<128x128xbf16>
    %cst_127 = arith.constant dense<0.000000e+00> : vector<16x128xf32>
    %362 = tpu.matmul %360, %361, %cst_127 {dimension_numbers = #tpu.dot_dimension_numbers<[1], [0], [0], [1], [0, 0, 1, 1], [], []>} : vector<16x128xbf16>, vector<128x128xbf16>, vector<16x128xf32> -> vector<16x128xf32>
    %363 = arith.addf %358, %362 : vector<16x128xf32>
    %364 = vector.extract_strided_slice %351 {offsets = [16, 0], sizes = [16, 128], strides = [1, 1]} : vector<48x128xf32> to vector<16x128xf32>
    %365 = arith.truncf %364 : vector<16x128xf32> to vector<16x128xbf16>
    %366 = vector.extract_strided_slice %353 {offsets = [256, 0], sizes = [128, 128], strides = [1, 1]} : vector<512x128xbf16> to vector<128x128xbf16>
    %cst_128 = arith.constant dense<0.000000e+00> : vector<16x128xf32>
    %367 = tpu.matmul %365, %366, %cst_128 {dimension_numbers = #tpu.dot_dimension_numbers<[1], [0], [0], [1], [0, 0, 1, 1], [], []>} : vector<16x128xbf16>, vector<128x128xbf16>, vector<16x128xf32> -> vector<16x128xf32>
    %368 = arith.addf %363, %367 : vector<16x128xf32>
    %369 = vector.extract_strided_slice %351 {offsets = [24, 0], sizes = [16, 128], strides = [1, 1]} : vector<48x128xf32> to vector<16x128xf32>
    %370 = arith.truncf %369 : vector<16x128xf32> to vector<16x128xbf16>
    %371 = vector.extract_strided_slice %353 {offsets = [384, 0], sizes = [128, 128], strides = [1, 1]} : vector<512x128xbf16> to vector<128x128xbf16>
    %cst_129 = arith.constant dense<0.000000e+00> : vector<16x128xf32>
    %372 = tpu.matmul %370, %371, %cst_129 {dimension_numbers = #tpu.dot_dimension_numbers<[1], [0], [0], [1], [0, 0, 1, 1], [], []>} : vector<16x128xbf16>, vector<128x128xbf16>, vector<16x128xf32> -> vector<16x128xf32>
    %373 = arith.addf %368, %372 : vector<16x128xf32>
    %c41_i32_130 = arith.constant 41 : i32
    %374 = tpu.dynamic_rotate %219 by %c41_i32_130 dim 0 : vector<48x128xf32>, i32 -> vector<48x128xf32>
    %c7_131 = arith.constant 7 : index
    %c0_132 = arith.constant 0 : index
    %c0_133 = arith.constant 0 : index
    %375 = vector.load %arg6[%c7_131, %c0_132, %c0_133] : memref<8x512x128xbf16, #tpu.memory_space<vmem>>, vector<1x512x128xbf16>
    %376 = vector.shape_cast %375 : vector<1x512x128xbf16> to vector<512x128xbf16>
    %377 = vector.extract_strided_slice %374 {offsets = [0, 0], sizes = [16, 128], strides = [1, 1]} : vector<48x128xf32> to vector<16x128xf32>
    %378 = arith.truncf %377 : vector<16x128xf32> to vector<16x128xbf16>
    %379 = vector.extract_strided_slice %376 {offsets = [0, 0], sizes = [128, 128], strides = [1, 1]} : vector<512x128xbf16> to vector<128x128xbf16>
    %cst_134 = arith.constant dense<0.000000e+00> : vector<16x128xf32>
    %380 = tpu.matmul %378, %379, %cst_134 {dimension_numbers = #tpu.dot_dimension_numbers<[1], [0], [0], [1], [0, 0, 1, 1], [], []>} : vector<16x128xbf16>, vector<128x128xbf16>, vector<16x128xf32> -> vector<16x128xf32>
    %381 = arith.addf %373, %380 : vector<16x128xf32>
    %382 = vector.extract_strided_slice %374 {offsets = [8, 0], sizes = [16, 128], strides = [1, 1]} : vector<48x128xf32> to vector<16x128xf32>
    %383 = arith.truncf %382 : vector<16x128xf32> to vector<16x128xbf16>
    %384 = vector.extract_strided_slice %376 {offsets = [128, 0], sizes = [128, 128], strides = [1, 1]} : vector<512x128xbf16> to vector<128x128xbf16>
    %cst_135 = arith.constant dense<0.000000e+00> : vector<16x128xf32>
    %385 = tpu.matmul %383, %384, %cst_135 {dimension_numbers = #tpu.dot_dimension_numbers<[1], [0], [0], [1], [0, 0, 1, 1], [], []>} : vector<16x128xbf16>, vector<128x128xbf16>, vector<16x128xf32> -> vector<16x128xf32>
    %386 = arith.addf %381, %385 : vector<16x128xf32>
    %387 = vector.extract_strided_slice %374 {offsets = [16, 0], sizes = [16, 128], strides = [1, 1]} : vector<48x128xf32> to vector<16x128xf32>
    %388 = arith.truncf %387 : vector<16x128xf32> to vector<16x128xbf16>
    %389 = vector.extract_strided_slice %376 {offsets = [256, 0], sizes = [128, 128], strides = [1, 1]} : vector<512x128xbf16> to vector<128x128xbf16>
    %cst_136 = arith.constant dense<0.000000e+00> : vector<16x128xf32>
    %390 = tpu.matmul %388, %389, %cst_136 {dimension_numbers = #tpu.dot_dimension_numbers<[1], [0], [0], [1], [0, 0, 1, 1], [], []>} : vector<16x128xbf16>, vector<128x128xbf16>, vector<16x128xf32> -> vector<16x128xf32>
    %391 = arith.addf %386, %390 : vector<16x128xf32>
    %392 = vector.extract_strided_slice %374 {offsets = [24, 0], sizes = [16, 128], strides = [1, 1]} : vector<48x128xf32> to vector<16x128xf32>
    %393 = arith.truncf %392 : vector<16x128xf32> to vector<16x128xbf16>
    %394 = vector.extract_strided_slice %376 {offsets = [384, 0], sizes = [128, 128], strides = [1, 1]} : vector<512x128xbf16> to vector<128x128xbf16>
    %cst_137 = arith.constant dense<0.000000e+00> : vector<16x128xf32>
    %395 = tpu.matmul %393, %394, %cst_137 {dimension_numbers = #tpu.dot_dimension_numbers<[1], [0], [0], [1], [0, 0, 1, 1], [], []>} : vector<16x128xbf16>, vector<128x128xbf16>, vector<16x128xf32> -> vector<16x128xf32>
    %396 = arith.addf %391, %395 : vector<16x128xf32>
    %c0_138 = arith.constant 0 : index
    %c0_139 = arith.constant 0 : index
    %397 = vector.load %arg7[%c0_138, %c0_139] : memref<1x128xf32, #tpu.memory_space<vmem>>, vector<1x128xf32>
    %398 = vector.broadcast %397 : vector<1x128xf32> to vector<16x128xf32>
    %399 = arith.addf %396, %398 : vector<16x128xf32>
    %400 = math.absf %399 : vector<16x128xf32>
    %cst_140 = arith.constant 0.000000e+00 : f32
    %401 = vector.broadcast %cst_140 : f32 to vector<16x128xf32>
    %402 = arith.subf %401, %400 : vector<16x128xf32>
    %403 = math.exp %402 : vector<16x128xf32>
    %cst_141 = arith.constant 2.000000e+00 : f32
    %404 = vector.broadcast %cst_141 : f32 to vector<16x128xf32>
    %405 = arith.mulf %404, %403 : vector<16x128xf32>
    %cst_142 = arith.constant 1.000000e+00 : f32
    %406 = vector.broadcast %cst_142 : f32 to vector<16x128xf32>
    %407 = arith.addf %406, %405 : vector<16x128xf32>
    %cst_143 = arith.constant 2.000000e+00 : f32
    %408 = vector.broadcast %cst_143 : f32 to vector<16x128xf32>
    %409 = arith.mulf %408, %403 : vector<16x128xf32>
    %410 = arith.mulf %409, %403 : vector<16x128xf32>
    %411 = arith.addf %407, %410 : vector<16x128xf32>
    %cst_144 = arith.constant 2.000000e+00 : f32
    %412 = vector.broadcast %cst_144 : f32 to vector<16x128xf32>
    %413 = arith.addf %412, %403 : vector<16x128xf32>
    %414 = arith.mulf %403, %413 : vector<16x128xf32>
    %cst_145 = arith.constant 2.000000e+00 : f32
    %415 = vector.broadcast %cst_145 : f32 to vector<16x128xf32>
    %416 = arith.addf %415, %414 : vector<16x128xf32>
    %cst_146 = arith.constant 0.000000e+00 : f32
    %417 = vector.broadcast %cst_146 : f32 to vector<16x128xf32>
    %418 = arith.cmpf oge, %399, %417 : vector<16x128xf32>
    %419 = arith.select %418, %407, %414 : vector<16x128xi1>, vector<16x128xf32>
    %cst_147 = arith.constant 0.000000e+00 : f32
    %420 = vector.broadcast %cst_147 : f32 to vector<16x128xf32>
    %421 = arith.cmpf oge, %399, %420 : vector<16x128xf32>
    %422 = arith.select %421, %411, %416 : vector<16x128xi1>, vector<16x128xf32>
    %423 = arith.mulf %399, %419 : vector<16x128xf32>
    %424 = tpu.reciprocal %422 {approx = true} : vector<16x128xf32> -> vector<16x128xf32>
    %425 = arith.mulf %423, %424 : vector<16x128xf32>
    %c0_148 = arith.constant 0 : index
    %c0_149 = arith.constant 0 : index
    %426 = vector.load %arg8[%c0_148, %c0_149] : memref<16x128xf32, #tpu.memory_space<vmem>>, vector<16x128xf32>
    %427 = arith.addf %425, %426 : vector<16x128xf32>
    %c0_150 = arith.constant 0 : index
    %c0_151 = arith.constant 0 : index
    %428 = vector.load %arg8[%c0_150, %c0_151] : memref<16x128xf32, #tpu.memory_space<vmem>>, vector<16x128xf32>
    tpu.vector_store %arg8[%c0_150, %c0_151], %427 {strides = array<i32>} : memref<16x128xf32, #tpu.memory_space<vmem>>, vector<16x128xf32>,
    return
  }
  func.func @transform_0(%arg0: i32) -> (i32, i32) {
    %c0_i32 = arith.constant 0 : i32
    %c0_i32_0 = arith.constant 0 : i32
    return %c0_i32, %arg0 : i32, i32
  }
  func.func @transform_1(%arg0: i32) -> (i32, i32) {
    %c0_i32 = arith.constant 0 : i32
    %c0_i32_0 = arith.constant 0 : i32
    %c0_i32_1 = arith.constant 0 : i32
    return %c0_i32, %c0_i32_0 : i32, i32
  }
  func.func @transform_2(%arg0: i32) -> (i32, i32) {
    %c0_i32 = arith.constant 0 : i32
    %c0_i32_0 = arith.constant 0 : i32
    %c0_i32_1 = arith.constant 0 : i32
    return %c0_i32, %c0_i32_0 : i32, i32
  }
  func.func @transform_3(%arg0: i32) -> (i32, i32, i32) {
    %c0_i32 = arith.constant 0 : i32
    %c0_i32_0 = arith.constant 0 : i32
    %c0_i32_1 = arith.constant 0 : i32
    %c0_i32_2 = arith.constant 0 : i32
    return %c0_i32, %c0_i32_0, %c0_i32_1 : i32, i32, i32
  }
  func.func @transform_4(%arg0: i32) -> (i32, i32) {
    %c0_i32 = arith.constant 0 : i32
    %c0_i32_0 = arith.constant 0 : i32
    %c0_i32_1 = arith.constant 0 : i32
    return %c0_i32, %c0_i32_0 : i32, i32
  }
  func.func @transform_5(%arg0: i32) -> (i32, i32, i32) {
    %c0_i32 = arith.constant 0 : i32
    %c0_i32_0 = arith.constant 0 : i32
    %c0_i32_1 = arith.constant 0 : i32
    %c0_i32_2 = arith.constant 0 : i32
    return %c0_i32, %c0_i32_0, %c0_i32_1 : i32, i32, i32
  }
  func.func @transform_6(%arg0: i32) -> (i32, i32) {
    %c0_i32 = arith.constant 0 : i32
    %c0_i32_0 = arith.constant 0 : i32
    %c0_i32_1 = arith.constant 0 : i32
    return %c0_i32, %c0_i32_0 : i32, i32
  }
  func.func @transform_7(%arg0: i32) -> (i32, i32) {
    %c0_i32 = arith.constant 0 : i32
    %c0_i32_0 = arith.constant 0 : i32
    return %c0_i32, %arg0 : i32, i32
  }
}

</mosaic_0001>

<bundles_post_ra>
// kernel: tpu_custom_call.1
= control target key start
LH: loop header
LB: loop body
LE: loop exit
PB: predicated region body
PF: predicated region fallthrough
CT: control target
= control target key end

     0   :  { %12 = vsyncpa [#allocation4], 0  ;;  %s11444_s0 = inlined_call_operand.hbm [shape: f32[16,128], index: 0, kind: input, shape index: {}]   ;;  %s11445_s1 = inlined_call_operand.hbm [shape: f32[128,128], index: 1, kind: input, shape index: {}]   ;;  %s11446_s2 = inlined_call_operand.vmem [shape: f32[1,128], index: 2, kind: input, shape index: {}]   ;;  %s11447_s3 = inlined_call_operand.hbm [shape: bf16[8,512,128], index: 3, kind: input, shape index: {}]   ;;  %s11448_s4 = inlined_call_operand.vmem [shape: f32[1,128], index: 4, kind: input, shape index: {}]   ;;  %s11449_s5 = inlined_call_operand.hbm [shape: bf16[8,512,128], index: 5, kind: input, shape index: {}]   ;;  %s11450_s6 = inlined_call_operand.vmem [shape: f32[1,128], index: 6, kind: input, shape index: {}]   ;;  %s11451_s7 = inlined_call_operand.hbm [shape: f32[16,128], index: 7, kind: output, shape index: {}]  }
   0x1   :  { %13 = vsyncpa [#allocation7], 0 }
   0x2   :  { %14 = vsyncpa [#allocation10], 0 }
   0x3   :  { %15 = vsyncpa [#allocation5], 0  ;;  %s10204_s24 = smov [#allocation6]   ;;  %s10205_s26 = smov [#allocation3]  }
   0x4   :  { %s33_s25 = sshll.u32 %s10204_s24, 4  ;;  %s21_s27 = sshll.u32 %s10205_s26, 4  ;;  %s34_s25 = int_to_ptr.vmem [resolvable:$true] %s33_s25  ;;  %s10255_s27 = int_to_ptr.vmem [resolvable:$true] %s21_s27 }
   0x5   :  { %s10086_s30 = scalar_lea.hbm %s11445_s1, 2048 }
   0x6   :  { %p10087_p0 = scmp.ne.s32.totalorder %s11445_s1, %s10086_s30  ;;  %p10090_p1 = scmp.lt.u32.totalorder %s10086_s30, %s11445_s1 }
   0x8   :  { %p10092_p2 = pnand %p10090_p1, %p10087_p0 }
   0xa   :  { %10095 = shalt.err (!%p10092_p2)
}
   0xb   :  { %s10096_s12 = scalar_lea.vmem %s34_s25, 2048  ;;  %p10101_p4 = scmp.lt.s32.totalorder %s34_s25, %s34_s25 }
   0xc   :  { %p10097_p3 = scmp.ne.s32.totalorder %s34_s25, %s10096_s12  ;;  %p10102_p5 = scmp.lt.s32.totalorder %s10096_s12, %s10096_s12 }
   0xe   :  { %p10103_p6 = por %p10102_p5, %p10101_p4 }
  0x10   :  { %p10104_p7 = pnand %p10103_p6, %p10097_p3 }
  0x12   :  { %10107 = shalt.err (!%p10104_p7)
}
  0x13   :  { %s10206_s13 = smov 128   ;;  %s10207_s14 = smov 8  }
  0x14   :  { %39 = dma.hbm_to_vmem [thread:$0]  %s11445_s1, 2048, %s34_s25, [#allocation7], %s10206_s13, %s10206_s13, %s10207_s14  }
  0x15   :  { %s10108_s19 = scalar_lea.hbm %s11444_s0, 256 }
  0x16   :  { %p10109_p8 = scmp.ne.s32.totalorder %s11444_s0, %s10108_s19  ;;  %p10112_p9 = scmp.lt.u32.totalorder %s10108_s19, %s11444_s0 }
  0x18   :  { %p10114_p10 = pnand %p10112_p9, %p10109_p8 }
  0x1a   :  { %10117 = shalt.err (!%p10114_p10)
}
  0x1b   :  { %s10118_s24 = scalar_lea.vmem %s10255_s27, 256  ;;  %p10123_p12 = scmp.lt.s32.totalorder %s10255_s27, %s10255_s27 }
  0x1c   :  { %p10119_p11 = scmp.ne.s32.totalorder %s10255_s27, %s10118_s24  ;;  %p10124_p13 = scmp.lt.s32.totalorder %s10118_s24, %s10118_s24 }
  0x1e   :  { %p10125_p0 = por %p10124_p13, %p10123_p12 }
  0x20   :  { %p10126_p1 = pnand %p10125_p0, %p10119_p11 }
  0x22   :  { %10129 = shalt.err (!%p10126_p1)
}
  0x23   :  { %27 = dma.hbm_to_vmem [thread:$0]  %s11444_s0, 256, %s10255_s27, [#allocation4], %s10206_s13, %s10206_s13, %s10207_s14  }
  0x24   :  { %s10208_s26 = smov [#allocation8]   ;;  %s10130_s8 = scalar_lea.hbm %s11447_s3, 32768 }
  0x25   :  { %s47_s28 = sshll.u32 %s10208_s26, 4  ;;  %p10131_p2 = scmp.ne.s32.totalorder %s11447_s3, %s10130_s8  ;;  %s48_s28 = int_to_ptr.vmem [resolvable:$true] %s47_s28 }
  0x26   :  { %p10134_p3 = scmp.lt.u32.totalorder %s10130_s8, %s11447_s3 }
  0x28   :  { %p10136_p4 = pnand %p10134_p3, %p10131_p2 }
  0x2a   :  { %10139 = shalt.err (!%p10136_p4)
}
  0x2b   :  { %s10140_s15 = scalar_lea.vmem %s48_s28, 32768  ;;  %p10145_p6 = scmp.lt.s32.totalorder %s48_s28, %s48_s28 }
  0x2c   :  { %p10141_p5 = scmp.ne.s32.totalorder %s48_s28, %s10140_s15  ;;  %p10146_p7 = scmp.lt.s32.totalorder %s10140_s15, %s10140_s15 }
  0x2e   :  { %p10147_p8 = por %p10146_p7, %p10145_p6 }
  0x30   :  { %p10148_p9 = pnand %p10147_p8, %p10141_p5 }
  0x32   :  { %10151 = shalt.err (!%p10148_p9)
}
  0x33   :  { %s10209_s0 = smov 64   ;;  %s10210_s27 = smov 4  }
  0x34   :  { %53 = dma.hbm_to_vmem [thread:$0]  %s11447_s3, 32768, %s48_s28, [#allocation7], %s10209_s0, %s10209_s0, %s10210_s27  }
  0x35   :  { %s10211_s18 = smov [#allocation9]   ;;  %s10152_s22 = scalar_lea.hbm %s11449_s5, 32768 }
  0x36   :  { %s61_s19 = sshll.u32 %s10211_s18, 4  ;;  %p10153_p10 = scmp.ne.s32.totalorder %s11449_s5, %s10152_s22  ;;  %s62_s19 = int_to_ptr.vmem [resolvable:$true] %s61_s19 }
  0x37   :  { %p10156_p11 = scmp.lt.u32.totalorder %s10152_s22, %s11449_s5 }
  0x39   :  { %p10158_p12 = pnand %p10156_p11, %p10153_p10 }
  0x3b   :  { %10161 = shalt.err (!%p10158_p12)
}
  0x3c   :  { %s10162_s26 = scalar_lea.vmem %s62_s19, 32768  ;;  %p10167_p0 = scmp.lt.s32.totalorder %s62_s19, %s62_s19 }
  0x3d   :  { %p10163_p13 = scmp.ne.s32.totalorder %s62_s19, %s10162_s26  ;;  %p10168_p1 = scmp.lt.s32.totalorder %s10162_s26, %s10162_s26 }
  0x3f   :  { %p10169_p2 = por %p10168_p1, %p10167_p0 }
  0x41   :  { %p10170_p3 = pnand %p10169_p2, %p10163_p13 }
  0x43   :  { %10173 = shalt.err (!%p10170_p3)
}
  0x44   :  { %67 = dma.hbm_to_vmem [thread:$0]  %s11449_s5, 32768, %s62_s19, [#allocation10], %s10209_s0, %s10209_s0, %s10210_s27  }
  0x45   :  { %10196 = dma.done.wait [#allocation4], 256  }
  0x46   :  { %10197 = vsyncadd [#allocation4], 4294967040 }
  0x47   :  { %10198 = dma.done.wait [#allocation7], 34816  }
  0x48   :  { %10199 = vsyncadd [#allocation7], 4294932480 }
  0x49   :  { %10200 = dma.done.wait [#allocation10], 32768  }
  0x4a   :  { %10201 = vsyncadd [#allocation10], 4294934528  ;;  %v10212_v0 = vmov 0.0   ;;  %v85_v1 = vld [vmem:[#allocation6] sm:$0xff]  ;;  %v86_v2 = vld [vmem:[#allocation6 + $0x8] sm:$0xff]  ;;  %vm10213_vm0 = vmmov 0   ;;  %v523_v43 = vlaneseq }
  0x4b   :  { %8291 = vmatprep.subr.bf16.mxu1 %v10212_v0  ;;  %v87_v3 = vld [vmem:[#allocation6 + $0x10] sm:$0xff]  ;;  %v9531_v4 = vpack.c.bf16 %v86_v2, %v85_v1  ;;  %v88_v5 = vld [vmem:[#allocation6 + $0x18] sm:$0xff]  ;;  %v89_v7 = vld [vmem:[#allocation6 + $0x20] sm:$0xff]  ;;  %8307 = vmatprep.mubr.msk.bf16.mxu1 %vm10213_vm0, %v10212_v0  ;;  %v10344_v46 = vrot.slane %v10212_v0, 1  ;;  %v10347_v48 = vrot.slane %v10212_v0, 2  ;;  %v10356_v54 = vrot.slane %v10212_v0, 3 }
  0x4c   :  { %v9535_v6 = vpack.c.bf16 %v88_v5, %v87_v3  ;;  %v90_v8 = vld [vmem:[#allocation6 + $0x28] sm:$0xff]  ;;  %v91_v10 = vld [vmem:[#allocation6 + $0x30] sm:$0xff]  ;;  %v92_v11 = vld [vmem:[#allocation6 + $0x38] sm:$0xff]  ;;  %v10341_v45 = vshrl.u32 %v523_v43, 7  ;;  %v10381_v1 = vrot.slane %v10212_v0, 4 }
  0x4d   :  { %9532 = vmatprep.subr.bf16.mxu0 %v9531_v4  ;;  %v9539_v9 = vpack.c.bf16 %v90_v8, %v89_v7  ;;  %v83_v12 = vld [vmem:[#allocation3] sm:$0xff]  ;;  %v9574_v13 = vld [vmem:[#allocation8 + $0x80] sm:$0xff]   ;;  %v9576_v14 = vld [vmem:[#allocation8 + $0x88] sm:$0xff]   ;;  %v9543_v15 = vpack.c.bf16 %v92_v11, %v91_v10  ;;  %v10400_v10 = vrot.slane %v10212_v0, 5 }
  0x4e   :  { %9534 = vmatpush3.bf16.msra.mxu0 %v9531_v4  ;;  %8288 = vmatprep.mubr.f32.mxu0 %v83_v12  ;;  %v93_v16 = vld [vmem:[#allocation6 + $0x40] sm:$0xff]  ;;  %v94_v17 = vld [vmem:[#allocation6 + $0x48] sm:$0xff]  ;;  %v9578_v18 = vld [vmem:[#allocation8 + $0x90] sm:$0xff]   ;;  %vm525_vm1 = vcmp.lt.s32.totalorder %v10341_v45, 7  ;;  %vm970_vm2 = vcmp.lt.s32.totalorder %v10341_v45, 6  ;;  %vm1415_vm3 = vcmp.lt.s32.totalorder %v10341_v45, 5 }
  0x4f   :  { %9536 = vmatprep.subr.bf16.mxu0 %v9535_v6  ;;  %8292 = vmatpush3.bf16.msra.mxu1 %v9574_v13  ;;  %v9547_v19 = vpack.c.bf16 %v94_v17, %v93_v16  ;;  %v95_v20 = vld [vmem:[#allocation6 + $0x50] sm:$0xff]  ;;  %v96_v21 = vld [vmem:[#allocation6 + $0x58] sm:$0xff]  ;;  %v97_v24 = vld [vmem:[#allocation6 + $0x60] sm:$0xff]  ;;  %vm1860_vm4 = vcmp.lt.s32.totalorder %v10341_v45, 4  ;;  %vm2305_vm5 = vcmp.lt.s32.totalorder %v10341_v45, 3  ;;  %vm2750_vm6 = vcmp.lt.s32.totalorder %v10341_v45, 2 }
  0x50   :  { %8293 = vmatprep.subr.bf16.mxu1 %v10212_v0  ;;  %v9580_v22 = vld [vmem:[#allocation8 + $0x98] sm:$0xff]   ;;  %v9551_v23 = vpack.c.bf16 %v96_v21, %v95_v20  ;;  %v98_v25 = vld [vmem:[#allocation6 + $0x68] sm:$0xff]  ;;  %v9582_v26 = vld [vmem:[#allocation8 + $0xa0] sm:$0xff]   ;;  %vm3195_vm7 = vcmp.lt.s32.totalorder %v10341_v45, 1 }
  0x51   :  { %v99_v27 = vld [vmem:[#allocation6 + $0x70] sm:$0xff]  ;;  %v100_v28 = vld [vmem:[#allocation6 + $0x78] sm:$0xff]  ;;  %v9555_v29 = vpack.c.bf16 %v98_v25, %v97_v24  ;;  %v9584_v30 = vld [vmem:[#allocation8 + $0xa8] sm:$0xff]  }
  0x52   :  { %9538 = vmatpush3.bf16.msra.mxu0 %v9535_v6  ;;  %v9559_v31 = vpack.c.bf16 %v100_v28, %v99_v27  ;;  %v9586_v32 = vld [vmem:[#allocation8 + $0xb0] sm:$0xff]   ;;  %v84_v33 = vld [vmem:[#allocation3 + $0x8] sm:$0xff]  ;;  %v9575_v34 = vld [vmem:[#allocation8 + $0x40] sm:$0xff]  }
  0x53   :  { %9540 = vmatprep.subr.bf16.mxu0 %v9539_v9  ;;  %8294 = vmatpush3.bf16.msra.mxu1 %v9576_v14  ;;  %v9577_v35 = vld [vmem:[#allocation8 + $0x48] sm:$0xff]   ;;  %v9579_v36 = vld [vmem:[#allocation8 + $0x50] sm:$0xff]   ;;  %v9581_v37 = vld [vmem:[#allocation8 + $0x58] sm:$0xff]  }
  0x54   :  { %8295 = vmatprep.subr.bf16.mxu1 %v10212_v0  ;;  %v9583_v38 = vld [vmem:[#allocation8 + $0x60] sm:$0xff]   ;;  %v9585_v39 = vld [vmem:[#allocation8 + $0x68] sm:$0xff]   ;;  %v9587_v40 = vld [vmem:[#allocation8 + $0x70] sm:$0xff]  }
  0x55   :  { %v9588_v41 = vld [vmem:[#allocation8 + $0xb8] sm:$0xff]   ;;  %v7181_v44 = vld [vmem:[%s11446_s2] ss:$0 sm:$0xff]  ;;  %v9590_v51 = vld [vmem:[#allocation8 + $0xc0] sm:$0xff]  }
  0x56   :  { %9542 = vmatpush3.bf16.msra.mxu0 %v9539_v9  ;;  %v9589_v42 = vld [vmem:[#allocation8 + $0x78] sm:$0xff]   ;;  %v9591_v52 = vld [vmem:[#allocation8 + $0x100] sm:$0xff]   ;;  %v9592_v2 = vld [vmem:[#allocation8 + $0xc8] sm:$0xff]  }
  0x57   :  { %9544 = vmatprep.subr.bf16.mxu0 %v9543_v15  ;;  %8296 = vmatpush3.bf16.msra.mxu1 %v9578_v18  ;;  %v9593_v3 = vld [vmem:[#allocation8 + $0x108] sm:$0xff]   ;;  %v9595_v20 = vld [vmem:[#allocation8 + $0x110] sm:$0xff]  }
  0x58   :  { %8297 = vmatprep.subr.bf16.mxu1 %v10212_v0  ;;  %v9850_v45 = vld [vmem:[#allocation9 + $0x130] sm:$0xff]  }
  0x5a   :  { %9546 = vmatpush3.bf16.msra.mxu0 %v9543_v15  ;;  %v9594_v15 = vld [vmem:[#allocation8 + $0xd0] sm:$0xff]  }
  0x5b   :  { %9548 = vmatprep.subr.bf16.mxu0 %v9547_v19  ;;  %8298 = vmatpush3.bf16.msra.mxu1 %v9580_v22 }
  0x5c   :  { %8299 = vmatprep.subr.bf16.mxu1 %v10212_v0 }
  0x5e   :  { %9550 = vmatpush3.bf16.msra.mxu0 %v9547_v19  ;;  %v10430_v19 = vrot.slane %v10212_v0, 6 }
  0x5f   :  { %9552 = vmatprep.subr.bf16.mxu0 %v9551_v23  ;;  %8300 = vmatpush3.bf16.msra.mxu1 %v9582_v26 }
  0x60   :  { %8301 = vmatprep.subr.bf16.mxu1 %v10212_v0 }
  0x62   :  { %9554 = vmatpush3.bf16.msra.mxu0 %v9551_v23 }
  0x63   :  { %9556 = vmatprep.subr.bf16.mxu0 %v9555_v29  ;;  %8302 = vmatpush3.bf16.msra.mxu1 %v9584_v30 }
  0x64   :  { %8303 = vmatprep.subr.bf16.mxu1 %v10212_v0 }
  0x66   :  { %9558 = vmatpush3.bf16.msra.mxu0 %v9555_v29 }
  0x67   :  { %9560 = vmatprep.subr.bf16.mxu0 %v9559_v31  ;;  %8304 = vmatpush3.bf16.msra.mxu1 %v9586_v32 }
  0x68   :  { %8305 = vmatprep.subr.bf16.mxu1 %v10212_v0 }
  0x6a   :  { %9562 = vmatpush3.bf16.msra.mxu0 %v9559_v31  ;;  %v10466_v31 = vrot.slane %v10212_v0, 7 }
  0x6b   :  { %8311 = vmatprep.subr.bf16.mxu0 %v10212_v0  ;;  %8306 = vmatpush3.bf16.msra.mxu1 %v9588_v41 }
  0x6c   :  { %8331 = vmatprep.subr.bf16.mxu1 %v10212_v0 }
  0x6d   :  { %8289 = vmatmul.mubr.f32.vlgmr.msra.gmra.mrb[0].mxu0 %v84_v33 }
  0x6e   :  { %8312 = vmatpush3.bf16.msra.mxu0 %v9575_v34  ;;  %8327 = vmatprep.mubr.msk.bf16.mxu0 %vm10213_vm0, %v10212_v0 }
  0x6f   :  { %8313 = vmatprep.subr.bf16.mxu0 %v10212_v0 }
  0x72   :  { %8314 = vmatpush3.bf16.msra.mxu0 %v9577_v35  ;;  %v9596_v35 = vld [vmem:[#allocation8 + $0xd8] sm:$0xff]  }
  0x73   :  { %8315 = vmatprep.subr.bf16.mxu0 %v10212_v0 }
  0x76   :  { %8316 = vmatpush3.bf16.msra.mxu0 %v9579_v36 }
  0x77   :  { %8317 = vmatprep.subr.bf16.mxu0 %v10212_v0 }
  0x7a   :  { %8318 = vmatpush3.bf16.msra.mxu0 %v9581_v37 }
  0x7b   :  { %8319 = vmatprep.subr.bf16.mxu0 %v10212_v0 }
  0x7e   :  { %8320 = vmatpush3.bf16.msra.mxu0 %v9583_v38 }
  0x7f   :  { %8321 = vmatprep.subr.bf16.mxu0 %v10212_v0 }
  0x82   :  { %8322 = vmatpush3.bf16.msra.mxu0 %v9585_v39  ;;  %v9597_v39 = vld [vmem:[#allocation8 + $0x118] sm:$0xff]  }
  0x83   :  { %8323 = vmatprep.subr.bf16.mxu0 %v10212_v0 }
  0x86   :  { %8324 = vmatpush3.bf16.msra.mxu0 %v9587_v40 }
  0x87   :  { %8325 = vmatprep.subr.bf16.mxu0 %v10212_v0 }
  0x8a   :  { %8326 = vmatpush3.bf16.msra.mxu0 %v9589_v42 }
  0x8b   :  { %8351 = vmatprep.subr.bf16.mxu0 %v10212_v0 }
 0x140   :  { %v8290_v47 = vpop.f32.mrb[0].mxu0 }
 0x141   :  { %v10349_v49 = vadd.f32 %v8290_v47, %v7181_v44  ;;  %v174_v50 = vpop.f32.mrb[1].mxu0 }
 0x142   :  { %v10352_v53 = vadd.f32 %v7181_v44, %v174_v50  ;;  %v9598_v50 = vld [vmem:[#allocation8 + $0xe0] sm:$0xff]  }
 0x143   :  { %184 = vst [vmem:[#allocation11 + $0x8] sm:$0xff] %v10349_v49  ;;  %v520_v55 = vrot.slane %v10349_v49, 1  ;;  %v967_v56 = vrot.slane %v10349_v49, 2  ;;  %v1412_v57 = vrot.slane %v10349_v49, 3  ;;  %v1857_v14 = vrot.slane %v10349_v49, 4 }
 0x144   :  { %183 = vst [vmem:[#allocation11] sm:$0xff] %v10352_v53  ;;  %v246_v58 = vpack.c.bf16 %v10349_v49, %v10352_v53  ;;  %v245_v59 = vpack.c.bf16 %v10352_v53, %v10212_v0  ;;  %v519_v60 = vrot.slane %v10352_v53, 1  ;;  %v966_v61 = vrot.slane %v10352_v53, 2 }
 0x145   :  { %v10373_v62 = vsel %vm525_vm1, %v520_v55, %v10344_v46  ;;  %v10378_v63 = vsel %vm970_vm2, %v967_v56, %v10347_v48  ;;  %v1411_v6 = vrot.slane %v10352_v53, 3  ;;  %v1856_v7 = vrot.slane %v10352_v53, 4 }
 0x146   :  { %8308 = vmatmul.mubr.bf16.vlgmr.msra.gmra.mrb[0].mxu1 %v246_v58  ;;  %8328 = vmatmul.mubr.bf16.vlgmr.msra.gmra.mrb[4].mxu0 %v245_v59  ;;  %v10387_v4 = vsel %vm525_vm1, %v10344_v46, %v519_v60  ;;  %v10391_v5 = vsel %vm525_vm1, %v519_v60, %v520_v55  ;;  %v10408_v11 = vsel %vm970_vm2, %v10347_v48, %v966_v61  ;;  %v2301_v18 = vrot.slane %v10352_v53, 5  ;;  %v9599_v55 = vld [vmem:[#allocation8 + $0x120] sm:$0xff]   ;;  %v9600_v60 = vld [vmem:[#allocation8 + $0xe8] sm:$0xff]  }
 0x147   :  { %8332 = vmatpush3.bf16.msra.mxu1 %v9590_v51  ;;  %8352 = vmatpush3.bf16.msra.mxu0 %v9591_v52  ;;  %v688_v8 = vpack.c.bf16 %v10391_v5, %v10387_v4  ;;  %v780_v9 = vpack.c.bf16 %v10373_v62, %v10391_v5  ;;  %v10412_v12 = vsel %vm970_vm2, %v966_v61, %v967_v56  ;;  %v2302_v24 = vrot.slane %v10349_v49, 5  ;;  %v9601_v61 = vld [vmem:[#allocation8 + $0x128] sm:$0xff]   ;;  %v9628_v5 = vld [vmem:[#allocation8 + $0x1d8] sm:$0xff]  }
 0x148   :  { %8333 = vmatprep.subr.bf16.mxu1 %v10212_v0  ;;  %8353 = vmatprep.subr.bf16.mxu0 %v10212_v0  ;;  %v10417_v13 = vsel %vm1415_vm3, %v1412_v57, %v10356_v54  ;;  %v1133_v16 = vpack.c.bf16 %v10412_v12, %v10408_v11  ;;  %v1225_v17 = vpack.c.bf16 %v10378_v63, %v10412_v12  ;;  %v2746_v27 = vrot.slane %v10352_v53, 6  ;;  %v9660_v12 = vld [vmem:[#allocation8 + $0x2d8] sm:$0xff]  }
 0x149   :  { %8347 = vmatprep.mubr.msk.bf16.mxu1 %vm10213_vm0, %v10212_v0  ;;  %8367 = vmatprep.mubr.msk.bf16.mxu0 %vm10213_vm0, %v10212_v0  ;;  %v10435_v21 = vsel %vm1415_vm3, %v10356_v54, %v1411_v6  ;;  %v10439_v22 = vsel %vm1415_vm3, %v1411_v6, %v1412_v57  ;;  %v10444_v23 = vsel %vm1860_vm4, %v10381_v1, %v1856_v7  ;;  %v2747_v30 = vrot.slane %v10349_v49, 6  ;;  %v9604_v6 = vld [vmem:[#allocation8 + $0xf8] sm:$0xff]  }
 0x14a   :  { %v1578_v25 = vpack.c.bf16 %v10439_v22, %v10435_v21  ;;  %v1670_v26 = vpack.c.bf16 %v10417_v13, %v10439_v22  ;;  %v10457_v28 = vsel %vm1860_vm4, %v1856_v7, %v1857_v14  ;;  %v10462_v29 = vsel %vm1860_vm4, %v1857_v14, %v10381_v1  ;;  %v9605_v7 = vld [vmem:[#allocation8 + $0x138] sm:$0xff]   ;;  %v9606_v14 = vld [vmem:[#allocation8 + $0x140] sm:$0xff]  }
 0x14b   :  { %8334 = vmatpush3.bf16.msra.mxu1 %v9592_v2  ;;  %8354 = vmatpush3.bf16.msra.mxu0 %v9593_v3  ;;  %v2023_v32 = vpack.c.bf16 %v10457_v28, %v10444_v23  ;;  %v2115_v33 = vpack.c.bf16 %v10462_v29, %v10457_v28  ;;  %v10475_v34 = vsel %vm2305_vm5, %v10400_v10, %v2301_v18  ;;  %v3191_v42 = vrot.slane %v10352_v53, 7  ;;  %v9602_v2 = vld [vmem:[#allocation8 + $0xf0] sm:$0xff]   ;;  %v9692_v22 = vld [vmem:[#allocation8 + $0x3d8] sm:$0xff]  }
 0x14c   :  { %8335 = vmatprep.subr.bf16.mxu1 %v10212_v0  ;;  %8355 = vmatprep.subr.bf16.mxu0 %v10212_v0  ;;  %v10479_v36 = vsel %vm2305_vm5, %v2301_v18, %v2302_v24  ;;  %v10484_v37 = vsel %vm2305_vm5, %v2302_v24, %v10400_v10  ;;  %v10489_v38 = vsel %vm2750_vm6, %v10430_v19, %v2746_v27  ;;  %v3192_v47 = vrot.slane %v10349_v49, 7  ;;  %v9603_v3 = vld [vmem:[#allocation8 + $0x130] sm:$0xff]   ;;  %v9608_v24 = vld [vmem:[#allocation8 + $0x148] sm:$0xff]   ;;  %v9724_v28 = vld [vmem:[#allocation8 + $0x4d8] sm:$0xff]  }
 0x14d   :  { %v2468_v40 = vpack.c.bf16 %v10479_v36, %v10475_v34  ;;  %v2560_v41 = vpack.c.bf16 %v10484_v37, %v10479_v36  ;;  %v10501_v43 = vsel %vm2750_vm6, %v2746_v27, %v2747_v30  ;;  %v10506_v44 = vsel %vm2750_vm6, %v2747_v30, %v10430_v19  ;;  %v9609_v27 = vld [vmem:[#allocation8 + $0x188] sm:$0xff]   ;;  %v9610_v30 = vld [vmem:[#allocation8 + $0x150] sm:$0xff]   ;;  %v9756_v36 = vld [vmem:[#allocation8 + $0x5d8] sm:$0xff]  }
 0x14e   :  { %v2913_v51 = vpack.c.bf16 %v10501_v43, %v10489_v38  ;;  %v3005_v52 = vpack.c.bf16 %v10506_v44, %v10501_v43  ;;  %v10516_v53 = vsel %vm3195_vm7, %v10466_v31, %v3191_v42  ;;  %v10520_v56 = vsel %vm3195_vm7, %v3191_v42, %v3192_v47  ;;  %v9614_v42 = vld [vmem:[#allocation8 + $0x160] sm:$0xff]   ;;  %v9788_v43 = vld [vmem:[#allocation8 + $0x6d8] sm:$0xff]  }
 0x14f   :  { %8336 = vmatpush3.bf16.msra.mxu1 %v9594_v15  ;;  %8356 = vmatpush3.bf16.msra.mxu0 %v9595_v20  ;;  %v10525_v57 = vsel %vm3195_vm7, %v3192_v47, %v10466_v31  ;;  %v3358_v58 = vpack.c.bf16 %v10520_v56, %v10516_v53  ;;  %v9607_v15 = vld [vmem:[#allocation8 + $0x180] sm:$0xff]   ;;  %v425_v18 = vpack.c.bf16 %v10212_v0, %v10349_v49  ;;  %v9611_v49 = vld [vmem:[#allocation8 + $0x190] sm:$0xff]  }
 0x150   :  { %8337 = vmatprep.subr.bf16.mxu1 %v10212_v0  ;;  %8357 = vmatprep.subr.bf16.mxu0 %v10212_v0  ;;  %v3450_v59 = vpack.c.bf16 %v10525_v57, %v10520_v56  ;;  %v596_v20 = vpack.c.bf16 %v10387_v4, %v10344_v46  ;;  %v9615_v47 = vld [vmem:[#allocation8 + $0x1a0] sm:$0xff]   ;;  %v9627_v4 = vld [vmem:[#allocation8 + $0x210] sm:$0xff]  }
 0x151   :  { %v9818_v56 = vld [vmem:[#allocation8 + $0x7e0] sm:$0xff]  }
 0x153   :  { %8338 = vmatpush3.bf16.msra.mxu1 %v9596_v35  ;;  %8358 = vmatpush3.bf16.msra.mxu0 %v9597_v39  ;;  %v9612_v35 = vld [vmem:[#allocation8 + $0x158] sm:$0xff]  }
 0x154   :  { %8339 = vmatprep.subr.bf16.mxu1 %v10212_v0  ;;  %8359 = vmatprep.subr.bf16.mxu0 %v10212_v0  ;;  %v9613_v39 = vld [vmem:[#allocation8 + $0x198] sm:$0xff]  }
 0x157   :  { %8340 = vmatpush3.bf16.msra.mxu1 %v9598_v50  ;;  %8360 = vmatpush3.bf16.msra.mxu0 %v9599_v55  ;;  %v9616_v50 = vld [vmem:[#allocation8 + $0x168] sm:$0xff]  }
 0x158   :  { %8341 = vmatprep.subr.bf16.mxu1 %v10212_v0  ;;  %8361 = vmatprep.subr.bf16.mxu0 %v10212_v0  ;;  %v9617_v55 = vld [vmem:[#allocation8 + $0x1a8] sm:$0xff]  }
 0x15b   :  { %8342 = vmatpush3.bf16.msra.mxu1 %v9600_v60  ;;  %8362 = vmatpush3.bf16.msra.mxu0 %v9601_v61  ;;  %v9618_v60 = vld [vmem:[#allocation8 + $0x170] sm:$0xff]  }
 0x15c   :  { %8343 = vmatprep.subr.bf16.mxu1 %v10212_v0  ;;  %8363 = vmatprep.subr.bf16.mxu0 %v10212_v0  ;;  %v9619_v61 = vld [vmem:[#allocation8 + $0x1b0] sm:$0xff]  }
 0x15f   :  { %8344 = vmatpush3.bf16.msra.mxu1 %v9602_v2  ;;  %8364 = vmatpush3.bf16.msra.mxu0 %v9603_v3  ;;  %v9620_v2 = vld [vmem:[#allocation8 + $0x178] sm:$0xff]  }
 0x160   :  { %8345 = vmatprep.subr.bf16.mxu1 %v10212_v0  ;;  %8365 = vmatprep.subr.bf16.mxu0 %v10212_v0  ;;  %v9621_v3 = vld [vmem:[#allocation8 + $0x1b8] sm:$0xff]  }
 0x163   :  { %8346 = vmatpush3.bf16.msra.mxu1 %v9604_v6  ;;  %8366 = vmatpush3.bf16.msra.mxu0 %v9605_v7  ;;  %v9622_v6 = vld [vmem:[#allocation8 + $0x1c0] sm:$0xff]  }
 0x164   :  { %8371 = vmatprep.subr.bf16.mxu1 %v10212_v0  ;;  %8391 = vmatprep.subr.bf16.mxu0 %v10212_v0  ;;  %v9623_v7 = vld [vmem:[#allocation8 + $0x200] sm:$0xff]  }
 0x166   :  { %8348 = vmatmul.mubr.bf16.vlgmr.msra.gmra.mrb[4].mxu1 %v425_v18  ;;  %8368 = vmatmul.mubr.bf16.vlgmr.msra.gmra.mrb[8].mxu0 %v596_v20  ;;  %v9626_v18 = vld [vmem:[#allocation8 + $0x1d0] sm:$0xff]   ;;  %v9631_v20 = vld [vmem:[#allocation8 + $0x220] sm:$0xff]  }
 0x167   :  { %8372 = vmatpush3.bf16.msra.mxu1 %v9606_v14  ;;  %8392 = vmatpush3.bf16.msra.mxu0 %v9607_v15  ;;  %v9624_v14 = vld [vmem:[#allocation8 + $0x1c8] sm:$0xff]  }
 0x168   :  { %8373 = vmatprep.subr.bf16.mxu1 %v10212_v0  ;;  %8393 = vmatprep.subr.bf16.mxu0 %v10212_v0  ;;  %v9625_v15 = vld [vmem:[#allocation8 + $0x208] sm:$0xff]  }
 0x169   :  { %8387 = vmatprep.mubr.msk.bf16.mxu1 %vm10213_vm0, %v10212_v0  ;;  %8407 = vmatprep.mubr.msk.bf16.mxu0 %vm10213_vm0, %v10212_v0 }
 0x16b   :  { %8374 = vmatpush3.bf16.msra.mxu1 %v9608_v24  ;;  %8394 = vmatpush3.bf16.msra.mxu0 %v9609_v27  ;;  %v9632_v24 = vld [vmem:[#allocation8 + $0x1e8] sm:$0xff]  }
 0x16c   :  { %8375 = vmatprep.subr.bf16.mxu1 %v10212_v0  ;;  %8395 = vmatprep.subr.bf16.mxu0 %v10212_v0  ;;  %v9633_v27 = vld [vmem:[#allocation8 + $0x228] sm:$0xff]  }
 0x16f   :  { %8376 = vmatpush3.bf16.msra.mxu1 %v9610_v30  ;;  %8396 = vmatpush3.bf16.msra.mxu0 %v9611_v49  ;;  %v9634_v30 = vld [vmem:[#allocation8 + $0x1f0] sm:$0xff]  }
 0x170   :  { %8377 = vmatprep.subr.bf16.mxu1 %v10212_v0  ;;  %8397 = vmatprep.subr.bf16.mxu0 %v10212_v0  ;;  %v9635_v49 = vld [vmem:[#allocation8 + $0x230] sm:$0xff]  }
 0x173   :  { %8378 = vmatpush3.bf16.msra.mxu1 %v9612_v35  ;;  %8398 = vmatpush3.bf16.msra.mxu0 %v9613_v39  ;;  %v9636_v35 = vld [vmem:[#allocation8 + $0x1f8] sm:$0xff]  }
 0x174   :  { %8379 = vmatprep.subr.bf16.mxu1 %v10212_v0  ;;  %8399 = vmatprep.subr.bf16.mxu0 %v10212_v0  ;;  %v9637_v39 = vld [vmem:[#allocation8 + $0x238] sm:$0xff]  }
 0x177   :  { %8380 = vmatpush3.bf16.msra.mxu1 %v9614_v42  ;;  %8400 = vmatpush3.bf16.msra.mxu0 %v9615_v47  ;;  %v9638_v42 = vld [vmem:[#allocation8 + $0x240] sm:$0xff]  }
 0x178   :  { %8381 = vmatprep.subr.bf16.mxu1 %v10212_v0  ;;  %8401 = vmatprep.subr.bf16.mxu0 %v10212_v0  ;;  %v9639_v47 = vld [vmem:[#allocation8 + $0x280] sm:$0xff]  }
 0x17b   :  { %8382 = vmatpush3.bf16.msra.mxu1 %v9616_v50  ;;  %8402 = vmatpush3.bf16.msra.mxu0 %v9617_v55  ;;  %v872_v50 = vpack.c.bf16 %v10344_v46, %v10373_v62  ;;  %v1041_v55 = vpack.c.bf16 %v10408_v11, %v10347_v48  ;;  %v9643_v62 = vld [vmem:[#allocation8 + $0x290] sm:$0xff]  }
 0x17c   :  { %8383 = vmatprep.subr.bf16.mxu1 %v10212_v0  ;;  %8403 = vmatprep.subr.bf16.mxu0 %v10212_v0  ;;  %v9659_v11 = vld [vmem:[#allocation8 + $0x310] sm:$0xff]  }
 0x17f   :  { %8384 = vmatpush3.bf16.msra.mxu1 %v9618_v60  ;;  %8404 = vmatpush3.bf16.msra.mxu0 %v9619_v61  ;;  %v9640_v60 = vld [vmem:[#allocation8 + $0x248] sm:$0xff]  }
 0x180   :  { %8385 = vmatprep.subr.bf16.mxu1 %v10212_v0  ;;  %8405 = vmatprep.subr.bf16.mxu0 %v10212_v0  ;;  %v9641_v61 = vld [vmem:[#allocation8 + $0x288] sm:$0xff]  }
 0x183   :  { %8386 = vmatpush3.bf16.msra.mxu1 %v9620_v2  ;;  %8406 = vmatpush3.bf16.msra.mxu0 %v9621_v3  ;;  %v9642_v2 = vld [vmem:[#allocation8 + $0x250] sm:$0xff]   ;;  %v9644_v3 = vld [vmem:[#allocation8 + $0x258] sm:$0xff]  }
 0x184   :  { %8411 = vmatprep.subr.bf16.mxu1 %v10212_v0  ;;  %8431 = vmatprep.subr.bf16.mxu0 %v10212_v0 }
 0x186   :  { %8388 = vmatmul.mubr.bf16.vlgmr.msra.gmra.mrb[8].mxu1 %v688_v8  ;;  %8408 = vmatmul.mubr.bf16.vlgmr.msra.gmra.mrb[12].mxu0 %v780_v9  ;;  %v9629_v8 = vld [vmem:[#allocation8 + $0x218] sm:$0xff]   ;;  %v9630_v9 = vld [vmem:[#allocation8 + $0x1e0] sm:$0xff]  }
 0x187   :  { %8412 = vmatpush3.bf16.msra.mxu1 %v9622_v6  ;;  %8432 = vmatpush3.bf16.msra.mxu0 %v9623_v7  ;;  %v9645_v6 = vld [vmem:[#allocation8 + $0x298] sm:$0xff]   ;;  %v9646_v7 = vld [vmem:[#allocation8 + $0x260] sm:$0xff]  }
 0x188   :  { %8413 = vmatprep.subr.bf16.mxu1 %v10212_v0  ;;  %8433 = vmatprep.subr.bf16.mxu0 %v10212_v0 }
 0x189   :  { %8427 = vmatprep.mubr.msk.bf16.mxu1 %vm10213_vm0, %v10212_v0  ;;  %8447 = vmatprep.mubr.msk.bf16.mxu0 %vm10213_vm0, %v10212_v0 }
 0x18b   :  { %8414 = vmatpush3.bf16.msra.mxu1 %v9624_v14  ;;  %8434 = vmatpush3.bf16.msra.mxu0 %v9625_v15  ;;  %v9647_v14 = vld [vmem:[#allocation8 + $0x2a0] sm:$0xff]   ;;  %v9648_v15 = vld [vmem:[#allocation8 + $0x268] sm:$0xff]  }
 0x18c   :  { %8415 = vmatprep.subr.bf16.mxu1 %v10212_v0  ;;  %8435 = vmatprep.subr.bf16.mxu0 %v10212_v0 }
 0x18f   :  { %8416 = vmatpush3.bf16.msra.mxu1 %v9626_v18  ;;  %8436 = vmatpush3.bf16.msra.mxu0 %v9627_v4  ;;  %v9649_v18 = vld [vmem:[#allocation8 + $0x2a8] sm:$0xff]   ;;  %v9650_v4 = vld [vmem:[#allocation8 + $0x270] sm:$0xff]  }
 0x190   :  { %8417 = vmatprep.subr.bf16.mxu1 %v10212_v0  ;;  %8437 = vmatprep.subr.bf16.mxu0 %v10212_v0 }
 0x193   :  { %8418 = vmatpush3.bf16.msra.mxu1 %v9628_v5  ;;  %8438 = vmatpush3.bf16.msra.mxu0 %v9629_v8  ;;  %v9651_v5 = vld [vmem:[#allocation8 + $0x2b0] sm:$0xff]   ;;  %v9652_v8 = vld [vmem:[#allocation8 + $0x278] sm:$0xff]  }
 0x194   :  { %8419 = vmatprep.subr.bf16.mxu1 %v10212_v0  ;;  %8439 = vmatprep.subr.bf16.mxu0 %v10212_v0 }
 0x197   :  { %8420 = vmatpush3.bf16.msra.mxu1 %v9630_v9  ;;  %8440 = vmatpush3.bf16.msra.mxu0 %v9631_v20  ;;  %v9653_v9 = vld [vmem:[#allocation8 + $0x2b8] sm:$0xff]   ;;  %v9654_v20 = vld [vmem:[#allocation8 + $0x2c0] sm:$0xff]  }
 0x198   :  { %8421 = vmatprep.subr.bf16.mxu1 %v10212_v0  ;;  %8441 = vmatprep.subr.bf16.mxu0 %v10212_v0 }
 0x19b   :  { %8422 = vmatpush3.bf16.msra.mxu1 %v9632_v24  ;;  %8442 = vmatpush3.bf16.msra.mxu0 %v9633_v27  ;;  %v9655_v24 = vld [vmem:[#allocation8 + $0x300] sm:$0xff]   ;;  %v9656_v27 = vld [vmem:[#allocation8 + $0x2c8] sm:$0xff]  }
 0x19c   :  { %8423 = vmatprep.subr.bf16.mxu1 %v10212_v0  ;;  %8443 = vmatprep.subr.bf16.mxu0 %v10212_v0 }
 0x19f   :  { %8424 = vmatpush3.bf16.msra.mxu1 %v9634_v30  ;;  %8444 = vmatpush3.bf16.msra.mxu0 %v9635_v49  ;;  %v9657_v30 = vld [vmem:[#allocation8 + $0x308] sm:$0xff]   ;;  %v9658_v49 = vld [vmem:[#allocation8 + $0x2d0] sm:$0xff]  }
 0x1a0   :  { %8425 = vmatprep.subr.bf16.mxu1 %v10212_v0  ;;  %8445 = vmatprep.subr.bf16.mxu0 %v10212_v0 }
 0x1a3   :  { %8426 = vmatpush3.bf16.msra.mxu1 %v9636_v35  ;;  %8446 = vmatpush3.bf16.msra.mxu0 %v9637_v39  ;;  %v9663_v35 = vld [vmem:[#allocation8 + $0x320] sm:$0xff]   ;;  %v9664_v39 = vld [vmem:[#allocation8 + $0x2e8] sm:$0xff]  }
 0x1a4   :  { %8451 = vmatprep.subr.bf16.mxu1 %v10212_v0  ;;  %8471 = vmatprep.subr.bf16.mxu0 %v10212_v0 }
 0x1a6   :  { %8428 = vmatmul.mubr.bf16.vlgmr.msra.gmra.mrb[12].mxu1 %v872_v50  ;;  %8448 = vmatmul.mubr.bf16.vlgmr.msra.gmra.mrb[16].mxu0 %v1041_v55  ;;  %v9667_v50 = vld [vmem:[#allocation8 + $0x330] sm:$0xff]   ;;  %v9668_v55 = vld [vmem:[#allocation8 + $0x2f8] sm:$0xff]  }
 0x1a7   :  { %8452 = vmatpush3.bf16.msra.mxu1 %v9638_v42  ;;  %8472 = vmatpush3.bf16.msra.mxu0 %v9639_v47  ;;  %v9665_v42 = vld [vmem:[#allocation8 + $0x328] sm:$0xff]   ;;  %v9666_v47 = vld [vmem:[#allocation8 + $0x2f0] sm:$0xff]  }
 0x1a8   :  { %8453 = vmatprep.subr.bf16.mxu1 %v10212_v0  ;;  %8473 = vmatprep.subr.bf16.mxu0 %v10212_v0 }
 0x1a9   :  { %8467 = vmatprep.mubr.msk.bf16.mxu1 %vm10213_vm0, %v10212_v0  ;;  %8487 = vmatprep.mubr.msk.bf16.mxu0 %vm10213_vm0, %v10212_v0 }
 0x1ab   :  { %8454 = vmatpush3.bf16.msra.mxu1 %v9640_v60  ;;  %8474 = vmatpush3.bf16.msra.mxu0 %v9641_v61  ;;  %v9669_v60 = vld [vmem:[#allocation8 + $0x338] sm:$0xff]   ;;  %v9670_v61 = vld [vmem:[#allocation8 + $0x340] sm:$0xff]  }
 0x1ac   :  { %8455 = vmatprep.subr.bf16.mxu1 %v10212_v0  ;;  %8475 = vmatprep.subr.bf16.mxu0 %v10212_v0 }
 0x1af   :  { %8456 = vmatpush3.bf16.msra.mxu1 %v9642_v2  ;;  %8476 = vmatpush3.bf16.msra.mxu0 %v9643_v62  ;;  %v9671_v2 = vld [vmem:[#allocation8 + $0x380] sm:$0xff]   ;;  %v1317_v62 = vpack.c.bf16 %v10347_v48, %v10378_v63  ;;  %v9674_v63 = vld [vmem:[#allocation8 + $0x350] sm:$0xff]  }
 0x1b0   :  { %8457 = vmatprep.subr.bf16.mxu1 %v10212_v0  ;;  %8477 = vmatprep.subr.bf16.mxu0 %v10212_v0 }
 0x1b3   :  { %8458 = vmatpush3.bf16.msra.mxu1 %v9644_v3  ;;  %8478 = vmatpush3.bf16.msra.mxu0 %v9645_v6  ;;  %v1486_v3 = vpack.c.bf16 %v10435_v21, %v10356_v54  ;;  %v9672_v6 = vld [vmem:[#allocation8 + $0x348] sm:$0xff]   ;;  %v9690_v21 = vld [vmem:[#allocation8 + $0x3d0] sm:$0xff]  }
 0x1b4   :  { %8459 = vmatprep.subr.bf16.mxu1 %v10212_v0  ;;  %8479 = vmatprep.subr.bf16.mxu0 %v10212_v0 }
 0x1b7   :  { %8460 = vmatpush3.bf16.msra.mxu1 %v9646_v7  ;;  %8480 = vmatpush3.bf16.msra.mxu0 %v9647_v14  ;;  %v9673_v7 = vld [vmem:[#allocation8 + $0x388] sm:$0xff]   ;;  %v9675_v14 = vld [vmem:[#allocation8 + $0x390] sm:$0xff]  }
 0x1b8   :  { %8461 = vmatprep.subr.bf16.mxu1 %v10212_v0  ;;  %8481 = vmatprep.subr.bf16.mxu0 %v10212_v0 }
 0x1bb   :  { %8462 = vmatpush3.bf16.msra.mxu1 %v9648_v15  ;;  %8482 = vmatpush3.bf16.msra.mxu0 %v9649_v18  ;;  %v9676_v15 = vld [vmem:[#allocation8 + $0x358] sm:$0xff]  }
 0x1bc   :  { %8463 = vmatprep.subr.bf16.mxu1 %v10212_v0  ;;  %8483 = vmatprep.subr.bf16.mxu0 %v10212_v0  ;;  %v9677_v18 = vld [vmem:[#allocation8 + $0x398] sm:$0xff]  }
 0x1bf   :  { %8464 = vmatpush3.bf16.msra.mxu1 %v9650_v4  ;;  %8484 = vmatpush3.bf16.msra.mxu0 %v9651_v5  ;;  %v9678_v4 = vld [vmem:[#allocation8 + $0x360] sm:$0xff]  }
 0x1c0   :  { %8465 = vmatprep.subr.bf16.mxu1 %v10212_v0  ;;  %8485 = vmatprep.subr.bf16.mxu0 %v10212_v0  ;;  %v9679_v5 = vld [vmem:[#allocation8 + $0x3a0] sm:$0xff]  }
 0x1c3   :  { %8466 = vmatpush3.bf16.msra.mxu1 %v9652_v8  ;;  %8486 = vmatpush3.bf16.msra.mxu0 %v9653_v9  ;;  %v9680_v8 = vld [vmem:[#allocation8 + $0x368] sm:$0xff]  }
 0x1c4   :  { %8491 = vmatprep.subr.bf16.mxu1 %v10212_v0  ;;  %8511 = vmatprep.subr.bf16.mxu0 %v10212_v0  ;;  %v9681_v9 = vld [vmem:[#allocation8 + $0x3a8] sm:$0xff]  }
 0x1c6   :  { %8468 = vmatmul.mubr.bf16.vlgmr.msra.gmra.mrb[16].mxu1 %v1133_v16  ;;  %8488 = vmatmul.mubr.bf16.vlgmr.msra.gmra.mrb[20].mxu0 %v1225_v17  ;;  %v9661_v16 = vld [vmem:[#allocation8 + $0x318] sm:$0xff]   ;;  %v9662_v17 = vld [vmem:[#allocation8 + $0x2e0] sm:$0xff]  }
 0x1c7   :  { %8492 = vmatpush3.bf16.msra.mxu1 %v9654_v20  ;;  %8512 = vmatpush3.bf16.msra.mxu0 %v9655_v24  ;;  %v9682_v20 = vld [vmem:[#allocation8 + $0x370] sm:$0xff]  }
 0x1c8   :  { %8493 = vmatprep.subr.bf16.mxu1 %v10212_v0  ;;  %8513 = vmatprep.subr.bf16.mxu0 %v10212_v0  ;;  %v9683_v24 = vld [vmem:[#allocation8 + $0x3b0] sm:$0xff]  }
 0x1c9   :  { %8507 = vmatprep.mubr.msk.bf16.mxu1 %vm10213_vm0, %v10212_v0  ;;  %8527 = vmatprep.mubr.msk.bf16.mxu0 %vm10213_vm0, %v10212_v0 }
 0x1cb   :  { %8494 = vmatpush3.bf16.msra.mxu1 %v9656_v27  ;;  %8514 = vmatpush3.bf16.msra.mxu0 %v9657_v30  ;;  %v9684_v27 = vld [vmem:[#allocation8 + $0x378] sm:$0xff]  }
 0x1cc   :  { %8495 = vmatprep.subr.bf16.mxu1 %v10212_v0  ;;  %8515 = vmatprep.subr.bf16.mxu0 %v10212_v0  ;;  %v9685_v30 = vld [vmem:[#allocation8 + $0x3b8] sm:$0xff]  }
 0x1cf   :  { %8496 = vmatpush3.bf16.msra.mxu1 %v9658_v49  ;;  %8516 = vmatpush3.bf16.msra.mxu0 %v9659_v11  ;;  %v9686_v49 = vld [vmem:[#allocation8 + $0x3c0] sm:$0xff]  }
 0x1d0   :  { %8497 = vmatprep.subr.bf16.mxu1 %v10212_v0  ;;  %8517 = vmatprep.subr.bf16.mxu0 %v10212_v0  ;;  %v9687_v11 = vld [vmem:[#allocation8 + $0x400] sm:$0xff]  }
 0x1d3   :  { %8498 = vmatpush3.bf16.msra.mxu1 %v9660_v12  ;;  %8518 = vmatpush3.bf16.msra.mxu0 %v9661_v16  ;;  %v9688_v12 = vld [vmem:[#allocation8 + $0x3c8] sm:$0xff]  }
 0x1d4   :  { %8499 = vmatprep.subr.bf16.mxu1 %v10212_v0  ;;  %8519 = vmatprep.subr.bf16.mxu0 %v10212_v0  ;;  %v9689_v16 = vld [vmem:[#allocation8 + $0x408] sm:$0xff]  }
 0x1d7   :  { %8500 = vmatpush3.bf16.msra.mxu1 %v9662_v17  ;;  %8520 = vmatpush3.bf16.msra.mxu0 %v9663_v35  ;;  %v9694_v17 = vld [vmem:[#allocation8 + $0x3e0] sm:$0xff]  }
 0x1d8   :  { %8501 = vmatprep.subr.bf16.mxu1 %v10212_v0  ;;  %8521 = vmatprep.subr.bf16.mxu0 %v10212_v0  ;;  %v9695_v35 = vld [vmem:[#allocation8 + $0x420] sm:$0xff]  }
 0x1db   :  { %8502 = vmatpush3.bf16.msra.mxu1 %v9664_v39  ;;  %8522 = vmatpush3.bf16.msra.mxu0 %v9665_v42  ;;  %v9696_v39 = vld [vmem:[#allocation8 + $0x3e8] sm:$0xff]  }
 0x1dc   :  { %8503 = vmatprep.subr.bf16.mxu1 %v10212_v0  ;;  %8523 = vmatprep.subr.bf16.mxu0 %v10212_v0  ;;  %v9697_v42 = vld [vmem:[#allocation8 + $0x428] sm:$0xff]  }
 0x1df   :  { %8504 = vmatpush3.bf16.msra.mxu1 %v9666_v47  ;;  %8524 = vmatpush3.bf16.msra.mxu0 %v9667_v50 }
 0x1e0   :  { %8505 = vmatprep.subr.bf16.mxu1 %v10212_v0  ;;  %8525 = vmatprep.subr.bf16.mxu0 %v10212_v0 }
 0x1e3   :  { %8506 = vmatpush3.bf16.msra.mxu1 %v9668_v55  ;;  %8526 = vmatpush3.bf16.msra.mxu0 %v9669_v60 }
 0x1e4   :  { %8531 = vmatprep.subr.bf16.mxu1 %v10212_v0  ;;  %8551 = vmatprep.subr.bf16.mxu0 %v10212_v0 }
 0x1e6   :  { %8508 = vmatmul.mubr.bf16.vlgmr.msra.gmra.mrb[20].mxu1 %v1317_v62  ;;  %8528 = vmatmul.mubr.bf16.vlgmr.msra.gmra.mrb[24].mxu0 %v1486_v3  ;;  %v9698_v3 = vld [vmem:[#allocation8 + $0x3f0] sm:$0xff]  }
 0x1e7   :  { %8532 = vmatpush3.bf16.msra.mxu1 %v9670_v61  ;;  %8552 = vmatpush3.bf16.msra.mxu0 %v9671_v2 }
 0x1e8   :  { %8533 = vmatprep.subr.bf16.mxu1 %v10212_v0  ;;  %8553 = vmatprep.subr.bf16.mxu0 %v10212_v0 }
 0x1e9   :  { %8547 = vmatprep.mubr.msk.bf16.mxu1 %vm10213_vm0, %v10212_v0  ;;  %8567 = vmatprep.mubr.msk.bf16.mxu0 %vm10213_vm0, %v10212_v0 }
 0x1eb   :  { %8534 = vmatpush3.bf16.msra.mxu1 %v9672_v6  ;;  %8554 = vmatpush3.bf16.msra.mxu0 %v9673_v7  ;;  %v9699_v6 = vld [vmem:[#allocation8 + $0x430] sm:$0xff]  }
 0x1ec   :  { %8535 = vmatprep.subr.bf16.mxu1 %v10212_v0  ;;  %8555 = vmatprep.subr.bf16.mxu0 %v10212_v0 }
 0x1ef   :  { %8536 = vmatpush3.bf16.msra.mxu1 %v9674_v63  ;;  %8556 = vmatpush3.bf16.msra.mxu0 %v9675_v14 }
 0x1f0   :  { %8537 = vmatprep.subr.bf16.mxu1 %v10212_v0  ;;  %8557 = vmatprep.subr.bf16.mxu0 %v10212_v0 }
 0x1f3   :  { %8538 = vmatpush3.bf16.msra.mxu1 %v9676_v15  ;;  %8558 = vmatpush3.bf16.msra.mxu0 %v9677_v18  ;;  %v9700_v15 = vld [vmem:[#allocation8 + $0x3f8] sm:$0xff]  }
 0x1f4   :  { %8539 = vmatprep.subr.bf16.mxu1 %v10212_v0  ;;  %8559 = vmatprep.subr.bf16.mxu0 %v10212_v0  ;;  %v9701_v18 = vld [vmem:[#allocation8 + $0x438] sm:$0xff]  }
 0x1f7   :  { %8540 = vmatpush3.bf16.msra.mxu1 %v9678_v4  ;;  %8560 = vmatpush3.bf16.msra.mxu0 %v9679_v5  ;;  %v9702_v4 = vld [vmem:[#allocation8 + $0x440] sm:$0xff]  }
 0x1f8   :  { %8541 = vmatprep.subr.bf16.mxu1 %v10212_v0  ;;  %8561 = vmatprep.subr.bf16.mxu0 %v10212_v0  ;;  %v9703_v5 = vld [vmem:[#allocation8 + $0x480] sm:$0xff]  }
 0x1fb   :  { %8542 = vmatpush3.bf16.msra.mxu1 %v9680_v8  ;;  %8562 = vmatpush3.bf16.msra.mxu0 %v9681_v9  ;;  %v1762_v8 = vpack.c.bf16 %v10356_v54, %v10417_v13  ;;  %v1931_v9 = vpack.c.bf16 %v10444_v23, %v10381_v1  ;;  %v9706_v13 = vld [vmem:[#allocation8 + $0x450] sm:$0xff]  }
 0x1fc   :  { %8543 = vmatprep.subr.bf16.mxu1 %v10212_v0  ;;  %8563 = vmatprep.subr.bf16.mxu0 %v10212_v0  ;;  %v9722_v23 = vld [vmem:[#allocation8 + $0x4d0] sm:$0xff]  }
 0x1ff   :  { %8544 = vmatpush3.bf16.msra.mxu1 %v9682_v20  ;;  %8564 = vmatpush3.bf16.msra.mxu0 %v9683_v24  ;;  %v9704_v20 = vld [vmem:[#allocation8 + $0x448] sm:$0xff]  }
 0x200   :  { %8545 = vmatprep.subr.bf16.mxu1 %v10212_v0  ;;  %8565 = vmatprep.subr.bf16.mxu0 %v10212_v0  ;;  %v9705_v24 = vld [vmem:[#allocation8 + $0x488] sm:$0xff]  }
 0x203   :  { %8546 = vmatpush3.bf16.msra.mxu1 %v9684_v27  ;;  %8566 = vmatpush3.bf16.msra.mxu0 %v9685_v30  ;;  %v9707_v27 = vld [vmem:[#allocation8 + $0x490] sm:$0xff]   ;;  %v9708_v30 = vld [vmem:[#allocation8 + $0x458] sm:$0xff]  }
 0x204   :  { %8571 = vmatprep.subr.bf16.mxu1 %v10212_v0  ;;  %8591 = vmatprep.subr.bf16.mxu0 %v10212_v0 }
 0x206   :  { %8548 = vmatmul.mubr.bf16.vlgmr.msra.gmra.mrb[24].mxu1 %v1578_v25  ;;  %8568 = vmatmul.mubr.bf16.vlgmr.msra.gmra.mrb[28].mxu0 %v1670_v26  ;;  %v9691_v25 = vld [vmem:[#allocation8 + $0x410] sm:$0xff]   ;;  %v9693_v26 = vld [vmem:[#allocation8 + $0x418] sm:$0xff]  }
 0x207   :  { %8572 = vmatpush3.bf16.msra.mxu1 %v9686_v49  ;;  %8592 = vmatpush3.bf16.msra.mxu0 %v9687_v11  ;;  %v9709_v49 = vld [vmem:[#allocation8 + $0x498] sm:$0xff]   ;;  %v9710_v11 = vld [vmem:[#allocation8 + $0x460] sm:$0xff]  }
 0x208   :  { %8573 = vmatprep.subr.bf16.mxu1 %v10212_v0  ;;  %8593 = vmatprep.subr.bf16.mxu0 %v10212_v0 }
 0x209   :  { %8587 = vmatprep.mubr.msk.bf16.mxu1 %vm10213_vm0, %v10212_v0  ;;  %8607 = vmatprep.mubr.msk.bf16.mxu0 %vm10213_vm0, %v10212_v0 }
 0x20b   :  { %8574 = vmatpush3.bf16.msra.mxu1 %v9688_v12  ;;  %8594 = vmatpush3.bf16.msra.mxu0 %v9689_v16  ;;  %v9711_v12 = vld [vmem:[#allocation8 + $0x4a0] sm:$0xff]   ;;  %v9712_v16 = vld [vmem:[#allocation8 + $0x468] sm:$0xff]  }
 0x20c   :  { %8575 = vmatprep.subr.bf16.mxu1 %v10212_v0  ;;  %8595 = vmatprep.subr.bf16.mxu0 %v10212_v0 }
 0x20f   :  { %8576 = vmatpush3.bf16.msra.mxu1 %v9690_v21  ;;  %8596 = vmatpush3.bf16.msra.mxu0 %v9691_v25  ;;  %v9713_v21 = vld [vmem:[#allocation8 + $0x4a8] sm:$0xff]  }
 0x210   :  { %8577 = vmatprep.subr.bf16.mxu1 %v10212_v0  ;;  %8597 = vmatprep.subr.bf16.mxu0 %v10212_v0 }
 0x213   :  { %8578 = vmatpush3.bf16.msra.mxu1 %v9692_v22  ;;  %8598 = vmatpush3.bf16.msra.mxu0 %v9693_v26 }
 0x214   :  { %8579 = vmatprep.subr.bf16.mxu1 %v10212_v0  ;;  %8599 = vmatprep.subr.bf16.mxu0 %v10212_v0 }
 0x217   :  { %8580 = vmatpush3.bf16.msra.mxu1 %v9694_v17  ;;  %8600 = vmatpush3.bf16.msra.mxu0 %v9695_v35 }
 0x218   :  { %8581 = vmatprep.subr.bf16.mxu1 %v10212_v0  ;;  %8601 = vmatprep.subr.bf16.mxu0 %v10212_v0 }
 0x219   :  { %v329_v47 = vpop.f32.mrb[0].mxu1  ;;  %v418_v50 = vpop.f32.mrb[4].mxu0 }
 0x21a   :  { %v10685_v55 = vadd.f32 %v418_v50, %v329_v47  ;;  %v8309_v60 = vpop.f32.mrb[1].mxu1  ;;  %v8329_v61 = vpop.f32.mrb[5].mxu0  ;;  %v9714_v47 = vld [vmem:[#allocation8 + $0x470] sm:$0xff]  }
 0x21b   :  { %8582 = vmatpush3.bf16.msra.mxu1 %v9696_v39  ;;  %8602 = vmatpush3.bf16.msra.mxu0 %v9697_v42  ;;  %v332_v2 = vpop.f32.mrb[2].mxu1  ;;  %v421_v62 = vpop.f32.mrb[6].mxu0  ;;  %v9715_v50 = vld [vmem:[#allocation8 + $0x4b0] sm:$0xff]  }
 0x21c   :  { %v10687_v7 = vadd.f32 %v421_v62, %v332_v2  ;;  %v8310_v63 = vpop.f32.mrb[3].mxu1  ;;  %v8330_v14 = vpop.f32.mrb[7].mxu0  ;;  %8583 = vmatprep.subr.bf16.mxu1 %v10212_v0  ;;  %8603 = vmatprep.subr.bf16.mxu0 %v10212_v0 }
 0x21d   :  { %v9718_v63 = vld [vmem:[#allocation8 + $0x4c0] sm:$0xff]  }
 0x21e   :  { %v9719_v14 = vld [vmem:[#allocation8 + $0x500] sm:$0xff]  }
 0x21f   :  { %8584 = vmatpush3.bf16.msra.mxu1 %v9698_v3  ;;  %8604 = vmatpush3.bf16.msra.mxu0 %v9699_v6  ;;  %v9717_v6 = vld [vmem:[#allocation8 + $0x4b8] sm:$0xff]  }
 0x220   :  { %8585 = vmatprep.subr.bf16.mxu1 %v10212_v0  ;;  %8605 = vmatprep.subr.bf16.mxu0 %v10212_v0 }
 0x223   :  { %8586 = vmatpush3.bf16.msra.mxu1 %v9700_v15  ;;  %8606 = vmatpush3.bf16.msra.mxu0 %v9701_v18  ;;  %v9721_v15 = vld [vmem:[#allocation8 + $0x508] sm:$0xff]   ;;  %v9726_v18 = vld [vmem:[#allocation8 + $0x4e0] sm:$0xff]  }
 0x224   :  { %8611 = vmatprep.subr.bf16.mxu1 %v10212_v0  ;;  %8631 = vmatprep.subr.bf16.mxu0 %v10212_v0 }
 0x226   :  { %8588 = vmatmul.mubr.bf16.vlgmr.msra.gmra.mrb[28].mxu1 %v1762_v8  ;;  %8608 = vmatmul.mubr.bf16.vlgmr.msra.gmra.mrb[32].mxu0 %v1931_v9  ;;  %v9729_v8 = vld [vmem:[#allocation8 + $0x528] sm:$0xff]  }
 0x227   :  { %8612 = vmatpush3.bf16.msra.mxu1 %v9702_v4  ;;  %8632 = vmatpush3.bf16.msra.mxu0 %v9703_v5  ;;  %v9727_v4 = vld [vmem:[#allocation8 + $0x520] sm:$0xff]   ;;  %v9728_v5 = vld [vmem:[#allocation8 + $0x4e8] sm:$0xff]  }
 0x228   :  { %8613 = vmatprep.subr.bf16.mxu1 %v10212_v0  ;;  %8633 = vmatprep.subr.bf16.mxu0 %v10212_v0 }
 0x229   :  { %8627 = vmatprep.mubr.msk.bf16.mxu1 %vm10213_vm0, %v10212_v0  ;;  %8647 = vmatprep.mubr.msk.bf16.mxu0 %vm10213_vm0, %v10212_v0 }
 0x22b   :  { %8614 = vmatpush3.bf16.msra.mxu1 %v9704_v20  ;;  %8634 = vmatpush3.bf16.msra.mxu0 %v9705_v24 }
 0x22c   :  { %8615 = vmatprep.subr.bf16.mxu1 %v10212_v0  ;;  %8635 = vmatprep.subr.bf16.mxu0 %v10212_v0 }
 0x22f   :  { %8616 = vmatpush3.bf16.msra.mxu1 %v9706_v13  ;;  %8636 = vmatpush3.bf16.msra.mxu0 %v9707_v27 }
 0x230   :  { %8617 = vmatprep.subr.bf16.mxu1 %v10212_v0  ;;  %8637 = vmatprep.subr.bf16.mxu0 %v10212_v0 }
 0x233   :  { %8618 = vmatpush3.bf16.msra.mxu1 %v9708_v30  ;;  %8638 = vmatpush3.bf16.msra.mxu0 %v9709_v49 }
 0x234   :  { %8619 = vmatprep.subr.bf16.mxu1 %v10212_v0  ;;  %8639 = vmatprep.subr.bf16.mxu0 %v10212_v0 }
 0x237   :  { %8620 = vmatpush3.bf16.msra.mxu1 %v9710_v11  ;;  %8640 = vmatpush3.bf16.msra.mxu0 %v9711_v12  ;;  %v9730_v11 = vld [vmem:[#allocation8 + $0x4f0] sm:$0xff]  }
 0x238   :  { %8621 = vmatprep.subr.bf16.mxu1 %v10212_v0  ;;  %8641 = vmatprep.subr.bf16.mxu0 %v10212_v0  ;;  %v9731_v12 = vld [vmem:[#allocation8 + $0x530] sm:$0xff]  }
 0x239   :  { %v508_v25 = vpop.f32.mrb[4].mxu1  ;;  %v679_v22 = vpop.f32.mrb[8].mxu0 }
 0x23a   :  { %v515_v26 = vadd.f32 %v508_v25, %v10685_v55  ;;  %v8349_v17 = vpop.f32.mrb[5].mxu1  ;;  %v8369_v35 = vpop.f32.mrb[9].mxu0  ;;  %v9716_v55 = vld [vmem:[#allocation8 + $0x478] sm:$0xff]  }
 0x23b   :  { %v511_v39 = vpop.f32.mrb[6].mxu1  ;;  %v682_v42 = vpop.f32.mrb[10].mxu0  ;;  %8622 = vmatpush3.bf16.msra.mxu1 %v9712_v16  ;;  %8642 = vmatpush3.bf16.msra.mxu0 %v9713_v21  ;;  %v9732_v17 = vld [vmem:[#allocation8 + $0x4f8] sm:$0xff]  }
 0x23c   :  { %v686_v60 = vadd.f32 %v679_v22, %v515_v26  ;;  %v516_v61 = vadd.f32 %v511_v39, %v10687_v7  ;;  %v8350_v2 = vpop.f32.mrb[7].mxu1  ;;  %v8370_v62 = vpop.f32.mrb[11].mxu0  ;;  %8623 = vmatprep.subr.bf16.mxu1 %v10212_v0  ;;  %8643 = vmatprep.subr.bf16.mxu0 %v10212_v0  ;;  %v9720_v7 = vld [vmem:[#allocation8 + $0x4c8] sm:$0xff]   ;;  %v9733_v35 = vld [vmem:[#allocation8 + $0x538] sm:$0xff]   ;;  %v9734_v39 = vld [vmem:[#allocation8 + $0x540] sm:$0xff]  }
 0x23d   :  { %v9739_v2 = vld [vmem:[#allocation8 + $0x590] sm:$0xff]   ;;  %v9740_v62 = vld [vmem:[#allocation8 + $0x558] sm:$0xff]  }
 0x23e   :  { %v687_v3 = vadd.f32 %v682_v42, %v516_v61  ;;  %v9735_v42 = vld [vmem:[#allocation8 + $0x580] sm:$0xff]   ;;  %v9737_v61 = vld [vmem:[#allocation8 + $0x588] sm:$0xff]  }
 0x23f   :  { %8624 = vmatpush3.bf16.msra.mxu1 %v9714_v47  ;;  %8644 = vmatpush3.bf16.msra.mxu0 %v9715_v50  ;;  %v2207_v47 = vpack.c.bf16 %v10381_v1, %v10462_v29  ;;  %v2376_v50 = vpack.c.bf16 %v10475_v34, %v10400_v10  ;;  %v9738_v29 = vld [vmem:[#allocation8 + $0x550] sm:$0xff]  }
 0x240   :  { %8625 = vmatprep.subr.bf16.mxu1 %v10212_v0  ;;  %8645 = vmatprep.subr.bf16.mxu0 %v10212_v0  ;;  %v9754_v34 = vld [vmem:[#allocation8 + $0x5d0] sm:$0xff]  }
 0x243   :  { %8626 = vmatpush3.bf16.msra.mxu1 %v9716_v55  ;;  %8646 = vmatpush3.bf16.msra.mxu0 %v9717_v6  ;;  %v9742_v55 = vld [vmem:[#allocation8 + $0x560] sm:$0xff]  }
 0x244   :  { %8651 = vmatprep.subr.bf16.mxu1 %v10212_v0  ;;  %8671 = vmatprep.subr.bf16.mxu0 %v10212_v0  ;;  %v9743_v6 = vld [vmem:[#allocation8 + $0x5a0] sm:$0xff]  }
 0x246   :  { %8628 = vmatmul.mubr.bf16.vlgmr.msra.gmra.mrb[32].mxu1 %v2023_v32  ;;  %8648 = vmatmul.mubr.bf16.vlgmr.msra.gmra.mrb[36].mxu0 %v2115_v33  ;;  %v9723_v32 = vld [vmem:[#allocation8 + $0x510] sm:$0xff]   ;;  %v9725_v33 = vld [vmem:[#allocation8 + $0x518] sm:$0xff]  }
 0x247   :  { %8652 = vmatpush3.bf16.msra.mxu1 %v9718_v63  ;;  %8672 = vmatpush3.bf16.msra.mxu0 %v9719_v14  ;;  %v9744_v63 = vld [vmem:[#allocation8 + $0x568] sm:$0xff]  }
 0x248   :  { %8653 = vmatprep.subr.bf16.mxu1 %v10212_v0  ;;  %8673 = vmatprep.subr.bf16.mxu0 %v10212_v0  ;;  %v9745_v14 = vld [vmem:[#allocation8 + $0x5a8] sm:$0xff]  }
 0x249   :  { %8667 = vmatprep.mubr.msk.bf16.mxu1 %vm10213_vm0, %v10212_v0  ;;  %8687 = vmatprep.mubr.msk.bf16.mxu0 %vm10213_vm0, %v10212_v0 }
 0x24b   :  { %8654 = vmatpush3.bf16.msra.mxu1 %v9720_v7  ;;  %8674 = vmatpush3.bf16.msra.mxu0 %v9721_v15 }
 0x24c   :  { %8655 = vmatprep.subr.bf16.mxu1 %v10212_v0  ;;  %8675 = vmatprep.subr.bf16.mxu0 %v10212_v0 }
 0x24f   :  { %8656 = vmatpush3.bf16.msra.mxu1 %v9722_v23  ;;  %8676 = vmatpush3.bf16.msra.mxu0 %v9723_v32 }
 0x250   :  { %8657 = vmatprep.subr.bf16.mxu1 %v10212_v0  ;;  %8677 = vmatprep.subr.bf16.mxu0 %v10212_v0 }
 0x253   :  { %8658 = vmatpush3.bf16.msra.mxu1 %v9724_v28  ;;  %8678 = vmatpush3.bf16.msra.mxu0 %v9725_v33 }
 0x254   :  { %8659 = vmatprep.subr.bf16.mxu1 %v10212_v0  ;;  %8679 = vmatprep.subr.bf16.mxu0 %v10212_v0 }
 0x257   :  { %8660 = vmatpush3.bf16.msra.mxu1 %v9726_v18  ;;  %8680 = vmatpush3.bf16.msra.mxu0 %v9727_v4  ;;  %v9746_v4 = vld [vmem:[#allocation8 + $0x570] sm:$0xff]  }
 0x258   :  { %8661 = vmatprep.subr.bf16.mxu1 %v10212_v0  ;;  %8681 = vmatprep.subr.bf16.mxu0 %v10212_v0 }
 0x259   :  { %v771_v9 = vpop.f32.mrb[8].mxu1  ;;  %v863_v20 = vpop.f32.mrb[12].mxu0 }
 0x25a   :  { %v778_v24 = vadd.f32 %v771_v9, %v686_v60  ;;  %v8389_v13 = vpop.f32.mrb[9].mxu1  ;;  %v8409_v27 = vpop.f32.mrb[13].mxu0  ;;  %v9736_v60 = vld [vmem:[#allocation8 + $0x548] sm:$0xff]  }
 0x25b   :  { %v774_v30 = vpop.f32.mrb[10].mxu1  ;;  %v866_v49 = vpop.f32.mrb[14].mxu0  ;;  %8662 = vmatpush3.bf16.msra.mxu1 %v9728_v5  ;;  %8682 = vmatpush3.bf16.msra.mxu0 %v9729_v8  ;;  %v9747_v5 = vld [vmem:[#allocation8 + $0x5b0] sm:$0xff]   ;;  %v9748_v27 = vld [vmem:[#allocation8 + $0x578] sm:$0xff]  }
 0x25c   :  { %v870_v16 = vadd.f32 %v863_v20, %v778_v24  ;;  %v779_v21 = vadd.f32 %v774_v30, %v687_v3  ;;  %v8390_v25 = vpop.f32.mrb[11].mxu1  ;;  %v8410_v22 = vpop.f32.mrb[15].mxu0  ;;  %8663 = vmatprep.subr.bf16.mxu1 %v10212_v0  ;;  %8683 = vmatprep.subr.bf16.mxu0 %v10212_v0  ;;  %v9741_v3 = vld [vmem:[#allocation8 + $0x598] sm:$0xff]  }
 0x25d   :  { %v9749_v30 = vld [vmem:[#allocation8 + $0x5b8] sm:$0xff]   ;;  %v9759_v25 = vld [vmem:[#allocation8 + $0x620] sm:$0xff]   ;;  %v9760_v22 = vld [vmem:[#allocation8 + $0x5e8] sm:$0xff]  }
 0x25e   :  { %v871_v26 = vadd.f32 %v866_v49, %v779_v21  ;;  %v9750_v49 = vld [vmem:[#allocation8 + $0x5c0] sm:$0xff]  }
 0x25f   :  { %8664 = vmatpush3.bf16.msra.mxu1 %v9730_v11  ;;  %8684 = vmatpush3.bf16.msra.mxu0 %v9731_v12  ;;  %v9751_v11 = vld [vmem:[#allocation8 + $0x600] sm:$0xff]   ;;  %v9752_v12 = vld [vmem:[#allocation8 + $0x5c8] sm:$0xff]  }
 0x260   :  { %8665 = vmatprep.subr.bf16.mxu1 %v10212_v0  ;;  %8685 = vmatprep.subr.bf16.mxu0 %v10212_v0  ;;  %v9758_v21 = vld [vmem:[#allocation8 + $0x5e0] sm:$0xff]  }
 0x263   :  { %8666 = vmatpush3.bf16.msra.mxu1 %v9732_v17  ;;  %8686 = vmatpush3.bf16.msra.mxu0 %v9733_v35 }
 0x264   :  { %8691 = vmatprep.subr.bf16.mxu1 %v10212_v0  ;;  %8711 = vmatprep.subr.bf16.mxu0 %v10212_v0 }
 0x266   :  { %8668 = vmatmul.mubr.bf16.vlgmr.msra.gmra.mrb[36].mxu1 %v2207_v47  ;;  %8688 = vmatmul.mubr.bf16.vlgmr.msra.gmra.mrb[40].mxu0 %v2376_v50 }
 0x267   :  { %8692 = vmatpush3.bf16.msra.mxu1 %v9734_v39  ;;  %8712 = vmatpush3.bf16.msra.mxu0 %v9735_v42 }
 0x268   :  { %8693 = vmatprep.subr.bf16.mxu1 %v10212_v0  ;;  %8713 = vmatprep.subr.bf16.mxu0 %v10212_v0 }
 0x269   :  { %8707 = vmatprep.mubr.msk.bf16.mxu1 %vm10213_vm0, %v10212_v0  ;;  %8727 = vmatprep.mubr.msk.bf16.mxu0 %vm10213_vm0, %v10212_v0 }
 0x26b   :  { %8694 = vmatpush3.bf16.msra.mxu1 %v9736_v60  ;;  %8714 = vmatpush3.bf16.msra.mxu0 %v9737_v61  ;;  %v9762_v61 = vld [vmem:[#allocation8 + $0x5f0] sm:$0xff]  }
 0x26c   :  { %8695 = vmatprep.subr.bf16.mxu1 %v10212_v0  ;;  %8715 = vmatprep.subr.bf16.mxu0 %v10212_v0 }
 0x26f   :  { %8696 = vmatpush3.bf16.msra.mxu1 %v9738_v29  ;;  %8716 = vmatpush3.bf16.msra.mxu0 %v9739_v2  ;;  %v9763_v29 = vld [vmem:[#allocation8 + $0x630] sm:$0xff]  }
 0x270   :  { %8697 = vmatprep.subr.bf16.mxu1 %v10212_v0  ;;  %8717 = vmatprep.subr.bf16.mxu0 %v10212_v0 }
 0x273   :  { %8698 = vmatpush3.bf16.msra.mxu1 %v9740_v62  ;;  %8718 = vmatpush3.bf16.msra.mxu0 %v9741_v3 }
 0x274   :  { %8699 = vmatprep.subr.bf16.mxu1 %v10212_v0  ;;  %8719 = vmatprep.subr.bf16.mxu0 %v10212_v0 }
 0x277   :  { %8700 = vmatpush3.bf16.msra.mxu1 %v9742_v55  ;;  %8720 = vmatpush3.bf16.msra.mxu0 %v9743_v6 }
 0x278   :  { %8701 = vmatprep.subr.bf16.mxu1 %v10212_v0  ;;  %8721 = vmatprep.subr.bf16.mxu0 %v10212_v0 }
 0x279   :  { %v955_v7 = vpop.f32.mrb[12].mxu1  ;;  %v1124_v15 = vpop.f32.mrb[16].mxu0 }
 0x27a   :  { %v962_v23 = vadd.f32 %v955_v7, %v870_v16  ;;  %v8429_v32 = vpop.f32.mrb[13].mxu1  ;;  %v8449_v28 = vpop.f32.mrb[17].mxu0  ;;  %v9753_v16 = vld [vmem:[#allocation8 + $0x608] sm:$0xff]   ;;  %v9766_v7 = vld [vmem:[#allocation8 + $0x640] sm:$0xff]  }
 0x27b   :  { %v958_v33 = vpop.f32.mrb[14].mxu1  ;;  %v1127_v18 = vpop.f32.mrb[18].mxu0  ;;  %8702 = vmatpush3.bf16.msra.mxu1 %v9744_v63  ;;  %8722 = vmatpush3.bf16.msra.mxu0 %v9745_v14  ;;  %v9764_v63 = vld [vmem:[#allocation8 + $0x5f8] sm:$0xff]   ;;  %v2821_v32 = vpack.c.bf16 %v10489_v38, %v10430_v19  ;;  %v9768_v28 = vld [vmem:[#allocation8 + $0x648] sm:$0xff]   ;;  %v9786_v38 = vld [vmem:[#allocation8 + $0x6d0] sm:$0xff]  }
 0x27c   :  { %v1131_v8 = vadd.f32 %v1124_v15, %v962_v23  ;;  %v963_v9 = vadd.f32 %v958_v33, %v871_v26  ;;  %v8430_v20 = vpop.f32.mrb[15].mxu1  ;;  %v8450_v24 = vpop.f32.mrb[19].mxu0  ;;  %8703 = vmatprep.subr.bf16.mxu1 %v10212_v0  ;;  %8723 = vmatprep.subr.bf16.mxu0 %v10212_v0  ;;  %v9761_v26 = vld [vmem:[#allocation8 + $0x628] sm:$0xff]   ;;  %v9765_v14 = vld [vmem:[#allocation8 + $0x638] sm:$0xff]   ;;  %v9767_v15 = vld [vmem:[#allocation8 + $0x680] sm:$0xff]   ;;  %v2652_v23 = vpack.c.bf16 %v10400_v10, %v10484_v37 }
 0x27d   :  { %v9769_v33 = vld [vmem:[#allocation8 + $0x688] sm:$0xff]   ;;  %v9770_v37 = vld [vmem:[#allocation8 + $0x650] sm:$0xff]  }
 0x27e   :  { %v1132_v13 = vadd.f32 %v1127_v18, %v963_v9  ;;  %v9771_v18 = vld [vmem:[#allocation8 + $0x690] sm:$0xff]   ;;  %v9775_v9 = vld [vmem:[#allocation8 + $0x6a0] sm:$0xff]   ;;  %v9776_v20 = vld [vmem:[#allocation8 + $0x668] sm:$0xff]  }
 0x27f   :  { %8704 = vmatpush3.bf16.msra.mxu1 %v9746_v4  ;;  %8724 = vmatpush3.bf16.msra.mxu0 %v9747_v5  ;;  %v9772_v4 = vld [vmem:[#allocation8 + $0x658] sm:$0xff]   ;;  %v9777_v24 = vld [vmem:[#allocation8 + $0x6a8] sm:$0xff]  }
 0x280   :  { %8705 = vmatprep.subr.bf16.mxu1 %v10212_v0  ;;  %8725 = vmatprep.subr.bf16.mxu0 %v10212_v0  ;;  %v9773_v5 = vld [vmem:[#allocation8 + $0x698] sm:$0xff]  }
 0x283   :  { %8706 = vmatpush3.bf16.msra.mxu1 %v9748_v27  ;;  %8726 = vmatpush3.bf16.msra.mxu0 %v9749_v30 }
 0x284   :  { %8731 = vmatprep.subr.bf16.mxu1 %v10212_v0  ;;  %8751 = vmatprep.subr.bf16.mxu0 %v10212_v0 }
 0x286   :  { %8708 = vmatmul.mubr.bf16.vlgmr.msra.gmra.mrb[40].mxu1 %v2468_v40  ;;  %8728 = vmatmul.mubr.bf16.vlgmr.msra.gmra.mrb[44].mxu0 %v2560_v41  ;;  %v9755_v40 = vld [vmem:[#allocation8 + $0x610] sm:$0xff]   ;;  %v9757_v41 = vld [vmem:[#allocation8 + $0x618] sm:$0xff]  }
 0x287   :  { %8732 = vmatpush3.bf16.msra.mxu1 %v9750_v49  ;;  %8752 = vmatpush3.bf16.msra.mxu0 %v9751_v11 }
 0x288   :  { %8733 = vmatprep.subr.bf16.mxu1 %v10212_v0  ;;  %8753 = vmatprep.subr.bf16.mxu0 %v10212_v0 }
 0x289   :  { %8747 = vmatprep.mubr.msk.bf16.mxu1 %vm10213_vm0, %v10212_v0  ;;  %8767 = vmatprep.mubr.msk.bf16.mxu0 %vm10213_vm0, %v10212_v0 }
 0x28b   :  { %8734 = vmatpush3.bf16.msra.mxu1 %v9752_v12  ;;  %8754 = vmatpush3.bf16.msra.mxu0 %v9753_v16 }
 0x28c   :  { %8735 = vmatprep.subr.bf16.mxu1 %v10212_v0  ;;  %8755 = vmatprep.subr.bf16.mxu0 %v10212_v0 }
 0x28f   :  { %8736 = vmatpush3.bf16.msra.mxu1 %v9754_v34  ;;  %8756 = vmatpush3.bf16.msra.mxu0 %v9755_v40  ;;  %v9778_v34 = vld [vmem:[#allocation8 + $0x670] sm:$0xff]  }
 0x290   :  { %8737 = vmatprep.subr.bf16.mxu1 %v10212_v0  ;;  %8757 = vmatprep.subr.bf16.mxu0 %v10212_v0  ;;  %v9779_v40 = vld [vmem:[#allocation8 + $0x6b0] sm:$0xff]  }
 0x293   :  { %8738 = vmatpush3.bf16.msra.mxu1 %v9756_v36  ;;  %8758 = vmatpush3.bf16.msra.mxu0 %v9757_v41 }
 0x294   :  { %8739 = vmatprep.subr.bf16.mxu1 %v10212_v0  ;;  %8759 = vmatprep.subr.bf16.mxu0 %v10212_v0 }
 0x297   :  { %8740 = vmatpush3.bf16.msra.mxu1 %v9758_v21  ;;  %8760 = vmatpush3.bf16.msra.mxu0 %v9759_v25 }
 0x298   :  { %8741 = vmatprep.subr.bf16.mxu1 %v10212_v0  ;;  %8761 = vmatprep.subr.bf16.mxu0 %v10212_v0 }
 0x299   :  { %v1216_v17 = vpop.f32.mrb[16].mxu1  ;;  %v1308_v35 = vpop.f32.mrb[20].mxu0 }
 0x29a   :  { %v1223_v39 = vadd.f32 %v1216_v17, %v1131_v8  ;;  %v8469_v42 = vpop.f32.mrb[17].mxu1  ;;  %v8489_v47 = vpop.f32.mrb[21].mxu0  ;;  %v9774_v8 = vld [vmem:[#allocation8 + $0x660] sm:$0xff]   ;;  %v9781_v17 = vld [vmem:[#allocation8 + $0x6b8] sm:$0xff]  }
 0x29b   :  { %v1219_v50 = vpop.f32.mrb[18].mxu1  ;;  %v1311_v60 = vpop.f32.mrb[22].mxu0  ;;  %8742 = vmatpush3.bf16.msra.mxu1 %v9760_v22  ;;  %8762 = vmatpush3.bf16.msra.mxu0 %v9761_v26  ;;  %v9780_v26 = vld [vmem:[#allocation8 + $0x678] sm:$0xff]   ;;  %v9784_v42 = vld [vmem:[#allocation8 + $0x6c8] sm:$0xff]  }
 0x29c   :  { %v1315_v2 = vadd.f32 %v1308_v35, %v1223_v39  ;;  %v1224_v62 = vadd.f32 %v1219_v50, %v1132_v13  ;;  %v8470_v3 = vpop.f32.mrb[19].mxu1  ;;  %v8490_v55 = vpop.f32.mrb[23].mxu0  ;;  %8743 = vmatprep.subr.bf16.mxu1 %v10212_v0  ;;  %8763 = vmatprep.subr.bf16.mxu0 %v10212_v0  ;;  %v9782_v35 = vld [vmem:[#allocation8 + $0x6c0] sm:$0xff]   ;;  %v9785_v47 = vld [vmem:[#allocation8 + $0x708] sm:$0xff]  }
 0x29d   :  { %v9783_v39 = vld [vmem:[#allocation8 + $0x700] sm:$0xff]  }
 0x29e   :  { %v1316_v6 = vadd.f32 %v1311_v60, %v1224_v62  ;;  %v9790_v50 = vld [vmem:[#allocation8 + $0x6e0] sm:$0xff]  }
 0x29f   :  { %8744 = vmatpush3.bf16.msra.mxu1 %v9762_v61  ;;  %8764 = vmatpush3.bf16.msra.mxu0 %v9763_v29  ;;  %v9791_v60 = vld [vmem:[#allocation8 + $0x720] sm:$0xff]   ;;  %v9792_v61 = vld [vmem:[#allocation8 + $0x6e8] sm:$0xff]  }
 0x2a0   :  { %8745 = vmatprep.subr.bf16.mxu1 %v10212_v0  ;;  %8765 = vmatprep.subr.bf16.mxu0 %v10212_v0  ;;  %v9793_v29 = vld [vmem:[#allocation8 + $0x728] sm:$0xff]  }
 0x2a3   :  { %8746 = vmatpush3.bf16.msra.mxu1 %v9764_v63  ;;  %8766 = vmatpush3.bf16.msra.mxu0 %v9765_v14 }
 0x2a4   :  { %8771 = vmatprep.subr.bf16.mxu1 %v10212_v0  ;;  %8791 = vmatprep.subr.bf16.mxu0 %v10212_v0 }
 0x2a6   :  { %8748 = vmatmul.mubr.bf16.vlgmr.msra.gmra.mrb[44].mxu1 %v2652_v23  ;;  %8768 = vmatmul.mubr.bf16.vlgmr.msra.gmra.mrb[48].mxu0 %v2821_v32 }
 0x2a7   :  { %8772 = vmatpush3.bf16.msra.mxu1 %v9766_v7  ;;  %8792 = vmatpush3.bf16.msra.mxu0 %v9767_v15  ;;  %v9794_v7 = vld [vmem:[#allocation8 + $0x6f0] sm:$0xff]  }
 0x2a8   :  { %8773 = vmatprep.subr.bf16.mxu1 %v10212_v0  ;;  %8793 = vmatprep.subr.bf16.mxu0 %v10212_v0  ;;  %v9795_v15 = vld [vmem:[#allocation8 + $0x730] sm:$0xff]  }
 0x2a9   :  { %8787 = vmatprep.mubr.msk.bf16.mxu1 %vm10213_vm0, %v10212_v0  ;;  %8807 = vmatprep.mubr.msk.bf16.mxu0 %vm10213_vm0, %v10212_v0 }
 0x2ab   :  { %8774 = vmatpush3.bf16.msra.mxu1 %v9768_v28  ;;  %8794 = vmatpush3.bf16.msra.mxu0 %v9769_v33 }
 0x2ac   :  { %8775 = vmatprep.subr.bf16.mxu1 %v10212_v0  ;;  %8795 = vmatprep.subr.bf16.mxu0 %v10212_v0 }
 0x2af   :  { %8776 = vmatpush3.bf16.msra.mxu1 %v9770_v37  ;;  %8796 = vmatpush3.bf16.msra.mxu0 %v9771_v18  ;;  %v9796_v18 = vld [vmem:[#allocation8 + $0x6f8] sm:$0xff]  }
 0x2b0   :  { %8777 = vmatprep.subr.bf16.mxu1 %v10212_v0  ;;  %8797 = vmatprep.subr.bf16.mxu0 %v10212_v0 }
 0x2b3   :  { %8778 = vmatpush3.bf16.msra.mxu1 %v9772_v4  ;;  %8798 = vmatpush3.bf16.msra.mxu0 %v9773_v5  ;;  %v9797_v4 = vld [vmem:[#allocation8 + $0x738] sm:$0xff]   ;;  %v9798_v5 = vld [vmem:[#allocation8 + $0x740] sm:$0xff]  }
 0x2b4   :  { %8779 = vmatprep.subr.bf16.mxu1 %v10212_v0  ;;  %8799 = vmatprep.subr.bf16.mxu0 %v10212_v0 }
 0x2b7   :  { %8780 = vmatpush3.bf16.msra.mxu1 %v9774_v8  ;;  %8800 = vmatpush3.bf16.msra.mxu0 %v9775_v9  ;;  %v9799_v8 = vld [vmem:[#allocation8 + $0x780] sm:$0xff]   ;;  %v3097_v9 = vpack.c.bf16 %v10430_v19, %v10506_v44  ;;  %v9802_v44 = vld [vmem:[#allocation8 + $0x750] sm:$0xff]  }
 0x2b8   :  { %8781 = vmatprep.subr.bf16.mxu1 %v10212_v0  ;;  %8801 = vmatprep.subr.bf16.mxu0 %v10212_v0 }
 0x2b9   :  { %v1400_v13 = vpop.f32.mrb[20].mxu1  ;;  %v1569_v27 = vpop.f32.mrb[24].mxu0 }
 0x2ba   :  { %v1407_v30 = vadd.f32 %v1400_v13, %v1315_v2  ;;  %v8509_v49 = vpop.f32.mrb[21].mxu1  ;;  %v8529_v11 = vpop.f32.mrb[25].mxu0  ;;  %v9801_v13 = vld [vmem:[#allocation8 + $0x788] sm:$0xff]  }
 0x2bb   :  { %v1403_v12 = vpop.f32.mrb[22].mxu1  ;;  %v1572_v16 = vpop.f32.mrb[26].mxu0  ;;  %8782 = vmatpush3.bf16.msra.mxu1 %v9776_v20  ;;  %8802 = vmatpush3.bf16.msra.mxu0 %v9777_v24  ;;  %v3266_v20 = vpack.c.bf16 %v10516_v53, %v10466_v31  ;;  %v9800_v24 = vld [vmem:[#allocation8 + $0x748] sm:$0xff]   ;;  %v9805_v49 = vld [vmem:[#allocation8 + $0x798] sm:$0xff]   ;;  %v9806_v11 = vld [vmem:[#allocation8 + $0x760] sm:$0xff]  }
 0x2bc   :  { %v1576_v36 = vadd.f32 %v1569_v27, %v1407_v30  ;;  %v1408_v41 = vadd.f32 %v1403_v12, %v1316_v6  ;;  %v8510_v21 = vpop.f32.mrb[23].mxu1  ;;  %v8530_v25 = vpop.f32.mrb[27].mxu0  ;;  %8783 = vmatprep.subr.bf16.mxu1 %v10212_v0  ;;  %8803 = vmatprep.subr.bf16.mxu0 %v10212_v0  ;;  %v9803_v27 = vld [vmem:[#allocation8 + $0x790] sm:$0xff]   ;;  %v9804_v30 = vld [vmem:[#allocation8 + $0x758] sm:$0xff]   ;;  %v9807_v12 = vld [vmem:[#allocation8 + $0x7a0] sm:$0xff]  }
 0x2bd   :  { %v9817_v53 = vld [vmem:[#allocation8 + $0x7d8] sm:$0xff]  }
 0x2be   :  { %v1577_v22 = vadd.f32 %v1572_v16, %v1408_v41  ;;  %v9808_v16 = vld [vmem:[#allocation8 + $0x768] sm:$0xff]  }
 0x2bf   :  { %8784 = vmatpush3.bf16.msra.mxu1 %v9778_v34  ;;  %8804 = vmatpush3.bf16.msra.mxu0 %v9779_v40  ;;  %v9809_v34 = vld [vmem:[#allocation8 + $0x7a8] sm:$0xff]  }
 0x2c0   :  { %8785 = vmatprep.subr.bf16.mxu1 %v10212_v0  ;;  %8805 = vmatprep.subr.bf16.mxu0 %v10212_v0 }
 0x2c3   :  { %8786 = vmatpush3.bf16.msra.mxu1 %v9780_v26  ;;  %8806 = vmatpush3.bf16.msra.mxu0 %v9781_v17  ;;  %v9810_v17 = vld [vmem:[#allocation8 + $0x770] sm:$0xff]  }
 0x2c4   :  { %8811 = vmatprep.subr.bf16.mxu1 %v10212_v0  ;;  %8831 = vmatprep.subr.bf16.mxu0 %v10212_v0 }
 0x2c6   :  { %8788 = vmatmul.mubr.bf16.vlgmr.msra.gmra.mrb[48].mxu1 %v2913_v51  ;;  %8808 = vmatmul.mubr.bf16.vlgmr.msra.gmra.mrb[52].mxu0 %v3005_v52  ;;  %v9787_v51 = vld [vmem:[#allocation8 + $0x710] sm:$0xff]   ;;  %v9789_v52 = vld [vmem:[#allocation8 + $0x718] sm:$0xff]  }
 0x2c7   :  { %8812 = vmatpush3.bf16.msra.mxu1 %v9782_v35  ;;  %8832 = vmatpush3.bf16.msra.mxu0 %v9783_v39  ;;  %v9811_v35 = vld [vmem:[#allocation8 + $0x7b0] sm:$0xff]  }
 0x2c8   :  { %8813 = vmatprep.subr.bf16.mxu1 %v10212_v0  ;;  %8833 = vmatprep.subr.bf16.mxu0 %v10212_v0 }
 0x2c9   :  { %8827 = vmatprep.mubr.msk.bf16.mxu1 %vm10213_vm0, %v10212_v0  ;;  %8847 = vmatprep.mubr.msk.bf16.mxu0 %vm10213_vm0, %v10212_v0 }
 0x2cb   :  { %8814 = vmatpush3.bf16.msra.mxu1 %v9784_v42  ;;  %8834 = vmatpush3.bf16.msra.mxu0 %v9785_v47 }
 0x2cc   :  { %8815 = vmatprep.subr.bf16.mxu1 %v10212_v0  ;;  %8835 = vmatprep.subr.bf16.mxu0 %v10212_v0 }
 0x2cf   :  { %8816 = vmatpush3.bf16.msra.mxu1 %v9786_v38  ;;  %8836 = vmatpush3.bf16.msra.mxu0 %v9787_v51 }
 0x2d0   :  { %8817 = vmatprep.subr.bf16.mxu1 %v10212_v0  ;;  %8837 = vmatprep.subr.bf16.mxu0 %v10212_v0 }
 0x2d3   :  { %8818 = vmatpush3.bf16.msra.mxu1 %v9788_v43  ;;  %8838 = vmatpush3.bf16.msra.mxu0 %v9789_v52  ;;  %v9812_v43 = vld [vmem:[#allocation8 + $0x778] sm:$0xff]  }
 0x2d4   :  { %8819 = vmatprep.subr.bf16.mxu1 %v10212_v0  ;;  %8839 = vmatprep.subr.bf16.mxu0 %v10212_v0  ;;  %v9813_v52 = vld [vmem:[#allocation8 + $0x7b8] sm:$0xff]  }
 0x2d7   :  { %8820 = vmatpush3.bf16.msra.mxu1 %v9790_v50  ;;  %8840 = vmatpush3.bf16.msra.mxu0 %v9791_v60  ;;  %v9814_v50 = vld [vmem:[#allocation8 + $0x7c0] sm:$0xff]   ;;  %v9815_v60 = vld [vmem:[#allocation8 + $0x7c8] sm:$0xff]  }
 0x2d8   :  { %8821 = vmatprep.subr.bf16.mxu1 %v10212_v0  ;;  %8841 = vmatprep.subr.bf16.mxu0 %v10212_v0 }
 0x2d9   :  { %v1661_v2 = vpop.f32.mrb[24].mxu1  ;;  %v1753_v62 = vpop.f32.mrb[28].mxu0 }
 0x2da   :  { %v1668_v3 = vadd.f32 %v1661_v2, %v1576_v36  ;;  %v8549_v55 = vpop.f32.mrb[25].mxu1  ;;  %v8569_v6 = vpop.f32.mrb[29].mxu0 }
 0x2db   :  { %v1664_v63 = vpop.f32.mrb[26].mxu1  ;;  %v1756_v14 = vpop.f32.mrb[30].mxu0  ;;  %8822 = vmatpush3.bf16.msra.mxu1 %v9792_v61  ;;  %8842 = vmatpush3.bf16.msra.mxu0 %v9793_v29  ;;  %v9816_v61 = vld [vmem:[#allocation8 + $0x7d0] sm:$0xff]  }
 0x2dc   :  { %v1760_v23 = vadd.f32 %v1753_v62, %v1668_v3  ;;  %v1669_v32 = vadd.f32 %v1664_v63, %v1577_v22  ;;  %v8550_v28 = vpop.f32.mrb[27].mxu1  ;;  %v8570_v33 = vpop.f32.mrb[31].mxu0  ;;  %8823 = vmatprep.subr.bf16.mxu1 %v10212_v0  ;;  %8843 = vmatprep.subr.bf16.mxu0 %v10212_v0  ;;  %v9820_v63 = vld [vmem:[#allocation8 + $0x7f0] sm:$0xff]  }
 0x2dd   :  { %v9821_v28 = vld [vmem:[#allocation8 + $0x7f8] sm:$0xff]   ;;  %v3542_v33 = vpack.c.bf16 %v10466_v31, %v10525_v57 }
 0x2de   :  { %v1761_v37 = vadd.f32 %v1756_v14, %v1669_v32 }
 0x2df   :  { %8824 = vmatpush3.bf16.msra.mxu1 %v9794_v7  ;;  %8844 = vmatpush3.bf16.msra.mxu0 %v9795_v15 }
 0x2e0   :  { %8825 = vmatprep.subr.bf16.mxu1 %v10212_v0  ;;  %8845 = vmatprep.subr.bf16.mxu0 %v10212_v0 }
 0x2e3   :  { %8826 = vmatpush3.bf16.msra.mxu1 %v9796_v18  ;;  %8846 = vmatpush3.bf16.msra.mxu0 %v9797_v4 }
 0x2e4   :  { %8851 = vmatprep.subr.bf16.mxu1 %v10212_v0  ;;  %8871 = vmatprep.subr.bf16.mxu0 %v10212_v0 }
 0x2e6   :  { %8828 = vmatmul.mubr.bf16.vlgmr.msra.gmra.mrb[52].mxu1 %v3097_v9  ;;  %8848 = vmatmul.mubr.bf16.vlgmr.msra.gmra.mrb[56].mxu0 %v3266_v20 }
 0x2e7   :  { %8852 = vmatpush3.bf16.msra.mxu1 %v9798_v5  ;;  %8872 = vmatpush3.bf16.msra.mxu0 %v9799_v8 }
 0x2e8   :  { %8853 = vmatprep.subr.bf16.mxu1 %v10212_v0  ;;  %8873 = vmatprep.subr.bf16.mxu0 %v10212_v0 }
 0x2e9   :  { %8867 = vmatprep.mubr.msk.bf16.mxu1 %vm10213_vm0, %v10212_v0  ;;  %8887 = vmatprep.mubr.msk.bf16.mxu0 %vm10213_vm0, %v10212_v0 }
 0x2eb   :  { %8854 = vmatpush3.bf16.msra.mxu1 %v9800_v24  ;;  %8874 = vmatpush3.bf16.msra.mxu0 %v9801_v13 }
 0x2ec   :  { %8855 = vmatprep.subr.bf16.mxu1 %v10212_v0  ;;  %8875 = vmatprep.subr.bf16.mxu0 %v10212_v0 }
 0x2ef   :  { %8856 = vmatpush3.bf16.msra.mxu1 %v9802_v44  ;;  %8876 = vmatpush3.bf16.msra.mxu0 %v9803_v27 }
 0x2f0   :  { %8857 = vmatprep.subr.bf16.mxu1 %v10212_v0  ;;  %8877 = vmatprep.subr.bf16.mxu0 %v10212_v0 }
 0x2f3   :  { %8858 = vmatpush3.bf16.msra.mxu1 %v9804_v30  ;;  %8878 = vmatpush3.bf16.msra.mxu0 %v9805_v49 }
 0x2f4   :  { %8859 = vmatprep.subr.bf16.mxu1 %v10212_v0  ;;  %8879 = vmatprep.subr.bf16.mxu0 %v10212_v0 }
 0x2f7   :  { %8860 = vmatpush3.bf16.msra.mxu1 %v9806_v11  ;;  %8880 = vmatpush3.bf16.msra.mxu0 %v9807_v12 }
 0x2f8   :  { %8861 = vmatprep.subr.bf16.mxu1 %v10212_v0  ;;  %8881 = vmatprep.subr.bf16.mxu0 %v10212_v0 }
 0x2f9   :  { %v1845_v40 = vpop.f32.mrb[28].mxu1  ;;  %v2014_v36 = vpop.f32.mrb[32].mxu0 }
 0x2fa   :  { %v1852_v41 = vadd.f32 %v1845_v40, %v1760_v23  ;;  %v8589_v21 = vpop.f32.mrb[29].mxu1  ;;  %v8609_v25 = vpop.f32.mrb[33].mxu0 }
 0x2fb   :  { %v1848_v22 = vpop.f32.mrb[30].mxu1  ;;  %v2017_v26 = vpop.f32.mrb[34].mxu0  ;;  %8862 = vmatpush3.bf16.msra.mxu1 %v9808_v16  ;;  %8882 = vmatpush3.bf16.msra.mxu0 %v9809_v34 }
 0x2fc   :  { %v2021_v39 = vadd.f32 %v2014_v36, %v1852_v41  ;;  %v1853_v42 = vadd.f32 %v1848_v22, %v1761_v37  ;;  %v8590_v47 = vpop.f32.mrb[31].mxu1  ;;  %v8610_v38 = vpop.f32.mrb[35].mxu0  ;;  %8863 = vmatprep.subr.bf16.mxu1 %v10212_v0  ;;  %8883 = vmatprep.subr.bf16.mxu0 %v10212_v0 }
 0x2fe   :  { %v2022_v51 = vadd.f32 %v2017_v26, %v1853_v42 }
 0x2ff   :  { %8864 = vmatpush3.bf16.msra.mxu1 %v9810_v17  ;;  %8884 = vmatpush3.bf16.msra.mxu0 %v9811_v35 }
 0x300   :  { %8865 = vmatprep.subr.bf16.mxu1 %v10212_v0  ;;  %8885 = vmatprep.subr.bf16.mxu0 %v10212_v0 }
 0x303   :  { %8866 = vmatpush3.bf16.msra.mxu1 %v9812_v43  ;;  %8886 = vmatpush3.bf16.msra.mxu0 %v9813_v52 }
 0x304   :  { %8891 = vmatprep.subr.bf16.mxu1 %v10212_v0  ;;  %8911 = vmatprep.subr.bf16.mxu0 %v10212_v0 }
 0x306   :  { %8868 = vmatmul.mubr.bf16.vlgmr.msra.gmra.mrb[56].mxu1 %v3358_v58  ;;  %8888 = vmatmul.mubr.bf16.vlgmr.msra.gmra.mrb[60].mxu0 %v3450_v59  ;;  %v9819_v58 = vld [vmem:[#allocation8 + $0x7e8] sm:$0xff]  }
 0x307   :  { %8892 = vmatpush3.bf16.msra.mxu1 %v9814_v50  ;;  %8907 = vmatprep.mubr.msk.bf16.mxu1 %vm10213_vm0, %v10212_v0 }
 0x308   :  { %8893 = vmatprep.subr.bf16.mxu1 %v10212_v0  ;;  %8927 = vmatprep.mubr.msk.bf16.mxu0 %vm10213_vm0, %v10212_v0 }
 0x30b   :  { %8894 = vmatpush3.bf16.msra.mxu1 %v9815_v60 }
 0x30c   :  { %8895 = vmatprep.subr.bf16.mxu1 %v10212_v0 }
 0x30f   :  { %8896 = vmatpush3.bf16.msra.mxu1 %v9816_v61  ;;  %v9822_v61 = vld [vmem:[#allocation9 + $0x40] sm:$0xff]  }
 0x310   :  { %8897 = vmatprep.subr.bf16.mxu1 %v10212_v0 }
 0x313   :  { %8898 = vmatpush3.bf16.msra.mxu1 %v9817_v53  ;;  %v9823_v53 = vld [vmem:[#allocation9 + $0x80] sm:$0xff]  }
 0x314   :  { %8899 = vmatprep.subr.bf16.mxu1 %v10212_v0  ;;  %8912 = vmatpush3.bf16.msra.mxu0 %v9823_v53 }
 0x315   :  { %8913 = vmatprep.subr.bf16.mxu0 %v10212_v0 }
 0x317   :  { %8900 = vmatpush3.bf16.msra.mxu1 %v9818_v56  ;;  %v9824_v56 = vld [vmem:[#allocation9 + $0x48] sm:$0xff]  }
 0x318   :  { %8901 = vmatprep.subr.bf16.mxu1 %v10212_v0 }
 0x319   :  { %v2106_v59 = vpop.f32.mrb[32].mxu1  ;;  %v2198_v29 = vpop.f32.mrb[36].mxu0 }
 0x31a   :  { %v2113_v2 = vadd.f32 %v2106_v59, %v2021_v39  ;;  %v8629_v62 = vpop.f32.mrb[33].mxu1  ;;  %v8649_v3 = vpop.f32.mrb[37].mxu0  ;;  %v9826_v59 = vld [vmem:[#allocation9 + $0x50] sm:$0xff]  }
 0x31b   :  { %v2109_v55 = vpop.f32.mrb[34].mxu1  ;;  %v2201_v6 = vpop.f32.mrb[38].mxu0  ;;  %8902 = vmatpush3.bf16.msra.mxu1 %v9819_v58  ;;  %v9825_v58 = vld [vmem:[#allocation9 + $0x88] sm:$0xff]   ;;  %v9827_v62 = vld [vmem:[#allocation9 + $0x90] sm:$0xff]  }
 0x31c   :  { %v2205_v14 = vadd.f32 %v2198_v29, %v2113_v2  ;;  %v2114_v7 = vadd.f32 %v2109_v55, %v2022_v51  ;;  %v8630_v15 = vpop.f32.mrb[35].mxu1  ;;  %v8650_v23 = vpop.f32.mrb[39].mxu0  ;;  %8903 = vmatprep.subr.bf16.mxu1 %v10212_v0  ;;  %8914 = vmatpush3.bf16.msra.mxu0 %v9825_v58 }
 0x31d   :  { %8915 = vmatprep.subr.bf16.mxu0 %v10212_v0 }
 0x31e   :  { %v2206_v32 = vadd.f32 %v2201_v6, %v2114_v7  ;;  %v9828_v7 = vld [vmem:[#allocation9 + $0x58] sm:$0xff]  }
 0x31f   :  { %8904 = vmatpush3.bf16.msra.mxu1 %v9820_v63 }
 0x320   :  { %8905 = vmatprep.subr.bf16.mxu1 %v10212_v0  ;;  %8916 = vmatpush3.bf16.msra.mxu0 %v9827_v62 }
 0x321   :  { %8917 = vmatprep.subr.bf16.mxu0 %v10212_v0 }
 0x323   :  { %8906 = vmatpush3.bf16.msra.mxu1 %v9821_v28 }
 0x324   :  { %8931 = vmatprep.subr.bf16.mxu1 %v10212_v0 }
 0x326   :  { %8908 = vmatmul.mubr.bf16.vlgmr.msra.gmra.mrb[60].mxu1 %v3542_v33  ;;  %v9829_v33 = vld [vmem:[#allocation9 + $0x98] sm:$0xff]  }
 0x327   :  { %8947 = vmatprep.mubr.msk.bf16.mxu1 %vm10213_vm0, %v10212_v0  ;;  %8932 = vmatpush3.bf16.msra.mxu1 %v9822_v61 }
 0x328   :  { %8933 = vmatprep.subr.bf16.mxu1 %v10212_v0  ;;  %8918 = vmatpush3.bf16.msra.mxu0 %v9829_v33 }
 0x329   :  { %8919 = vmatprep.subr.bf16.mxu0 %v10212_v0 }
 0x32b   :  { %8934 = vmatpush3.bf16.msra.mxu1 %v9824_v56 }
 0x32c   :  { %8935 = vmatprep.subr.bf16.mxu1 %v10212_v0 }
 0x32f   :  { %8936 = vmatpush3.bf16.msra.mxu1 %v9826_v59 }
 0x330   :  { %8937 = vmatprep.subr.bf16.mxu1 %v10212_v0 }
 0x333   :  { %8938 = vmatpush3.bf16.msra.mxu1 %v9828_v7 }
 0x334   :  { %8939 = vmatprep.subr.bf16.mxu1 %v10212_v0 }
 0x339   :  { %v2290_v37 = vpop.f32.mrb[36].mxu1  ;;  %v2459_v18 = vpop.f32.mrb[40].mxu0 }
 0x33a   :  { %v2297_v4 = vadd.f32 %v2290_v37, %v2205_v14  ;;  %v8669_v5 = vpop.f32.mrb[37].mxu1  ;;  %v8689_v8 = vpop.f32.mrb[41].mxu0 }
 0x33b   :  { %v2293_v9 = vpop.f32.mrb[38].mxu1  ;;  %v2462_v20 = vpop.f32.mrb[42].mxu0  ;;  %v9832_v5 = vld [vmem:[#allocation9 + $0x68] sm:$0xff]  }
 0x33c   :  { %v2466_v24 = vadd.f32 %v2459_v18, %v2297_v4  ;;  %v2298_v13 = vadd.f32 %v2293_v9, %v2206_v32  ;;  %v8670_v44 = vpop.f32.mrb[39].mxu1  ;;  %v8690_v27 = vpop.f32.mrb[43].mxu0  ;;  %v9830_v18 = vld [vmem:[#allocation9 + $0x60] sm:$0xff]   ;;  %v9833_v8 = vld [vmem:[#allocation9 + $0xa8] sm:$0xff]   ;;  %v9834_v9 = vld [vmem:[#allocation9 + $0x70] sm:$0xff]  }
 0x33d   :  { %8940 = vmatpush3.bf16.msra.mxu1 %v9830_v18  ;;  %v9831_v4 = vld [vmem:[#allocation9 + $0xa0] sm:$0xff]  }
 0x33e   :  { %v2467_v30 = vadd.f32 %v2462_v20, %v2298_v13  ;;  %8941 = vmatprep.subr.bf16.mxu1 %v10212_v0  ;;  %8920 = vmatpush3.bf16.msra.mxu0 %v9831_v4  ;;  %v9835_v20 = vld [vmem:[#allocation9 + $0xb0] sm:$0xff]   ;;  %v9837_v13 = vld [vmem:[#allocation9 + $0xb8] sm:$0xff]  }
 0x33f   :  { %8921 = vmatprep.subr.bf16.mxu0 %v10212_v0 }
 0x341   :  { %8942 = vmatpush3.bf16.msra.mxu1 %v9832_v5 }
 0x342   :  { %8943 = vmatprep.subr.bf16.mxu1 %v10212_v0  ;;  %8922 = vmatpush3.bf16.msra.mxu0 %v9833_v8 }
 0x343   :  { %8923 = vmatprep.subr.bf16.mxu0 %v10212_v0 }
 0x345   :  { %8944 = vmatpush3.bf16.msra.mxu1 %v9834_v9 }
 0x346   :  { %8945 = vmatprep.subr.bf16.mxu1 %v10212_v0  ;;  %8924 = vmatpush3.bf16.msra.mxu0 %v9835_v20 }
 0x347   :  { %8925 = vmatprep.subr.bf16.mxu0 %v10212_v0 }
 0x34a   :  { %8926 = vmatpush3.bf16.msra.mxu0 %v9837_v13 }
 0x34b   :  { %8951 = vmatprep.subr.bf16.mxu0 %v10212_v0 }
 0x359   :  { %v2551_v49 = vpop.f32.mrb[40].mxu1  ;;  %v2643_v57 = vpop.f32.mrb[44].mxu0 }
 0x35a   :  { %v2558_v11 = vadd.f32 %v2551_v49, %v2466_v24  ;;  %v8709_v12 = vpop.f32.mrb[41].mxu1  ;;  %v8729_v16 = vpop.f32.mrb[45].mxu0  ;;  %v9836_v24 = vld [vmem:[#allocation9 + $0x78] sm:$0xff]  }
 0x35b   :  { %v2554_v34 = vpop.f32.mrb[42].mxu1  ;;  %v2646_v40 = vpop.f32.mrb[46].mxu0  ;;  %8946 = vmatpush3.bf16.msra.mxu1 %v9836_v24 }
 0x35c   :  { %v2650_v36 = vadd.f32 %v2643_v57, %v2558_v11  ;;  %v2559_v41 = vadd.f32 %v2554_v34, %v2467_v30  ;;  %v8710_v21 = vpop.f32.mrb[43].mxu1  ;;  %v8730_v25 = vpop.f32.mrb[47].mxu0  ;;  %8971 = vmatprep.subr.bf16.mxu1 %v10212_v0 }
 0x35e   :  { %v2651_v22 = vadd.f32 %v2646_v40, %v2559_v41 }
 0x379   :  { %v2735_v26 = vpop.f32.mrb[44].mxu1  ;;  %v2904_v17 = vpop.f32.mrb[48].mxu0 }
 0x37a   :  { %v2742_v35 = vadd.f32 %v2735_v26, %v2650_v36  ;;  %v8749_v39 = vpop.f32.mrb[45].mxu1  ;;  %v8769_v42 = vpop.f32.mrb[49].mxu0 }
 0x37b   :  { %v2738_v47 = vpop.f32.mrb[46].mxu1  ;;  %v2907_v38 = vpop.f32.mrb[50].mxu0 }
 0x37c   :  { %v2911_v51 = vadd.f32 %v2904_v17, %v2742_v35  ;;  %v2743_v43 = vadd.f32 %v2738_v47, %v2651_v22  ;;  %v8750_v52 = vpop.f32.mrb[47].mxu1  ;;  %v8770_v50 = vpop.f32.mrb[51].mxu0 }
 0x37d   :  { %v7430_v50 = vld [vmem:[%s11448_s4] ss:$0 sm:$0xff] }
 0x37e   :  { %v2912_v60 = vadd.f32 %v2907_v38, %v2743_v43 }
 0x399   :  { %v2996_v29 = vpop.f32.mrb[48].mxu1  ;;  %v3088_v2 = vpop.f32.mrb[52].mxu0 }
 0x39a   :  { %v3003_v3 = vadd.f32 %v2996_v29, %v2911_v51  ;;  %v8789_v55 = vpop.f32.mrb[49].mxu1  ;;  %v8809_v6 = vpop.f32.mrb[53].mxu0 }
 0x39b   :  { %v2999_v63 = vpop.f32.mrb[50].mxu1  ;;  %v3091_v14 = vpop.f32.mrb[54].mxu0 }
 0x39c   :  { %v3095_v15 = vadd.f32 %v3088_v2, %v3003_v3  ;;  %v3004_v23 = vadd.f32 %v2999_v63, %v2912_v60  ;;  %v8790_v32 = vpop.f32.mrb[51].mxu1  ;;  %v8810_v28 = vpop.f32.mrb[55].mxu0 }
 0x39e   :  { %v3096_v37 = vadd.f32 %v3091_v14, %v3004_v23 }
 0x3b9   :  { %v3180_v44 = vpop.f32.mrb[52].mxu1  ;;  %v3349_v27 = vpop.f32.mrb[56].mxu0 }
 0x3ba   :  { %v3187_v30 = vadd.f32 %v3180_v44, %v3095_v15  ;;  %v8829_v49 = vpop.f32.mrb[53].mxu1  ;;  %v8849_v57 = vpop.f32.mrb[57].mxu0 }
 0x3bb   :  { %v3183_v11 = vpop.f32.mrb[54].mxu1  ;;  %v3352_v12 = vpop.f32.mrb[58].mxu0 }
 0x3bc   :  { %v3356_v16 = vadd.f32 %v3349_v27, %v3187_v30  ;;  %v3188_v34 = vadd.f32 %v3183_v11, %v3096_v37  ;;  %v8830_v40 = vpop.f32.mrb[55].mxu1  ;;  %v8850_v36 = vpop.f32.mrb[59].mxu0 }
 0x3be   :  { %v3357_v41 = vadd.f32 %v3352_v12, %v3188_v34  ;;  %v9838_v34 = vld [vmem:[#allocation9 + $0x100] sm:$0xff]  }
 0x3d9   :  { %v3441_v21 = vpop.f32.mrb[56].mxu1  ;;  %v3533_v25 = vpop.f32.mrb[60].mxu0 }
 0x3da   :  { %v3448_v22 = vadd.f32 %v3441_v21, %v3356_v16  ;;  %v8869_v26 = vpop.f32.mrb[57].mxu1  ;;  %v8889_v17 = vpop.f32.mrb[61].mxu0 }
 0x3db   :  { %v3444_v35 = vpop.f32.mrb[58].mxu1  ;;  %v3536_v39 = vpop.f32.mrb[62].mxu0  ;;  %v9840_v17 = vld [vmem:[#allocation9 + $0x108] sm:$0xff]  }
 0x3dc   :  { %v3540_v42 = vadd.f32 %v3533_v25, %v3448_v22  ;;  %v3449_v47 = vadd.f32 %v3444_v35, %v3357_v41  ;;  %v8870_v38 = vpop.f32.mrb[59].mxu1  ;;  %v8890_v51 = vpop.f32.mrb[63].mxu0  ;;  %v9839_v22 = vld [vmem:[#allocation9 + $0xc0] sm:$0xff]  }
 0x3de   :  { %v3541_v43 = vadd.f32 %v3536_v39, %v3449_v47 }
 0x3f9   :  { %v3625_v52 = vpop.f32.mrb[60].mxu1 }
 0x3fa   :  { %v3632_v60 = vadd.f32 %v3625_v52, %v3540_v42  ;;  %v8909_v61 = vpop.f32.mrb[61].mxu1 }
 0x3fb   :  { %v3628_v53 = vpop.f32.mrb[62].mxu1 }
 0x3fc   :  { %v3641_v56 = vadd.f32 %v7430_v50, %v3632_v60  ;;  %v3633_v58 = vadd.f32 %v3628_v53, %v3541_v43  ;;  %v8910_v59 = vpop.f32.mrb[63].mxu1  ;;  %v9841_v60 = vld [vmem:[#allocation9 + $0xc8] sm:$0xff]  }
 0x3fd   :  { %v9842_v59 = vld [vmem:[#allocation9 + $0x110] sm:$0xff]  }
 0x3fe   :  { %v3643_v29 = vand.u32 2147483647, %v3641_v56  ;;  %v3642_v2 = vadd.f32 %v7430_v50, %v3633_v58  ;;  %vm3665_vm8 = vcmp.ge.f32.partialorder %v3641_v56, 0.0 }
 0x400   :  { %v3645_v62 = vsub.f32 0.0, %v3643_v29  ;;  %v3644_v3 = vand.u32 2147483647, %v3642_v2  ;;  %vm3666_vm9 = vcmp.ge.f32.partialorder %v3642_v2, 0.0 }
 0x402   :  { %v3647_v55 = vmul.f32 1.442695, %v3645_v62  ;;  %v3646_v6 = vsub.f32 0.0, %v3644_v3 }
 0x404   :  { %10070 = vpow2.f32 %v3647_v55  ;;  %v3649_v63 = vmul.f32 1.442695, %v3646_v6 }
 0x406   :  { %10072 = vpow2.f32 %v3649_v63 }
 0x40e   :  { %v10071_v14 = vpop.eup %10070 }
 0x40f   :  { %v3651_v7 = vmul.f32 2.0, %v10071_v14  ;;  %v3659_v15 = vadd.f32 2.0, %v10071_v14 }
 0x410   :  { %v10073_v23 = vpop.eup %10072 }
 0x411   :  { %v3653_v32 = vadd.f32 1.0, %v3651_v7  ;;  %v3655_v28 = vmul.f32 %v10071_v14, %v3651_v7  ;;  %v3661_v33 = vmul.f32 %v10071_v14, %v3659_v15  ;;  %v3652_v37 = vmul.f32 2.0, %v10073_v23 }
 0x412   :  { %v3660_v18 = vadd.f32 2.0, %v10073_v23 }
 0x413   :  { %v3657_v4 = vadd.f32 %v3655_v28, %v3653_v32  ;;  %v3663_v5 = vadd.f32 2.0, %v3661_v33  ;;  %v3654_v8 = vadd.f32 1.0, %v3652_v37  ;;  %v3656_v9 = vmul.f32 %v10073_v23, %v3652_v37  ;;  %v9843_v28 = vld [vmem:[#allocation9 + $0xd0] sm:$0xff]  }
 0x414   :  { %v3662_v20 = vmul.f32 %v10073_v23, %v3660_v18  ;;  %v3667_v30 = vsel %vm3665_vm8, %v3653_v32, %v3661_v33 }
 0x415   :  { %v3669_v24 = vsel %vm3665_vm8, %v3657_v4, %v3663_v5  ;;  %v3658_v13 = vadd.f32 %v3656_v9, %v3654_v8  ;;  %v3671_v49 = vmul.f32 %v3667_v30, %v3641_v56  ;;  %v9844_v5 = vld [vmem:[#allocation9 + $0x118] sm:$0xff]  }
 0x416   :  { %10074 = vrcp.f32 %v3669_v24  ;;  %v3664_v44 = vadd.f32 2.0, %v3662_v20  ;;  %v3668_v57 = vsel %vm3666_vm9, %v3654_v8, %v3662_v20 }
 0x417   :  { %v3672_v16 = vmul.f32 %v3668_v57, %v3642_v2  ;;  %v9845_v57 = vld [vmem:[#allocation9 + $0xd8] sm:$0xff]  }
 0x418   :  { %v3670_v27 = vsel %vm3666_vm9, %v3658_v13, %v3664_v44 }
 0x419   :  { %10076 = vrcp.f32 %v3670_v27 }
 0x420   :  { %v10075_v11 = vpop.eup %10074 }
 0x421   :  { %v10912_v12 = vmul.f32 %v10075_v11, %v3671_v49 }
 0x423   :  { %v10077_v40 = vpop.eup %10076  ;;  %v3733_v36 = vpack.c.bf16 %v10912_v12, %v10212_v0  ;;  %v4007_v21 = vrot.slane %v10912_v12, 1  ;;  %v4451_v25 = vrot.slane %v10912_v12, 2  ;;  %v4895_v42 = vrot.slane %v10912_v12, 3 }
 0x424   :  { %v10916_v41 = vmul.f32 %v10077_v40, %v3672_v16  ;;  %v5339_v38 = vrot.slane %v10912_v12, 4  ;;  %v5783_v3 = vrot.slane %v10912_v12, 5  ;;  %v6227_v23 = vrot.slane %v10912_v12, 6 }
 0x425   :  { %8948 = vmatmul.mubr.bf16.vlgmr.msra.gmra.mrb[64].mxu1 %v3733_v36  ;;  %v10933_v51 = vsel %vm525_vm1, %v10344_v46, %v4007_v21  ;;  %v10947_v50 = vsel %vm970_vm2, %v10347_v48, %v4451_v25  ;;  %v10981_v63 = vsel %vm1415_vm3, %v10356_v54, %v4895_v42  ;;  %v6671_v44 = vrot.slane %v10912_v12, 7 }
 0x426   :  { %8972 = vmatpush3.bf16.msra.mxu1 %v9838_v34  ;;  %v3734_v26 = vpack.c.bf16 %v10916_v41, %v10912_v12  ;;  %8987 = vmatprep.mubr.msk.bf16.mxu1 %vm10213_vm0, %v10212_v0  ;;  %v4008_v35 = vrot.slane %v10916_v41, 1  ;;  %v4452_v39 = vrot.slane %v10916_v41, 2  ;;  %v4896_v47 = vrot.slane %v10916_v41, 3  ;;  %v9846_v34 = vld [vmem:[#allocation9 + $0x120] sm:$0xff]  }
 0x427   :  { %8973 = vmatprep.subr.bf16.mxu1 %v10212_v0  ;;  %v5340_v56 = vrot.slane %v10916_v41, 4  ;;  %v5784_v58 = vrot.slane %v10916_v41, 5  ;;  %v6228_v32 = vrot.slane %v10916_v41, 6  ;;  %v10996_v33 = vsel %vm1860_vm4, %v10381_v1, %v5339_v38 }
 0x428   :  { %8928 = vmatmul.mubr.bf16.vlgmr.msra.gmra.mrb[64].mxu0 %v3734_v26  ;;  %v10938_v43 = vsel %vm525_vm1, %v4008_v35, %v10344_v46  ;;  %v10942_v52 = vsel %vm525_vm1, %v4007_v21, %v4008_v35  ;;  %v10961_v29 = vsel %vm970_vm2, %v4452_v39, %v10347_v48  ;;  %v10965_v2 = vsel %vm970_vm2, %v4451_v25, %v4452_v39  ;;  %v9848_v35 = vld [vmem:[#allocation9 + $0x128] sm:$0xff]  }
 0x429   :  { %8952 = vmatpush3.bf16.msra.mxu0 %v9839_v22  ;;  %8967 = vmatprep.mubr.msk.bf16.mxu0 %vm10213_vm0, %v10212_v0  ;;  %v4265_v61 = vpack.c.bf16 %v10938_v43, %v10942_v52  ;;  %v4173_v53 = vpack.c.bf16 %v10942_v52, %v10933_v51  ;;  %v10970_v62 = vsel %vm1415_vm3, %v4896_v47, %v10356_v54  ;;  %v6672_v20 = vrot.slane %v10916_v41, 7  ;;  %v9849_v39 = vld [vmem:[#allocation9 + $0xe8] sm:$0xff]   ;;  %v9878_v52 = vld [vmem:[#allocation9 + $0x220] sm:$0xff]  }
 0x42a   :  { %8974 = vmatpush3.bf16.msra.mxu1 %v9840_v17  ;;  %8953 = vmatprep.subr.bf16.mxu0 %v10212_v0  ;;  %v4709_v55 = vpack.c.bf16 %v10961_v29, %v10965_v2  ;;  %v4617_v6 = vpack.c.bf16 %v10965_v2, %v10947_v50  ;;  %v10985_v14 = vsel %vm1415_vm3, %v4895_v42, %v4896_v47  ;;  %v9847_v17 = vld [vmem:[#allocation9 + $0xe0] sm:$0xff]   ;;  %v9851_v42 = vld [vmem:[#allocation9 + $0xf0] sm:$0xff]   ;;  %v9852_v47 = vld [vmem:[#allocation9 + $0x138] sm:$0xff]  }
 0x42b   :  { %8975 = vmatprep.subr.bf16.mxu1 %v10212_v0  ;;  %v5153_v7 = vpack.c.bf16 %v10970_v62, %v10985_v14  ;;  %v5061_v15 = vpack.c.bf16 %v10985_v14, %v10981_v63  ;;  %v11001_v37 = vsel %vm1860_vm4, %v5340_v56, %v10381_v1  ;;  %v11005_v18 = vsel %vm1860_vm4, %v5339_v38, %v5340_v56  ;;  %v9853_v38 = vld [vmem:[#allocation9 + $0xf8] sm:$0xff]   ;;  %v9910_v2 = vld [vmem:[#allocation9 + $0x320] sm:$0xff]  }
 0x42c   :  { %v11010_v4 = vsel %vm2305_vm5, %v5784_v58, %v10400_v10  ;;  %v5597_v8 = vpack.c.bf16 %v11001_v37, %v11005_v18  ;;  %v5505_v9 = vpack.c.bf16 %v11005_v18, %v10996_v33  ;;  %v11022_v24 = vsel %vm2305_vm5, %v10400_v10, %v5783_v3  ;;  %v9942_v14 = vld [vmem:[#allocation9 + $0x420] sm:$0xff]  }
 0x42d   :  { %8954 = vmatpush3.bf16.msra.mxu0 %v9841_v60  ;;  %v11026_v13 = vsel %vm2305_vm5, %v5783_v3, %v5784_v58  ;;  %v11036_v49 = vsel %vm2750_vm6, %v6228_v32, %v10430_v19  ;;  %v11041_v11 = vsel %vm2750_vm6, %v10430_v19, %v6227_v23  ;;  %v11045_v12 = vsel %vm2750_vm6, %v6227_v23, %v6228_v32  ;;  %v9854_v60 = vld [vmem:[#allocation9 + $0x180] sm:$0xff]   ;;  %v9856_v3 = vld [vmem:[#allocation9 + $0x188] sm:$0xff]   ;;  %v9858_v32 = vld [vmem:[#allocation9 + $0x190] sm:$0xff]  }
 0x42e   :  { %8976 = vmatpush3.bf16.msra.mxu1 %v9842_v59  ;;  %8955 = vmatprep.subr.bf16.mxu0 %v10212_v0  ;;  %v6041_v27 = vpack.c.bf16 %v11010_v4, %v11026_v13  ;;  %v5949_v30 = vpack.c.bf16 %v11026_v13, %v11022_v24  ;;  %v11050_v16 = vsel %vm3195_vm7, %v6672_v20, %v10466_v31  ;;  %v9855_v58 = vld [vmem:[#allocation9 + $0x140] sm:$0xff]   ;;  %v9857_v23 = vld [vmem:[#allocation9 + $0x148] sm:$0xff]  }
 0x42f   :  { %8977 = vmatprep.subr.bf16.mxu1 %v10212_v0  ;;  %v6485_v40 = vpack.c.bf16 %v11036_v49, %v11045_v12  ;;  %v6393_v36 = vpack.c.bf16 %v11045_v12, %v11041_v11  ;;  %v11061_v21 = vsel %vm3195_vm7, %v10466_v31, %v6671_v44  ;;  %v11065_v25 = vsel %vm3195_vm7, %v6671_v44, %v6672_v20  ;;  %v9862_v20 = vld [vmem:[#allocation9 + $0x1a0] sm:$0xff]  }
 0x430   :  { %v6929_v22 = vpack.c.bf16 %v11050_v16, %v11065_v25  ;;  %v6837_v26 = vpack.c.bf16 %v11065_v25, %v11061_v21  ;;  %v4081_v56 = vpack.c.bf16 %v10933_v51, %v10344_v46  ;;  %v3913_v59 = vpack.c.bf16 %v10212_v0, %v10916_v41  ;;  %v9859_v41 = vld [vmem:[#allocation9 + $0x150] sm:$0xff]   ;;  %v9863_v44 = vld [vmem:[#allocation9 + $0x160] sm:$0xff]   ;;  %v9877_v51 = vld [vmem:[#allocation9 + $0x1d8] sm:$0xff]  }
 0x431   :  { %8956 = vmatpush3.bf16.msra.mxu0 %v9843_v28  ;;  %v9860_v28 = vld [vmem:[#allocation9 + $0x198] sm:$0xff]   ;;  %v9974_v18 = vld [vmem:[#allocation9 + $0x520] sm:$0xff]  }
 0x432   :  { %8978 = vmatpush3.bf16.msra.mxu1 %v9844_v5  ;;  %8957 = vmatprep.subr.bf16.mxu0 %v10212_v0  ;;  %v9861_v5 = vld [vmem:[#allocation9 + $0x158] sm:$0xff]   ;;  %v10006_v13 = vld [vmem:[#allocation9 + $0x620] sm:$0xff]  }
 0x433   :  { %8979 = vmatprep.subr.bf16.mxu1 %v10212_v0  ;;  %v10038_v12 = vld [vmem:[#allocation9 + $0x720] sm:$0xff]  }
 0x435   :  { %8958 = vmatpush3.bf16.msra.mxu0 %v9845_v57  ;;  %v9864_v57 = vld [vmem:[#allocation9 + $0x1a8] sm:$0xff]  }
 0x436   :  { %8980 = vmatpush3.bf16.msra.mxu1 %v9846_v34  ;;  %8959 = vmatprep.subr.bf16.mxu0 %v10212_v0  ;;  %v9865_v34 = vld [vmem:[#allocation9 + $0x168] sm:$0xff]  }
 0x437   :  { %8981 = vmatprep.subr.bf16.mxu1 %v10212_v0 }
 0x439   :  { %8960 = vmatpush3.bf16.msra.mxu0 %v9847_v17  ;;  %v9866_v17 = vld [vmem:[#allocation9 + $0x1b0] sm:$0xff]  }
 0x43a   :  { %8982 = vmatpush3.bf16.msra.mxu1 %v9848_v35  ;;  %8961 = vmatprep.subr.bf16.mxu0 %v10212_v0  ;;  %v9867_v35 = vld [vmem:[#allocation9 + $0x170] sm:$0xff]  }
 0x43b   :  { %8983 = vmatprep.subr.bf16.mxu1 %v10212_v0 }
 0x43d   :  { %8962 = vmatpush3.bf16.msra.mxu0 %v9849_v39  ;;  %v9868_v39 = vld [vmem:[#allocation9 + $0x1b8] sm:$0xff]  }
 0x43e   :  { %8984 = vmatpush3.bf16.msra.mxu1 %v9850_v45  ;;  %8963 = vmatprep.subr.bf16.mxu0 %v10212_v0  ;;  %v9869_v45 = vld [vmem:[#allocation9 + $0x178] sm:$0xff]  }
 0x43f   :  { %8985 = vmatprep.subr.bf16.mxu1 %v10212_v0 }
 0x441   :  { %8964 = vmatpush3.bf16.msra.mxu0 %v9851_v42  ;;  %v9870_v42 = vld [vmem:[#allocation9 + $0x200] sm:$0xff]  }
 0x442   :  { %8986 = vmatpush3.bf16.msra.mxu1 %v9852_v47  ;;  %8965 = vmatprep.subr.bf16.mxu0 %v10212_v0  ;;  %v9871_v47 = vld [vmem:[#allocation9 + $0x1c0] sm:$0xff]  }
 0x443   :  { %9011 = vmatprep.subr.bf16.mxu1 %v10212_v0 }
 0x445   :  { %8966 = vmatpush3.bf16.msra.mxu0 %v9853_v38  ;;  %8988 = vmatmul.mubr.bf16.vlgmr.msra.gmra.mrb[68].mxu1 %v4081_v56  ;;  %v9872_v38 = vld [vmem:[#allocation9 + $0x208] sm:$0xff]   ;;  %v9875_v56 = vld [vmem:[#allocation9 + $0x1d0] sm:$0xff]  }
 0x446   :  { %9012 = vmatpush3.bf16.msra.mxu1 %v9854_v60  ;;  %8991 = vmatprep.subr.bf16.mxu0 %v10212_v0  ;;  %v9873_v60 = vld [vmem:[#allocation9 + $0x1c8] sm:$0xff]  }
 0x447   :  { %9013 = vmatprep.subr.bf16.mxu1 %v10212_v0  ;;  %9027 = vmatprep.mubr.msk.bf16.mxu1 %vm10213_vm0, %v10212_v0 }
 0x448   :  { %8968 = vmatmul.mubr.bf16.vlgmr.msra.gmra.mrb[68].mxu0 %v3913_v59  ;;  %v9880_v59 = vld [vmem:[#allocation9 + $0x228] sm:$0xff]  }
 0x449   :  { %8992 = vmatpush3.bf16.msra.mxu0 %v9855_v58  ;;  %9007 = vmatprep.mubr.msk.bf16.mxu0 %vm10213_vm0, %v10212_v0  ;;  %v9876_v58 = vld [vmem:[#allocation9 + $0x218] sm:$0xff]  }
 0x44a   :  { %9014 = vmatpush3.bf16.msra.mxu1 %v9856_v3  ;;  %8993 = vmatprep.subr.bf16.mxu0 %v10212_v0  ;;  %v9881_v3 = vld [vmem:[#allocation9 + $0x1e8] sm:$0xff]  }
 0x44b   :  { %9015 = vmatprep.subr.bf16.mxu1 %v10212_v0 }
 0x44d   :  { %8994 = vmatpush3.bf16.msra.mxu0 %v9857_v23  ;;  %v9882_v23 = vld [vmem:[#allocation9 + $0x230] sm:$0xff]  }
 0x44e   :  { %9016 = vmatpush3.bf16.msra.mxu1 %v9858_v32  ;;  %8995 = vmatprep.subr.bf16.mxu0 %v10212_v0  ;;  %v9883_v32 = vld [vmem:[#allocation9 + $0x1f0] sm:$0xff]  }
 0x44f   :  { %9017 = vmatprep.subr.bf16.mxu1 %v10212_v0 }
 0x451   :  { %8996 = vmatpush3.bf16.msra.mxu0 %v9859_v41  ;;  %v9884_v41 = vld [vmem:[#allocation9 + $0x238] sm:$0xff]  }
 0x452   :  { %9018 = vmatpush3.bf16.msra.mxu1 %v9860_v28  ;;  %8997 = vmatprep.subr.bf16.mxu0 %v10212_v0  ;;  %v9885_v28 = vld [vmem:[#allocation9 + $0x1f8] sm:$0xff]  }
 0x453   :  { %9019 = vmatprep.subr.bf16.mxu1 %v10212_v0 }
 0x455   :  { %8998 = vmatpush3.bf16.msra.mxu0 %v9861_v5  ;;  %v9886_v5 = vld [vmem:[#allocation9 + $0x280] sm:$0xff]  }
 0x456   :  { %9020 = vmatpush3.bf16.msra.mxu1 %v9862_v20  ;;  %8999 = vmatprep.subr.bf16.mxu0 %v10212_v0  ;;  %v4525_v20 = vpack.c.bf16 %v10947_v50, %v10347_v48  ;;  %v9909_v50 = vld [vmem:[#allocation9 + $0x2d8] sm:$0xff]  }
 0x457   :  { %9021 = vmatprep.subr.bf16.mxu1 %v10212_v0 }
 0x459   :  { %9000 = vmatpush3.bf16.msra.mxu0 %v9863_v44  ;;  %v9887_v44 = vld [vmem:[#allocation9 + $0x240] sm:$0xff]  }
 0x45a   :  { %9022 = vmatpush3.bf16.msra.mxu1 %v9864_v57  ;;  %9001 = vmatprep.subr.bf16.mxu0 %v10212_v0  ;;  %v4357_v57 = vpack.c.bf16 %v10344_v46, %v10938_v43  ;;  %v9891_v46 = vld [vmem:[#allocation9 + $0x250] sm:$0xff]   ;;  %v9892_v43 = vld [vmem:[#allocation9 + $0x298] sm:$0xff]  }
 0x45b   :  { %9023 = vmatprep.subr.bf16.mxu1 %v10212_v0 }
 0x45d   :  { %9002 = vmatpush3.bf16.msra.mxu0 %v9865_v34  ;;  %v9888_v34 = vld [vmem:[#allocation9 + $0x288] sm:$0xff]  }
 0x45e   :  { %9024 = vmatpush3.bf16.msra.mxu1 %v9866_v17  ;;  %9003 = vmatprep.subr.bf16.mxu0 %v10212_v0  ;;  %v9889_v17 = vld [vmem:[#allocation9 + $0x248] sm:$0xff]  }
 0x45f   :  { %9025 = vmatprep.subr.bf16.mxu1 %v10212_v0 }
 0x461   :  { %9004 = vmatpush3.bf16.msra.mxu0 %v9867_v35  ;;  %v9890_v35 = vld [vmem:[#allocation9 + $0x290] sm:$0xff]  }
 0x462   :  { %9026 = vmatpush3.bf16.msra.mxu1 %v9868_v39  ;;  %9005 = vmatprep.subr.bf16.mxu0 %v10212_v0  ;;  %v9893_v39 = vld [vmem:[#allocation9 + $0x258] sm:$0xff]  }
 0x463   :  { %9051 = vmatprep.subr.bf16.mxu1 %v10212_v0 }
 0x465   :  { %9006 = vmatpush3.bf16.msra.mxu0 %v9869_v45  ;;  %9028 = vmatmul.mubr.bf16.vlgmr.msra.gmra.mrb[72].mxu1 %v4265_v61  ;;  %v9874_v61 = vld [vmem:[#allocation9 + $0x210] sm:$0xff]   ;;  %v9894_v45 = vld [vmem:[#allocation9 + $0x2a0] sm:$0xff]  }
 0x466   :  { %9052 = vmatpush3.bf16.msra.mxu1 %v9870_v42  ;;  %9031 = vmatprep.subr.bf16.mxu0 %v10212_v0  ;;  %v9895_v42 = vld [vmem:[#allocation9 + $0x260] sm:$0xff]  }
 0x467   :  { %9053 = vmatprep.subr.bf16.mxu1 %v10212_v0  ;;  %9067 = vmatprep.mubr.msk.bf16.mxu1 %vm10213_vm0, %v10212_v0 }
 0x468   :  { %9008 = vmatmul.mubr.bf16.vlgmr.msra.gmra.mrb[72].mxu0 %v4173_v53  ;;  %v9879_v53 = vld [vmem:[#allocation9 + $0x1e0] sm:$0xff]  }
 0x469   :  { %9032 = vmatpush3.bf16.msra.mxu0 %v9871_v47  ;;  %9047 = vmatprep.mubr.msk.bf16.mxu0 %vm10213_vm0, %v10212_v0  ;;  %v9896_v47 = vld [vmem:[#allocation9 + $0x2a8] sm:$0xff]  }
 0x46a   :  { %9054 = vmatpush3.bf16.msra.mxu1 %v9872_v38  ;;  %9033 = vmatprep.subr.bf16.mxu0 %v10212_v0  ;;  %v9897_v38 = vld [vmem:[#allocation9 + $0x268] sm:$0xff]  }
 0x46b   :  { %9055 = vmatprep.subr.bf16.mxu1 %v10212_v0 }
 0x46d   :  { %9034 = vmatpush3.bf16.msra.mxu0 %v9873_v60  ;;  %v9898_v60 = vld [vmem:[#allocation9 + $0x2b0] sm:$0xff]  }
 0x46e   :  { %9056 = vmatpush3.bf16.msra.mxu1 %v9874_v61  ;;  %9035 = vmatprep.subr.bf16.mxu0 %v10212_v0  ;;  %v9899_v61 = vld [vmem:[#allocation9 + $0x270] sm:$0xff]  }
 0x46f   :  { %9057 = vmatprep.subr.bf16.mxu1 %v10212_v0 }
 0x471   :  { %9036 = vmatpush3.bf16.msra.mxu0 %v9875_v56  ;;  %v9900_v56 = vld [vmem:[#allocation9 + $0x2b8] sm:$0xff]  }
 0x472   :  { %9058 = vmatpush3.bf16.msra.mxu1 %v9876_v58  ;;  %9037 = vmatprep.subr.bf16.mxu0 %v10212_v0  ;;  %v9901_v58 = vld [vmem:[#allocation9 + $0x278] sm:$0xff]  }
 0x473   :  { %9059 = vmatprep.subr.bf16.mxu1 %v10212_v0 }
 0x475   :  { %9038 = vmatpush3.bf16.msra.mxu0 %v9877_v51  ;;  %v9902_v51 = vld [vmem:[#allocation9 + $0x300] sm:$0xff]  }
 0x476   :  { %9060 = vmatpush3.bf16.msra.mxu1 %v9878_v52  ;;  %9039 = vmatprep.subr.bf16.mxu0 %v10212_v0  ;;  %v9903_v52 = vld [vmem:[#allocation9 + $0x2c0] sm:$0xff]  }
 0x477   :  { %9061 = vmatprep.subr.bf16.mxu1 %v10212_v0 }
 0x479   :  { %9040 = vmatpush3.bf16.msra.mxu0 %v9879_v53  ;;  %v9904_v53 = vld [vmem:[#allocation9 + $0x308] sm:$0xff]  }
 0x47a   :  { %9062 = vmatpush3.bf16.msra.mxu1 %v9880_v59  ;;  %9041 = vmatprep.subr.bf16.mxu0 %v10212_v0  ;;  %v9905_v59 = vld [vmem:[#allocation9 + $0x2c8] sm:$0xff]  }
 0x47b   :  { %9063 = vmatprep.subr.bf16.mxu1 %v10212_v0 }
 0x47d   :  { %9042 = vmatpush3.bf16.msra.mxu0 %v9881_v3  ;;  %v9907_v3 = vld [vmem:[#allocation9 + $0x2d0] sm:$0xff]  }
 0x47e   :  { %9064 = vmatpush3.bf16.msra.mxu1 %v9882_v23  ;;  %9043 = vmatprep.subr.bf16.mxu0 %v10212_v0  ;;  %v9908_v23 = vld [vmem:[#allocation9 + $0x318] sm:$0xff]  }
 0x47f   :  { %9065 = vmatprep.subr.bf16.mxu1 %v10212_v0 }
 0x481   :  { %9044 = vmatpush3.bf16.msra.mxu0 %v9883_v32  ;;  %v9912_v32 = vld [vmem:[#allocation9 + $0x328] sm:$0xff]  }
 0x482   :  { %9066 = vmatpush3.bf16.msra.mxu1 %v9884_v41  ;;  %9045 = vmatprep.subr.bf16.mxu0 %v10212_v0  ;;  %v9913_v41 = vld [vmem:[#allocation9 + $0x2e8] sm:$0xff]  }
 0x483   :  { %9091 = vmatprep.subr.bf16.mxu1 %v10212_v0 }
 0x485   :  { %9046 = vmatpush3.bf16.msra.mxu0 %v9885_v28  ;;  %9068 = vmatmul.mubr.bf16.vlgmr.msra.gmra.mrb[76].mxu1 %v4525_v20  ;;  %v9914_v28 = vld [vmem:[#allocation9 + $0x330] sm:$0xff]   ;;  %v9916_v20 = vld [vmem:[#allocation9 + $0x338] sm:$0xff]  }
 0x486   :  { %9092 = vmatpush3.bf16.msra.mxu1 %v9886_v5  ;;  %9071 = vmatprep.subr.bf16.mxu0 %v10212_v0  ;;  %v9915_v5 = vld [vmem:[#allocation9 + $0x2f0] sm:$0xff]  }
 0x487   :  { %9093 = vmatprep.subr.bf16.mxu1 %v10212_v0  ;;  %9107 = vmatprep.mubr.msk.bf16.mxu1 %vm10213_vm0, %v10212_v0 }
 0x488   :  { %9048 = vmatmul.mubr.bf16.vlgmr.msra.gmra.mrb[76].mxu0 %v4357_v57  ;;  %v9918_v57 = vld [vmem:[#allocation9 + $0x380] sm:$0xff]  }
 0x489   :  { %9072 = vmatpush3.bf16.msra.mxu0 %v9887_v44  ;;  %9087 = vmatprep.mubr.msk.bf16.mxu0 %vm10213_vm0, %v10212_v0  ;;  %v9917_v44 = vld [vmem:[#allocation9 + $0x2f8] sm:$0xff]  }
 0x48a   :  { %9094 = vmatpush3.bf16.msra.mxu1 %v9888_v34  ;;  %9073 = vmatprep.subr.bf16.mxu0 %v10212_v0  ;;  %v4969_v34 = vpack.c.bf16 %v10981_v63, %v10356_v54  ;;  %v9941_v63 = vld [vmem:[#allocation9 + $0x3d8] sm:$0xff]  }
 0x48b   :  { %9095 = vmatprep.subr.bf16.mxu1 %v10212_v0 }
 0x48d   :  { %9074 = vmatpush3.bf16.msra.mxu0 %v9889_v17  ;;  %v9919_v17 = vld [vmem:[#allocation9 + $0x340] sm:$0xff]  }
 0x48e   :  { %9096 = vmatpush3.bf16.msra.mxu1 %v9890_v35  ;;  %9075 = vmatprep.subr.bf16.mxu0 %v10212_v0  ;;  %v4801_v35 = vpack.c.bf16 %v10347_v48, %v10961_v29  ;;  %v9923_v48 = vld [vmem:[#allocation9 + $0x350] sm:$0xff]   ;;  %v9924_v29 = vld [vmem:[#allocation9 + $0x398] sm:$0xff]  }
 0x48f   :  { %9097 = vmatprep.subr.bf16.mxu1 %v10212_v0 }
 0x491   :  { %9076 = vmatpush3.bf16.msra.mxu0 %v9891_v46  ;;  %v9920_v46 = vld [vmem:[#allocation9 + $0x388] sm:$0xff]  }
 0x492   :  { %9098 = vmatpush3.bf16.msra.mxu1 %v9892_v43  ;;  %9077 = vmatprep.subr.bf16.mxu0 %v10212_v0  ;;  %v9921_v43 = vld [vmem:[#allocation9 + $0x348] sm:$0xff]  }
 0x493   :  { %9099 = vmatprep.subr.bf16.mxu1 %v10212_v0 }
 0x495   :  { %9078 = vmatpush3.bf16.msra.mxu0 %v9893_v39  ;;  %v9922_v39 = vld [vmem:[#allocation9 + $0x390] sm:$0xff]  }
 0x496   :  { %9100 = vmatpush3.bf16.msra.mxu1 %v9894_v45  ;;  %9079 = vmatprep.subr.bf16.mxu0 %v10212_v0  ;;  %v9925_v45 = vld [vmem:[#allocation9 + $0x358] sm:$0xff]  }
 0x497   :  { %9101 = vmatprep.subr.bf16.mxu1 %v10212_v0 }
 0x499   :  { %9080 = vmatpush3.bf16.msra.mxu0 %v9895_v42  ;;  %v9926_v42 = vld [vmem:[#allocation9 + $0x3a0] sm:$0xff]  }
 0x49a   :  { %9102 = vmatpush3.bf16.msra.mxu1 %v9896_v47  ;;  %9081 = vmatprep.subr.bf16.mxu0 %v10212_v0  ;;  %v9927_v47 = vld [vmem:[#allocation9 + $0x360] sm:$0xff]  }
 0x49b   :  { %9103 = vmatprep.subr.bf16.mxu1 %v10212_v0 }
 0x49d   :  { %9082 = vmatpush3.bf16.msra.mxu0 %v9897_v38  ;;  %v9928_v38 = vld [vmem:[#allocation9 + $0x3a8] sm:$0xff]  }
 0x49e   :  { %9104 = vmatpush3.bf16.msra.mxu1 %v9898_v60  ;;  %9083 = vmatprep.subr.bf16.mxu0 %v10212_v0  ;;  %v9929_v60 = vld [vmem:[#allocation9 + $0x368] sm:$0xff]  }
 0x49f   :  { %9105 = vmatprep.subr.bf16.mxu1 %v10212_v0 }
 0x4a1   :  { %9084 = vmatpush3.bf16.msra.mxu0 %v9899_v61  ;;  %v9930_v61 = vld [vmem:[#allocation9 + $0x3b0] sm:$0xff]  }
 0x4a2   :  { %9106 = vmatpush3.bf16.msra.mxu1 %v9900_v56  ;;  %9085 = vmatprep.subr.bf16.mxu0 %v10212_v0  ;;  %v9931_v56 = vld [vmem:[#allocation9 + $0x370] sm:$0xff]  }
 0x4a3   :  { %9131 = vmatprep.subr.bf16.mxu1 %v10212_v0 }
 0x4a5   :  { %9086 = vmatpush3.bf16.msra.mxu0 %v9901_v58  ;;  %9108 = vmatmul.mubr.bf16.vlgmr.msra.gmra.mrb[80].mxu1 %v4709_v55  ;;  %v9906_v55 = vld [vmem:[#allocation9 + $0x310] sm:$0xff]   ;;  %v9932_v58 = vld [vmem:[#allocation9 + $0x3b8] sm:$0xff]  }
 0x4a6   :  { %9132 = vmatpush3.bf16.msra.mxu1 %v9902_v51  ;;  %9111 = vmatprep.subr.bf16.mxu0 %v10212_v0  ;;  %v9933_v51 = vld [vmem:[#allocation9 + $0x378] sm:$0xff]  }
 0x4a7   :  { %9133 = vmatprep.subr.bf16.mxu1 %v10212_v0  ;;  %9147 = vmatprep.mubr.msk.bf16.mxu1 %vm10213_vm0, %v10212_v0 }
 0x4a8   :  { %9088 = vmatmul.mubr.bf16.vlgmr.msra.gmra.mrb[80].mxu0 %v4617_v6  ;;  %v9911_v6 = vld [vmem:[#allocation9 + $0x2e0] sm:$0xff]  }
 0x4a9   :  { %9112 = vmatpush3.bf16.msra.mxu0 %v9903_v52  ;;  %9127 = vmatprep.mubr.msk.bf16.mxu0 %vm10213_vm0, %v10212_v0  ;;  %v9934_v52 = vld [vmem:[#allocation9 + $0x400] sm:$0xff]  }
 0x4aa   :  { %9134 = vmatpush3.bf16.msra.mxu1 %v9904_v53  ;;  %9113 = vmatprep.subr.bf16.mxu0 %v10212_v0  ;;  %v9935_v53 = vld [vmem:[#allocation9 + $0x3c0] sm:$0xff]  }
 0x4ab   :  { %9135 = vmatprep.subr.bf16.mxu1 %v10212_v0 }
 0x4ad   :  { %9114 = vmatpush3.bf16.msra.mxu0 %v9905_v59  ;;  %v9936_v59 = vld [vmem:[#allocation9 + $0x408] sm:$0xff]  }
 0x4ae   :  { %9136 = vmatpush3.bf16.msra.mxu1 %v9906_v55  ;;  %9115 = vmatprep.subr.bf16.mxu0 %v10212_v0  ;;  %v9937_v55 = vld [vmem:[#allocation9 + $0x3c8] sm:$0xff]  }
 0x4af   :  { %9137 = vmatprep.subr.bf16.mxu1 %v10212_v0 }
 0x4b1   :  { %9116 = vmatpush3.bf16.msra.mxu0 %v9907_v3  ;;  %v9939_v3 = vld [vmem:[#allocation9 + $0x3d0] sm:$0xff]  }
 0x4b2   :  { %9138 = vmatpush3.bf16.msra.mxu1 %v9908_v23  ;;  %9117 = vmatprep.subr.bf16.mxu0 %v10212_v0  ;;  %v9940_v23 = vld [vmem:[#allocation9 + $0x418] sm:$0xff]  }
 0x4b3   :  { %9139 = vmatprep.subr.bf16.mxu1 %v10212_v0 }
 0x4b5   :  { %9118 = vmatpush3.bf16.msra.mxu0 %v9909_v50  ;;  %v9944_v50 = vld [vmem:[#allocation9 + $0x428] sm:$0xff]  }
 0x4b6   :  { %9140 = vmatpush3.bf16.msra.mxu1 %v9910_v2  ;;  %9119 = vmatprep.subr.bf16.mxu0 %v10212_v0 }
 0x4b7   :  { %9141 = vmatprep.subr.bf16.mxu1 %v10212_v0 }
 0x4b9   :  { %9120 = vmatpush3.bf16.msra.mxu0 %v9911_v6 }
 0x4ba   :  { %9142 = vmatpush3.bf16.msra.mxu1 %v9912_v32  ;;  %9121 = vmatprep.subr.bf16.mxu0 %v10212_v0  ;;  %v9945_v32 = vld [vmem:[#allocation9 + $0x3e8] sm:$0xff]  }
 0x4bb   :  { %9143 = vmatprep.subr.bf16.mxu1 %v10212_v0 }
 0x4bd   :  { %9122 = vmatpush3.bf16.msra.mxu0 %v9913_v41 }
 0x4be   :  { %9144 = vmatpush3.bf16.msra.mxu1 %v9914_v28  ;;  %9123 = vmatprep.subr.bf16.mxu0 %v10212_v0  ;;  %v9946_v28 = vld [vmem:[#allocation9 + $0x430] sm:$0xff]  }
 0x4bf   :  { %9145 = vmatprep.subr.bf16.mxu1 %v10212_v0 }
 0x4c1   :  { %9124 = vmatpush3.bf16.msra.mxu0 %v9915_v5 }
 0x4c2   :  { %9146 = vmatpush3.bf16.msra.mxu1 %v9916_v20  ;;  %9125 = vmatprep.subr.bf16.mxu0 %v10212_v0 }
 0x4c3   :  { %9171 = vmatprep.subr.bf16.mxu1 %v10212_v0 }
 0x4c5   :  { %9126 = vmatpush3.bf16.msra.mxu0 %v9917_v44  ;;  %9148 = vmatmul.mubr.bf16.vlgmr.msra.gmra.mrb[84].mxu1 %v4969_v34 }
 0x4c6   :  { %9172 = vmatpush3.bf16.msra.mxu1 %v9918_v57  ;;  %9151 = vmatprep.subr.bf16.mxu0 %v10212_v0 }
 0x4c7   :  { %9173 = vmatprep.subr.bf16.mxu1 %v10212_v0  ;;  %9187 = vmatprep.mubr.msk.bf16.mxu1 %vm10213_vm0, %v10212_v0 }
 0x4c8   :  { %9128 = vmatmul.mubr.bf16.vlgmr.msra.gmra.mrb[84].mxu0 %v4801_v35 }
 0x4c9   :  { %9152 = vmatpush3.bf16.msra.mxu0 %v9919_v17  ;;  %9167 = vmatprep.mubr.msk.bf16.mxu0 %vm10213_vm0, %v10212_v0  ;;  %v9947_v17 = vld [vmem:[#allocation9 + $0x3f0] sm:$0xff]  }
 0x4ca   :  { %9174 = vmatpush3.bf16.msra.mxu1 %v9920_v46  ;;  %9153 = vmatprep.subr.bf16.mxu0 %v10212_v0 }
 0x4cb   :  { %9175 = vmatprep.subr.bf16.mxu1 %v10212_v0 }
 0x4cd   :  { %9154 = vmatpush3.bf16.msra.mxu0 %v9921_v43  ;;  %v9948_v43 = vld [vmem:[#allocation9 + $0x438] sm:$0xff]  }
 0x4ce   :  { %9176 = vmatpush3.bf16.msra.mxu1 %v9922_v39  ;;  %9155 = vmatprep.subr.bf16.mxu0 %v10212_v0  ;;  %v9949_v39 = vld [vmem:[#allocation9 + $0x3f8] sm:$0xff]  }
 0x4cf   :  { %9177 = vmatprep.subr.bf16.mxu1 %v10212_v0 }
 0x4d1   :  { %9156 = vmatpush3.bf16.msra.mxu0 %v9923_v48  ;;  %v9950_v48 = vld [vmem:[#allocation9 + $0x480] sm:$0xff]  }
 0x4d2   :  { %9178 = vmatpush3.bf16.msra.mxu1 %v9924_v29  ;;  %9157 = vmatprep.subr.bf16.mxu0 %v10212_v0  ;;  %v5413_v29 = vpack.c.bf16 %v10996_v33, %v10381_v1  ;;  %v9973_v33 = vld [vmem:[#allocation9 + $0x4d8] sm:$0xff]  }
 0x4d3   :  { %9179 = vmatprep.subr.bf16.mxu1 %v10212_v0 }
 0x4d5   :  { %9158 = vmatpush3.bf16.msra.mxu0 %v9925_v45  ;;  %v9951_v45 = vld [vmem:[#allocation9 + $0x440] sm:$0xff]  }
 0x4d6   :  { %9180 = vmatpush3.bf16.msra.mxu1 %v9926_v42  ;;  %9159 = vmatprep.subr.bf16.mxu0 %v10212_v0  ;;  %v5245_v42 = vpack.c.bf16 %v10356_v54, %v10970_v62  ;;  %v9955_v54 = vld [vmem:[#allocation9 + $0x450] sm:$0xff]   ;;  %v9956_v62 = vld [vmem:[#allocation9 + $0x498] sm:$0xff]  }
 0x4d7   :  { %9181 = vmatprep.subr.bf16.mxu1 %v10212_v0 }
 0x4d9   :  { %9160 = vmatpush3.bf16.msra.mxu0 %v9927_v47  ;;  %v9952_v47 = vld [vmem:[#allocation9 + $0x488] sm:$0xff]  }
 0x4da   :  { %9182 = vmatpush3.bf16.msra.mxu1 %v9928_v38  ;;  %9161 = vmatprep.subr.bf16.mxu0 %v10212_v0  ;;  %v9953_v38 = vld [vmem:[#allocation9 + $0x448] sm:$0xff]  }
 0x4db   :  { %9183 = vmatprep.subr.bf16.mxu1 %v10212_v0 }
 0x4dd   :  { %9162 = vmatpush3.bf16.msra.mxu0 %v9929_v60  ;;  %v9954_v60 = vld [vmem:[#allocation9 + $0x490] sm:$0xff]  }
 0x4de   :  { %9184 = vmatpush3.bf16.msra.mxu1 %v9930_v61  ;;  %9163 = vmatprep.subr.bf16.mxu0 %v10212_v0  ;;  %v9957_v61 = vld [vmem:[#allocation9 + $0x458] sm:$0xff]  }
 0x4df   :  { %9185 = vmatprep.subr.bf16.mxu1 %v10212_v0 }
 0x4e1   :  { %9164 = vmatpush3.bf16.msra.mxu0 %v9931_v56  ;;  %v9958_v56 = vld [vmem:[#allocation9 + $0x4a0] sm:$0xff]  }
 0x4e2   :  { %9186 = vmatpush3.bf16.msra.mxu1 %v9932_v58  ;;  %9165 = vmatprep.subr.bf16.mxu0 %v10212_v0  ;;  %v9959_v58 = vld [vmem:[#allocation9 + $0x460] sm:$0xff]  }
 0x4e3   :  { %9211 = vmatprep.subr.bf16.mxu1 %v10212_v0 }
 0x4e5   :  { %9166 = vmatpush3.bf16.msra.mxu0 %v9933_v51  ;;  %9188 = vmatmul.mubr.bf16.vlgmr.msra.gmra.mrb[88].mxu1 %v5153_v7  ;;  %v9938_v7 = vld [vmem:[#allocation9 + $0x410] sm:$0xff]   ;;  %v9960_v51 = vld [vmem:[#allocation9 + $0x4a8] sm:$0xff]  }
 0x4e6   :  { %9212 = vmatpush3.bf16.msra.mxu1 %v9934_v52  ;;  %9191 = vmatprep.subr.bf16.mxu0 %v10212_v0 }
 0x4e7   :  { %9213 = vmatprep.subr.bf16.mxu1 %v10212_v0  ;;  %9227 = vmatprep.mubr.msk.bf16.mxu1 %vm10213_vm0, %v10212_v0 }
 0x4e8   :  { %9168 = vmatmul.mubr.bf16.vlgmr.msra.gmra.mrb[88].mxu0 %v5061_v15  ;;  %v9943_v15 = vld [vmem:[#allocation9 + $0x3e0] sm:$0xff]  }
 0x4e9   :  { %9192 = vmatpush3.bf16.msra.mxu0 %v9935_v53  ;;  %9207 = vmatprep.mubr.msk.bf16.mxu0 %vm10213_vm0, %v10212_v0 }
 0x4ea   :  { %9214 = vmatpush3.bf16.msra.mxu1 %v9936_v59  ;;  %9193 = vmatprep.subr.bf16.mxu0 %v10212_v0  ;;  %v9961_v59 = vld [vmem:[#allocation9 + $0x468] sm:$0xff]  }
 0x4eb   :  { %9215 = vmatprep.subr.bf16.mxu1 %v10212_v0 }
 0x4ed   :  { %9194 = vmatpush3.bf16.msra.mxu0 %v9937_v55 }
 0x4ee   :  { %9216 = vmatpush3.bf16.msra.mxu1 %v9938_v7  ;;  %9195 = vmatprep.subr.bf16.mxu0 %v10212_v0  ;;  %v9962_v7 = vld [vmem:[#allocation9 + $0x4b0] sm:$0xff]  }
 0x4ef   :  { %9217 = vmatprep.subr.bf16.mxu1 %v10212_v0 }
 0x4f1   :  { %9196 = vmatpush3.bf16.msra.mxu0 %v9939_v3 }
 0x4f2   :  { %9218 = vmatpush3.bf16.msra.mxu1 %v9940_v23  ;;  %9197 = vmatprep.subr.bf16.mxu0 %v10212_v0 }
 0x4f3   :  { %9219 = vmatprep.subr.bf16.mxu1 %v10212_v0 }
 0x4f5   :  { %9198 = vmatpush3.bf16.msra.mxu0 %v9941_v63 }
 0x4f6   :  { %9220 = vmatpush3.bf16.msra.mxu1 %v9942_v14  ;;  %9199 = vmatprep.subr.bf16.mxu0 %v10212_v0 }
 0x4f7   :  { %9221 = vmatprep.subr.bf16.mxu1 %v10212_v0 }
 0x4f8   :  { %v3906_v2 = vpop.f32.mrb[64].mxu1 }
 0x4f9   :  { %9200 = vmatpush3.bf16.msra.mxu0 %v9943_v15  ;;  %v8949_v6 = vpop.f32.mrb[65].mxu1 }
 0x4fa   :  { %9222 = vmatpush3.bf16.msra.mxu1 %v9944_v50  ;;  %v3909_v41 = vpop.f32.mrb[66].mxu1  ;;  %9201 = vmatprep.subr.bf16.mxu0 %v10212_v0  ;;  %v9963_v50 = vld [vmem:[#allocation9 + $0x470] sm:$0xff]  }
 0x4fb   :  { %v3817_v5 = vpop.f32.mrb[64].mxu0  ;;  %v8950_v20 = vpop.f32.mrb[67].mxu1  ;;  %9223 = vmatprep.subr.bf16.mxu1 %v10212_v0 }
 0x4fc   :  { %v11225_v44 = vadd.f32 %v3906_v2, %v3817_v5  ;;  %v8929_v57 = vpop.f32.mrb[65].mxu0  ;;  %v9965_v5 = vld [vmem:[#allocation9 + $0x478] sm:$0xff]   ;;  %v9966_v20 = vld [vmem:[#allocation9 + $0x500] sm:$0xff]  }
 0x4fd   :  { %9202 = vmatpush3.bf16.msra.mxu0 %v9945_v32  ;;  %v3820_v34 = vpop.f32.mrb[66].mxu0  ;;  %v9964_v32 = vld [vmem:[#allocation9 + $0x4b8] sm:$0xff]   ;;  %v9968_v57 = vld [vmem:[#allocation9 + $0x508] sm:$0xff]  }
 0x4fe   :  { %v11227_v35 = vadd.f32 %v3909_v41, %v3820_v34  ;;  %v8930_v46 = vpop.f32.mrb[67].mxu0  ;;  %9224 = vmatpush3.bf16.msra.mxu1 %v9946_v28  ;;  %9203 = vmatprep.subr.bf16.mxu0 %v10212_v0  ;;  %v9969_v34 = vld [vmem:[#allocation9 + $0x4c8] sm:$0xff]  }
 0x4ff   :  { %9225 = vmatprep.subr.bf16.mxu1 %v10212_v0  ;;  %v9976_v46 = vld [vmem:[#allocation9 + $0x528] sm:$0xff]  }
 0x501   :  { %9204 = vmatpush3.bf16.msra.mxu0 %v9947_v17  ;;  %v9971_v17 = vld [vmem:[#allocation9 + $0x4d0] sm:$0xff]  }
 0x502   :  { %9226 = vmatpush3.bf16.msra.mxu1 %v9948_v43  ;;  %9205 = vmatprep.subr.bf16.mxu0 %v10212_v0 }
 0x503   :  { %9251 = vmatprep.subr.bf16.mxu1 %v10212_v0 }
 0x505   :  { %9206 = vmatpush3.bf16.msra.mxu0 %v9949_v39  ;;  %9228 = vmatmul.mubr.bf16.vlgmr.msra.gmra.mrb[92].mxu1 %v5413_v29 }
 0x506   :  { %9252 = vmatpush3.bf16.msra.mxu1 %v9950_v48  ;;  %9231 = vmatprep.subr.bf16.mxu0 %v10212_v0  ;;  %v9977_v48 = vld [vmem:[#allocation9 + $0x4e8] sm:$0xff]  }
 0x507   :  { %9253 = vmatprep.subr.bf16.mxu1 %v10212_v0  ;;  %9267 = vmatprep.mubr.msk.bf16.mxu1 %vm10213_vm0, %v10212_v0 }
 0x508   :  { %9208 = vmatmul.mubr.bf16.vlgmr.msra.gmra.mrb[92].mxu0 %v5245_v42 }
 0x509   :  { %9232 = vmatpush3.bf16.msra.mxu0 %v9951_v45  ;;  %9247 = vmatprep.mubr.msk.bf16.mxu0 %vm10213_vm0, %v10212_v0  ;;  %v9978_v45 = vld [vmem:[#allocation9 + $0x530] sm:$0xff]  }
 0x50a   :  { %9254 = vmatpush3.bf16.msra.mxu1 %v9952_v47  ;;  %9233 = vmatprep.subr.bf16.mxu0 %v10212_v0 }
 0x50b   :  { %9255 = vmatprep.subr.bf16.mxu1 %v10212_v0 }
 0x50d   :  { %9234 = vmatpush3.bf16.msra.mxu0 %v9953_v38 }
 0x50e   :  { %9256 = vmatpush3.bf16.msra.mxu1 %v9954_v60  ;;  %9235 = vmatprep.subr.bf16.mxu0 %v10212_v0 }
 0x50f   :  { %9257 = vmatprep.subr.bf16.mxu1 %v10212_v0 }
 0x511   :  { %9236 = vmatpush3.bf16.msra.mxu0 %v9955_v54 }
 0x512   :  { %9258 = vmatpush3.bf16.msra.mxu1 %v9956_v62  ;;  %9237 = vmatprep.subr.bf16.mxu0 %v10212_v0  ;;  %v9979_v62 = vld [vmem:[#allocation9 + $0x4f0] sm:$0xff]  }
 0x513   :  { %9259 = vmatprep.subr.bf16.mxu1 %v10212_v0 }
 0x515   :  { %9238 = vmatpush3.bf16.msra.mxu0 %v9957_v61 }
 0x516   :  { %9260 = vmatpush3.bf16.msra.mxu1 %v9958_v56  ;;  %9239 = vmatprep.subr.bf16.mxu0 %v10212_v0 }
 0x517   :  { %9261 = vmatprep.subr.bf16.mxu1 %v10212_v0 }
 0x518   :  { %v4164_v52 = vpop.f32.mrb[68].mxu1 }
 0x519   :  { %9240 = vmatpush3.bf16.msra.mxu0 %v9959_v58  ;;  %v8989_v53 = vpop.f32.mrb[69].mxu1  ;;  %v9980_v58 = vld [vmem:[#allocation9 + $0x538] sm:$0xff]  }
 0x51a   :  { %v4167_v55 = vpop.f32.mrb[70].mxu1  ;;  %9262 = vmatpush3.bf16.msra.mxu1 %v9960_v51  ;;  %9241 = vmatprep.subr.bf16.mxu0 %v10212_v0  ;;  %v9981_v53 = vld [vmem:[#allocation9 + $0x4f8] sm:$0xff]  }
 0x51b   :  { %v3996_v3 = vpop.f32.mrb[68].mxu0  ;;  %v8990_v23 = vpop.f32.mrb[71].mxu1  ;;  %9263 = vmatprep.subr.bf16.mxu1 %v10212_v0 }
 0x51c   :  { %v4003_v63 = vadd.f32 %v3996_v3, %v11225_v44  ;;  %v8969_v14 = vpop.f32.mrb[69].mxu0  ;;  %v9967_v44 = vld [vmem:[#allocation9 + $0x4c0] sm:$0xff]   ;;  %v5689_v3 = vpack.c.bf16 %v10381_v1, %v11001_v37  ;;  %v9984_v23 = vld [vmem:[#allocation9 + $0x588] sm:$0xff]   ;;  %v9987_v1 = vld [vmem:[#allocation9 + $0x550] sm:$0xff]  }
 0x51d   :  { %v3999_v15 = vpop.f32.mrb[70].mxu0  ;;  %9242 = vmatpush3.bf16.msra.mxu0 %v9961_v59  ;;  %v9982_v59 = vld [vmem:[#allocation9 + $0x580] sm:$0xff]   ;;  %v9986_v14 = vld [vmem:[#allocation9 + $0x590] sm:$0xff]   ;;  %v9988_v37 = vld [vmem:[#allocation9 + $0x598] sm:$0xff]  }
 0x51e   :  { %v4004_v2 = vadd.f32 %v3999_v15, %v11227_v35  ;;  %v8970_v6 = vpop.f32.mrb[71].mxu0  ;;  %9264 = vmatpush3.bf16.msra.mxu1 %v9962_v7  ;;  %9243 = vmatprep.subr.bf16.mxu0 %v10212_v0  ;;  %v4171_v41 = vadd.f32 %v4164_v52, %v4003_v63  ;;  %v9972_v35 = vld [vmem:[#allocation9 + $0x518] sm:$0xff]   ;;  %v9983_v7 = vld [vmem:[#allocation9 + $0x540] sm:$0xff]   ;;  %v9985_v63 = vld [vmem:[#allocation9 + $0x548] sm:$0xff]  }
 0x51f   :  { %9265 = vmatprep.subr.bf16.mxu1 %v10212_v0  ;;  %v9989_v15 = vld [vmem:[#allocation9 + $0x558] sm:$0xff]   ;;  %v9992_v6 = vld [vmem:[#allocation9 + $0x5a8] sm:$0xff]  }
 0x520   :  { %v4172_v28 = vadd.f32 %v4167_v55, %v4004_v2  ;;  %v5857_v55 = vpack.c.bf16 %v11022_v24, %v10400_v10  ;;  %v9991_v2 = vld [vmem:[#allocation9 + $0x560] sm:$0xff]   ;;  %v10005_v24 = vld [vmem:[#allocation9 + $0x5d8] sm:$0xff]  }
 0x521   :  { %9244 = vmatpush3.bf16.msra.mxu0 %v9963_v50  ;;  %v9990_v50 = vld [vmem:[#allocation9 + $0x5a0] sm:$0xff]  }
 0x522   :  { %9266 = vmatpush3.bf16.msra.mxu1 %v9964_v32  ;;  %9245 = vmatprep.subr.bf16.mxu0 %v10212_v0 }
 0x523   :  { %9291 = vmatprep.subr.bf16.mxu1 %v10212_v0 }
 0x525   :  { %9246 = vmatpush3.bf16.msra.mxu0 %v9965_v5  ;;  %9268 = vmatmul.mubr.bf16.vlgmr.msra.gmra.mrb[96].mxu1 %v5597_v8  ;;  %v9970_v8 = vld [vmem:[#allocation9 + $0x510] sm:$0xff]  }
 0x526   :  { %9292 = vmatpush3.bf16.msra.mxu1 %v9966_v20  ;;  %9271 = vmatprep.subr.bf16.mxu0 %v10212_v0  ;;  %v9994_v20 = vld [vmem:[#allocation9 + $0x5b0] sm:$0xff]  }
 0x527   :  { %9293 = vmatprep.subr.bf16.mxu1 %v10212_v0  ;;  %9307 = vmatprep.mubr.msk.bf16.mxu1 %vm10213_vm0, %v10212_v0 }
 0x528   :  { %9248 = vmatmul.mubr.bf16.vlgmr.msra.gmra.mrb[96].mxu0 %v5505_v9  ;;  %v9975_v9 = vld [vmem:[#allocation9 + $0x4e0] sm:$0xff]  }
 0x529   :  { %9272 = vmatpush3.bf16.msra.mxu0 %v9967_v44  ;;  %9287 = vmatprep.mubr.msk.bf16.mxu0 %vm10213_vm0, %v10212_v0 }
 0x52a   :  { %9294 = vmatpush3.bf16.msra.mxu1 %v9968_v57  ;;  %9273 = vmatprep.subr.bf16.mxu0 %v10212_v0 }
 0x52b   :  { %9295 = vmatprep.subr.bf16.mxu1 %v10212_v0 }
 0x52d   :  { %9274 = vmatpush3.bf16.msra.mxu0 %v9969_v34 }
 0x52e   :  { %9296 = vmatpush3.bf16.msra.mxu1 %v9970_v8  ;;  %9275 = vmatprep.subr.bf16.mxu0 %v10212_v0 }
 0x52f   :  { %9297 = vmatprep.subr.bf16.mxu1 %v10212_v0 }
 0x531   :  { %9276 = vmatpush3.bf16.msra.mxu0 %v9971_v17 }
 0x532   :  { %9298 = vmatpush3.bf16.msra.mxu1 %v9972_v35  ;;  %9277 = vmatprep.subr.bf16.mxu0 %v10212_v0  ;;  %v9995_v35 = vld [vmem:[#allocation9 + $0x570] sm:$0xff]  }
 0x533   :  { %9299 = vmatprep.subr.bf16.mxu1 %v10212_v0 }
 0x535   :  { %9278 = vmatpush3.bf16.msra.mxu0 %v9973_v33 }
 0x536   :  { %9300 = vmatpush3.bf16.msra.mxu1 %v9974_v18  ;;  %9279 = vmatprep.subr.bf16.mxu0 %v10212_v0 }
 0x537   :  { %9301 = vmatprep.subr.bf16.mxu1 %v10212_v0 }
 0x538   :  { %v4348_v43 = vpop.f32.mrb[72].mxu1 }
 0x539   :  { %9280 = vmatpush3.bf16.msra.mxu0 %v9975_v9  ;;  %v9029_v39 = vpop.f32.mrb[73].mxu1  ;;  %v9996_v9 = vld [vmem:[#allocation9 + $0x5b8] sm:$0xff]  }
 0x53a   :  { %v4351_v29 = vpop.f32.mrb[74].mxu1  ;;  %9302 = vmatpush3.bf16.msra.mxu1 %v9976_v46  ;;  %9281 = vmatprep.subr.bf16.mxu0 %v10212_v0  ;;  %v9997_v39 = vld [vmem:[#allocation9 + $0x578] sm:$0xff]  }
 0x53b   :  { %v4256_v42 = vpop.f32.mrb[72].mxu0  ;;  %v9030_v47 = vpop.f32.mrb[75].mxu1  ;;  %9303 = vmatprep.subr.bf16.mxu1 %v10212_v0 }
 0x53c   :  { %v4263_v38 = vadd.f32 %v4256_v42, %v4171_v41  ;;  %v9009_v60 = vpop.f32.mrb[73].mxu0  ;;  %v10001_v42 = vld [vmem:[#allocation9 + $0x5c8] sm:$0xff]   ;;  %v10003_v47 = vld [vmem:[#allocation9 + $0x5d0] sm:$0xff]  }
 0x53d   :  { %v4259_v54 = vpop.f32.mrb[74].mxu0  ;;  %9282 = vmatpush3.bf16.msra.mxu0 %v9977_v48  ;;  %v9998_v48 = vld [vmem:[#allocation9 + $0x600] sm:$0xff]   ;;  %v10008_v60 = vld [vmem:[#allocation9 + $0x628] sm:$0xff]  }
 0x53e   :  { %v4264_v61 = vadd.f32 %v4259_v54, %v4172_v28  ;;  %v9010_v56 = vpop.f32.mrb[75].mxu0  ;;  %9304 = vmatpush3.bf16.msra.mxu1 %v9978_v45  ;;  %9283 = vmatprep.subr.bf16.mxu0 %v10212_v0  ;;  %v4355_v51 = vadd.f32 %v4348_v43, %v4263_v38  ;;  %v9993_v28 = vld [vmem:[#allocation9 + $0x568] sm:$0xff]   ;;  %v10004_v38 = vld [vmem:[#allocation9 + $0x618] sm:$0xff]  }
 0x53f   :  { %9305 = vmatprep.subr.bf16.mxu1 %v10212_v0  ;;  %v10000_v45 = vld [vmem:[#allocation9 + $0x608] sm:$0xff]  }
 0x540   :  { %v4356_v52 = vadd.f32 %v4351_v29, %v4264_v61  ;;  %v9999_v29 = vld [vmem:[#allocation9 + $0x5c0] sm:$0xff]   ;;  %v10009_v61 = vld [vmem:[#allocation9 + $0x5e8] sm:$0xff]  }
 0x541   :  { %9284 = vmatpush3.bf16.msra.mxu0 %v9979_v62 }
 0x542   :  { %9306 = vmatpush3.bf16.msra.mxu1 %v9980_v58  ;;  %9285 = vmatprep.subr.bf16.mxu0 %v10212_v0  ;;  %v10010_v58 = vld [vmem:[#allocation9 + $0x630] sm:$0xff]  }
 0x543   :  { %9331 = vmatprep.subr.bf16.mxu1 %v10212_v0 }
 0x545   :  { %9286 = vmatpush3.bf16.msra.mxu0 %v9981_v53  ;;  %9308 = vmatmul.mubr.bf16.vlgmr.msra.gmra.mrb[100].mxu1 %v5857_v55 }
 0x546   :  { %9332 = vmatpush3.bf16.msra.mxu1 %v9982_v59  ;;  %9311 = vmatprep.subr.bf16.mxu0 %v10212_v0 }
 0x547   :  { %9333 = vmatprep.subr.bf16.mxu1 %v10212_v0  ;;  %9347 = vmatprep.mubr.msk.bf16.mxu1 %vm10213_vm0, %v10212_v0 }
 0x548   :  { %9288 = vmatmul.mubr.bf16.vlgmr.msra.gmra.mrb[100].mxu0 %v5689_v3 }
 0x549   :  { %9312 = vmatpush3.bf16.msra.mxu0 %v9983_v7  ;;  %9327 = vmatprep.mubr.msk.bf16.mxu0 %vm10213_vm0, %v10212_v0  ;;  %v10011_v7 = vld [vmem:[#allocation9 + $0x5f0] sm:$0xff]  }
 0x54a   :  { %9334 = vmatpush3.bf16.msra.mxu1 %v9984_v23  ;;  %9313 = vmatprep.subr.bf16.mxu0 %v10212_v0 }
 0x54b   :  { %9335 = vmatprep.subr.bf16.mxu1 %v10212_v0 }
 0x54d   :  { %9314 = vmatpush3.bf16.msra.mxu0 %v9985_v63  ;;  %v10012_v63 = vld [vmem:[#allocation9 + $0x638] sm:$0xff]  }
 0x54e   :  { %9336 = vmatpush3.bf16.msra.mxu1 %v9986_v14  ;;  %9315 = vmatprep.subr.bf16.mxu0 %v10212_v0 }
 0x54f   :  { %9337 = vmatprep.subr.bf16.mxu1 %v10212_v0 }
 0x551   :  { %9316 = vmatpush3.bf16.msra.mxu0 %v9987_v1 }
 0x552   :  { %9338 = vmatpush3.bf16.msra.mxu1 %v9988_v37  ;;  %9317 = vmatprep.subr.bf16.mxu0 %v10212_v0  ;;  %v10013_v37 = vld [vmem:[#allocation9 + $0x5f8] sm:$0xff]  }
 0x553   :  { %9339 = vmatprep.subr.bf16.mxu1 %v10212_v0 }
 0x555   :  { %9318 = vmatpush3.bf16.msra.mxu0 %v9989_v15  ;;  %v10014_v15 = vld [vmem:[#allocation9 + $0x680] sm:$0xff]  }
 0x556   :  { %9340 = vmatpush3.bf16.msra.mxu1 %v9990_v50  ;;  %9319 = vmatprep.subr.bf16.mxu0 %v10212_v0  ;;  %v6301_v50 = vpack.c.bf16 %v11041_v11, %v10430_v19  ;;  %v10037_v11 = vld [vmem:[#allocation9 + $0x6d8] sm:$0xff]  }
 0x557   :  { %9341 = vmatprep.subr.bf16.mxu1 %v10212_v0 }
 0x558   :  { %v4608_v32 = vpop.f32.mrb[76].mxu1 }
 0x559   :  { %9320 = vmatpush3.bf16.msra.mxu0 %v9991_v2  ;;  %v9069_v41 = vpop.f32.mrb[77].mxu1  ;;  %v10015_v2 = vld [vmem:[#allocation9 + $0x640] sm:$0xff]  }
 0x55a   :  { %v4611_v5 = vpop.f32.mrb[78].mxu1  ;;  %9342 = vmatpush3.bf16.msra.mxu1 %v9992_v6  ;;  %9321 = vmatprep.subr.bf16.mxu0 %v10212_v0  ;;  %v6133_v6 = vpack.c.bf16 %v10400_v10, %v11010_v4  ;;  %v10017_v41 = vld [vmem:[#allocation9 + $0x648] sm:$0xff]   ;;  %v10019_v10 = vld [vmem:[#allocation9 + $0x650] sm:$0xff]   ;;  %v10020_v4 = vld [vmem:[#allocation9 + $0x698] sm:$0xff]  }
 0x55b   :  { %v4440_v44 = vpop.f32.mrb[76].mxu0  ;;  %v9070_v57 = vpop.f32.mrb[79].mxu1  ;;  %9343 = vmatprep.subr.bf16.mxu1 %v10212_v0 }
 0x55c   :  { %v4447_v34 = vadd.f32 %v4440_v44, %v4355_v51  ;;  %v9049_v8 = vpop.f32.mrb[77].mxu0  ;;  %v10023_v44 = vld [vmem:[#allocation9 + $0x660] sm:$0xff]   ;;  %v10024_v57 = vld [vmem:[#allocation9 + $0x6a8] sm:$0xff]  }
 0x55d   :  { %v4443_v17 = vpop.f32.mrb[78].mxu0  ;;  %9322 = vmatpush3.bf16.msra.mxu0 %v9993_v28  ;;  %v10018_v28 = vld [vmem:[#allocation9 + $0x690] sm:$0xff]  }
 0x55e   :  { %v4448_v33 = vadd.f32 %v4443_v17, %v4356_v52  ;;  %v9050_v18 = vpop.f32.mrb[79].mxu0  ;;  %9344 = vmatpush3.bf16.msra.mxu1 %v9994_v20  ;;  %9323 = vmatprep.subr.bf16.mxu0 %v10212_v0  ;;  %v4615_v46 = vadd.f32 %v4608_v32, %v4447_v34  ;;  %v10016_v32 = vld [vmem:[#allocation9 + $0x688] sm:$0xff]   ;;  %v10022_v20 = vld [vmem:[#allocation9 + $0x6a0] sm:$0xff]  }
 0x55f   :  { %9345 = vmatprep.subr.bf16.mxu1 %v10212_v0  ;;  %v10025_v17 = vld [vmem:[#allocation9 + $0x668] sm:$0xff]  }
 0x560   :  { %v4616_v43 = vadd.f32 %v4611_v5, %v4448_v33  ;;  %v10021_v5 = vld [vmem:[#allocation9 + $0x658] sm:$0xff]   ;;  %v10026_v33 = vld [vmem:[#allocation9 + $0x6b0] sm:$0xff]  }
 0x561   :  { %9324 = vmatpush3.bf16.msra.mxu0 %v9995_v35 }
 0x562   :  { %9346 = vmatpush3.bf16.msra.mxu1 %v9996_v9  ;;  %9325 = vmatprep.subr.bf16.mxu0 %v10212_v0 }
 0x563   :  { %9371 = vmatprep.subr.bf16.mxu1 %v10212_v0 }
 0x565   :  { %9326 = vmatpush3.bf16.msra.mxu0 %v9997_v39  ;;  %9348 = vmatmul.mubr.bf16.vlgmr.msra.gmra.mrb[104].mxu1 %v6041_v27  ;;  %v10002_v27 = vld [vmem:[#allocation9 + $0x610] sm:$0xff]  }
 0x566   :  { %9372 = vmatpush3.bf16.msra.mxu1 %v9998_v48  ;;  %9351 = vmatprep.subr.bf16.mxu0 %v10212_v0  ;;  %v10027_v48 = vld [vmem:[#allocation9 + $0x670] sm:$0xff]  }
 0x567   :  { %9373 = vmatprep.subr.bf16.mxu1 %v10212_v0  ;;  %9387 = vmatprep.mubr.msk.bf16.mxu1 %vm10213_vm0, %v10212_v0 }
 0x568   :  { %9328 = vmatmul.mubr.bf16.vlgmr.msra.gmra.mrb[104].mxu0 %v5949_v30  ;;  %v10007_v30 = vld [vmem:[#allocation9 + $0x5e0] sm:$0xff]  }
 0x569   :  { %9352 = vmatpush3.bf16.msra.mxu0 %v9999_v29  ;;  %9367 = vmatprep.mubr.msk.bf16.mxu0 %vm10213_vm0, %v10212_v0 }
 0x56a   :  { %9374 = vmatpush3.bf16.msra.mxu1 %v10000_v45  ;;  %9353 = vmatprep.subr.bf16.mxu0 %v10212_v0 }
 0x56b   :  { %9375 = vmatprep.subr.bf16.mxu1 %v10212_v0 }
 0x56d   :  { %9354 = vmatpush3.bf16.msra.mxu0 %v10001_v42  ;;  %v10028_v42 = vld [vmem:[#allocation9 + $0x6b8] sm:$0xff]  }
 0x56e   :  { %9376 = vmatpush3.bf16.msra.mxu1 %v10002_v27  ;;  %9355 = vmatprep.subr.bf16.mxu0 %v10212_v0 }
 0x56f   :  { %9377 = vmatprep.subr.bf16.mxu1 %v10212_v0 }
 0x571   :  { %9356 = vmatpush3.bf16.msra.mxu0 %v10003_v47 }
 0x572   :  { %9378 = vmatpush3.bf16.msra.mxu1 %v10004_v38  ;;  %9357 = vmatprep.subr.bf16.mxu0 %v10212_v0  ;;  %v10029_v38 = vld [vmem:[#allocation9 + $0x678] sm:$0xff]  }
 0x573   :  { %9379 = vmatprep.subr.bf16.mxu1 %v10212_v0 }
 0x575   :  { %9358 = vmatpush3.bf16.msra.mxu0 %v10005_v24  ;;  %v10030_v24 = vld [vmem:[#allocation9 + $0x700] sm:$0xff]  }
 0x576   :  { %9380 = vmatpush3.bf16.msra.mxu1 %v10006_v13  ;;  %9359 = vmatprep.subr.bf16.mxu0 %v10212_v0  ;;  %v10031_v13 = vld [vmem:[#allocation9 + $0x6c0] sm:$0xff]  }
 0x577   :  { %9381 = vmatprep.subr.bf16.mxu1 %v10212_v0 }
 0x578   :  { %v4792_v54 = vpop.f32.mrb[80].mxu1 }
 0x579   :  { %9360 = vmatpush3.bf16.msra.mxu0 %v10007_v30  ;;  %v9109_v62 = vpop.f32.mrb[81].mxu1  ;;  %v10032_v30 = vld [vmem:[#allocation9 + $0x708] sm:$0xff]  }
 0x57a   :  { %v4795_v56 = vpop.f32.mrb[82].mxu1  ;;  %9382 = vmatpush3.bf16.msra.mxu1 %v10008_v60  ;;  %9361 = vmatprep.subr.bf16.mxu0 %v10212_v0  ;;  %v10033_v60 = vld [vmem:[#allocation9 + $0x6c8] sm:$0xff]   ;;  %v10036_v62 = vld [vmem:[#allocation9 + $0x718] sm:$0xff]  }
 0x57b   :  { %v4700_v51 = vpop.f32.mrb[80].mxu0  ;;  %v9110_v52 = vpop.f32.mrb[83].mxu1  ;;  %9383 = vmatprep.subr.bf16.mxu1 %v10212_v0 }
 0x57c   :  { %v4707_v53 = vadd.f32 %v4700_v51, %v4615_v46  ;;  %v9089_v59 = vpop.f32.mrb[81].mxu0  ;;  %v10041_v51 = vld [vmem:[#allocation9 + $0x6e8] sm:$0xff]  }
 0x57d   :  { %v4703_v55 = vpop.f32.mrb[82].mxu0  ;;  %9362 = vmatpush3.bf16.msra.mxu0 %v10009_v61  ;;  %v10040_v61 = vld [vmem:[#allocation9 + $0x728] sm:$0xff]  }
 0x57e   :  { %v4708_v3 = vadd.f32 %v4703_v55, %v4616_v43  ;;  %v9090_v23 = vpop.f32.mrb[83].mxu0  ;;  %9384 = vmatpush3.bf16.msra.mxu1 %v10010_v58  ;;  %9363 = vmatprep.subr.bf16.mxu0 %v10212_v0  ;;  %v4799_v14 = vadd.f32 %v4792_v54, %v4707_v53  ;;  %v10035_v54 = vld [vmem:[#allocation9 + $0x6d0] sm:$0xff]  }
 0x57f   :  { %9385 = vmatprep.subr.bf16.mxu1 %v10212_v0  ;;  %v10042_v53 = vld [vmem:[#allocation9 + $0x730] sm:$0xff]  }
 0x580   :  { %v4800_v1 = vadd.f32 %v4795_v56, %v4708_v3 }
 0x581   :  { %9364 = vmatpush3.bf16.msra.mxu0 %v10011_v7 }
 0x582   :  { %9386 = vmatpush3.bf16.msra.mxu1 %v10012_v63  ;;  %9365 = vmatprep.subr.bf16.mxu0 %v10212_v0  ;;  %v10043_v63 = vld [vmem:[#allocation9 + $0x6f0] sm:$0xff]  }
 0x583   :  { %9411 = vmatprep.subr.bf16.mxu1 %v10212_v0 }
 0x585   :  { %9366 = vmatpush3.bf16.msra.mxu0 %v10013_v37  ;;  %9388 = vmatmul.mubr.bf16.vlgmr.msra.gmra.mrb[108].mxu1 %v6301_v50  ;;  %v10044_v37 = vld [vmem:[#allocation9 + $0x738] sm:$0xff]  }
 0x586   :  { %9412 = vmatpush3.bf16.msra.mxu1 %v10014_v15  ;;  %9391 = vmatprep.subr.bf16.mxu0 %v10212_v0 }
 0x587   :  { %9413 = vmatprep.subr.bf16.mxu1 %v10212_v0  ;;  %9427 = vmatprep.mubr.msk.bf16.mxu1 %vm10213_vm0, %v10212_v0 }
 0x588   :  { %9368 = vmatmul.mubr.bf16.vlgmr.msra.gmra.mrb[108].mxu0 %v6133_v6  ;;  %v10046_v6 = vld [vmem:[#allocation9 + $0x780] sm:$0xff]  }
 0x589   :  { %9392 = vmatpush3.bf16.msra.mxu0 %v10015_v2  ;;  %9407 = vmatprep.mubr.msk.bf16.mxu0 %vm10213_vm0, %v10212_v0  ;;  %v10045_v2 = vld [vmem:[#allocation9 + $0x6f8] sm:$0xff]  }
 0x58a   :  { %9414 = vmatpush3.bf16.msra.mxu1 %v10016_v32  ;;  %9393 = vmatprep.subr.bf16.mxu0 %v10212_v0  ;;  %v6745_v32 = vpack.c.bf16 %v11061_v21, %v10466_v31 }
 0x58b   :  { %9415 = vmatprep.subr.bf16.mxu1 %v10212_v0 }
 0x58d   :  { %9394 = vmatpush3.bf16.msra.mxu0 %v10017_v41  ;;  %v10047_v41 = vld [vmem:[#allocation9 + $0x740] sm:$0xff]  }
 0x58e   :  { %9416 = vmatpush3.bf16.msra.mxu1 %v10018_v28  ;;  %9395 = vmatprep.subr.bf16.mxu0 %v10212_v0  ;;  %v6577_v28 = vpack.c.bf16 %v10430_v19, %v11036_v49  ;;  %v10051_v19 = vld [vmem:[#allocation9 + $0x750] sm:$0xff]   ;;  %v10052_v49 = vld [vmem:[#allocation9 + $0x798] sm:$0xff]  }
 0x58f   :  { %9417 = vmatprep.subr.bf16.mxu1 %v10212_v0 }
 0x591   :  { %9396 = vmatpush3.bf16.msra.mxu0 %v10019_v10  ;;  %v10048_v10 = vld [vmem:[#allocation9 + $0x788] sm:$0xff]  }
 0x592   :  { %9418 = vmatpush3.bf16.msra.mxu1 %v10020_v4  ;;  %9397 = vmatprep.subr.bf16.mxu0 %v10212_v0  ;;  %v10049_v4 = vld [vmem:[#allocation9 + $0x748] sm:$0xff]  }
 0x593   :  { %9419 = vmatprep.subr.bf16.mxu1 %v10212_v0 }
 0x595   :  { %9398 = vmatpush3.bf16.msra.mxu0 %v10021_v5  ;;  %v10050_v5 = vld [vmem:[#allocation9 + $0x790] sm:$0xff]  }
 0x596   :  { %9420 = vmatpush3.bf16.msra.mxu1 %v10022_v20  ;;  %9399 = vmatprep.subr.bf16.mxu0 %v10212_v0  ;;  %v10053_v20 = vld [vmem:[#allocation9 + $0x758] sm:$0xff]  }
 0x597   :  { %9421 = vmatprep.subr.bf16.mxu1 %v10212_v0 }
 0x598   :  { %v5052_v34 = vpop.f32.mrb[84].mxu1 }
 0x599   :  { %9400 = vmatpush3.bf16.msra.mxu0 %v10023_v44  ;;  %v9149_v8 = vpop.f32.mrb[85].mxu1  ;;  %v10054_v44 = vld [vmem:[#allocation9 + $0x7a0] sm:$0xff]  }
 0x59a   :  { %v5055_v35 = vpop.f32.mrb[86].mxu1  ;;  %9422 = vmatpush3.bf16.msra.mxu1 %v10024_v57  ;;  %9401 = vmatprep.subr.bf16.mxu0 %v10212_v0  ;;  %v10055_v57 = vld [vmem:[#allocation9 + $0x760] sm:$0xff]  }
 0x59b   :  { %v4884_v18 = vpop.f32.mrb[84].mxu0  ;;  %v9150_v9 = vpop.f32.mrb[87].mxu1  ;;  %9423 = vmatprep.subr.bf16.mxu1 %v10212_v0 }
 0x59c   :  { %v4891_v46 = vadd.f32 %v4884_v18, %v4799_v14  ;;  %v9129_v43 = vpop.f32.mrb[85].mxu0  ;;  %v10058_v18 = vld [vmem:[#allocation9 + $0x7b0] sm:$0xff]  }
 0x59d   :  { %v4887_v39 = vpop.f32.mrb[86].mxu0  ;;  %9402 = vmatpush3.bf16.msra.mxu0 %v10025_v17 }
 0x59e   :  { %v4892_v29 = vadd.f32 %v4887_v39, %v4800_v1  ;;  %v9130_v45 = vpop.f32.mrb[87].mxu0  ;;  %9424 = vmatpush3.bf16.msra.mxu1 %v10026_v33  ;;  %9403 = vmatprep.subr.bf16.mxu0 %v10212_v0  ;;  %v5059_v27 = vadd.f32 %v5052_v34, %v4891_v46  ;;  %v10056_v34 = vld [vmem:[#allocation9 + $0x7a8] sm:$0xff]  }
 0x59f   :  { %9425 = vmatprep.subr.bf16.mxu1 %v10212_v0 }
 0x5a0   :  { %v5060_v47 = vadd.f32 %v5055_v35, %v4892_v29  ;;  %v10057_v35 = vld [vmem:[#allocation9 + $0x768] sm:$0xff]   ;;  %v10059_v29 = vld [vmem:[#allocation9 + $0x770] sm:$0xff]  }
 0x5a1   :  { %9404 = vmatpush3.bf16.msra.mxu0 %v10027_v48 }
 0x5a2   :  { %9426 = vmatpush3.bf16.msra.mxu1 %v10028_v42  ;;  %9405 = vmatprep.subr.bf16.mxu0 %v10212_v0 }
 0x5a3   :  { %9451 = vmatprep.subr.bf16.mxu1 %v10212_v0 }
 0x5a5   :  { %9406 = vmatpush3.bf16.msra.mxu0 %v10029_v38  ;;  %9428 = vmatmul.mubr.bf16.vlgmr.msra.gmra.mrb[112].mxu1 %v6485_v40  ;;  %v10034_v40 = vld [vmem:[#allocation9 + $0x710] sm:$0xff]  }
 0x5a6   :  { %9452 = vmatpush3.bf16.msra.mxu1 %v10030_v24  ;;  %9431 = vmatprep.subr.bf16.mxu0 %v10212_v0  ;;  %v10061_v24 = vld [vmem:[#allocation9 + $0x778] sm:$0xff]  }
 0x5a7   :  { %9453 = vmatprep.subr.bf16.mxu1 %v10212_v0  ;;  %9467 = vmatprep.mubr.msk.bf16.mxu1 %vm10213_vm0, %v10212_v0 }
 0x5a8   :  { %9408 = vmatmul.mubr.bf16.vlgmr.msra.gmra.mrb[112].mxu0 %v6393_v36  ;;  %v10039_v36 = vld [vmem:[#allocation9 + $0x6e0] sm:$0xff]  }
 0x5a9   :  { %9432 = vmatpush3.bf16.msra.mxu0 %v10031_v13  ;;  %9447 = vmatprep.mubr.msk.bf16.mxu0 %vm10213_vm0, %v10212_v0  ;;  %v10062_v13 = vld [vmem:[#allocation9 + $0x7c0] sm:$0xff]  }
 0x5aa   :  { %9454 = vmatpush3.bf16.msra.mxu1 %v10032_v30  ;;  %9433 = vmatprep.subr.bf16.mxu0 %v10212_v0  ;;  %v10063_v30 = vld [vmem:[#allocation9 + $0x7c8] sm:$0xff]  }
 0x5ab   :  { %9455 = vmatprep.subr.bf16.mxu1 %v10212_v0 }
 0x5ad   :  { %9434 = vmatpush3.bf16.msra.mxu0 %v10033_v60  ;;  %v10064_v60 = vld [vmem:[#allocation9 + $0x7d0] sm:$0xff]  }
 0x5ae   :  { %9456 = vmatpush3.bf16.msra.mxu1 %v10034_v40  ;;  %9435 = vmatprep.subr.bf16.mxu0 %v10212_v0  ;;  %v10066_v40 = vld [vmem:[#allocation9 + $0x7e0] sm:$0xff]  }
 0x5af   :  { %9457 = vmatprep.subr.bf16.mxu1 %v10212_v0 }
 0x5b1   :  { %9436 = vmatpush3.bf16.msra.mxu0 %v10035_v54 }
 0x5b2   :  { %9458 = vmatpush3.bf16.msra.mxu1 %v10036_v62  ;;  %9437 = vmatprep.subr.bf16.mxu0 %v10212_v0 }
 0x5b3   :  { %9459 = vmatprep.subr.bf16.mxu1 %v10212_v0 }
 0x5b5   :  { %9438 = vmatpush3.bf16.msra.mxu0 %v10037_v11 }
 0x5b6   :  { %9460 = vmatpush3.bf16.msra.mxu1 %v10038_v12  ;;  %9439 = vmatprep.subr.bf16.mxu0 %v10212_v0 }
 0x5b7   :  { %9461 = vmatprep.subr.bf16.mxu1 %v10212_v0 }
 0x5b8   :  { %v5236_v56 = vpop.f32.mrb[88].mxu1 }
 0x5b9   :  { %9440 = vmatpush3.bf16.msra.mxu0 %v10039_v36  ;;  %v9189_v58 = vpop.f32.mrb[89].mxu1 }
 0x5ba   :  { %v5239_v52 = vpop.f32.mrb[90].mxu1  ;;  %9462 = vmatpush3.bf16.msra.mxu1 %v10040_v61  ;;  %9441 = vmatprep.subr.bf16.mxu0 %v10212_v0 }
 0x5bb   :  { %v5144_v59 = vpop.f32.mrb[88].mxu0  ;;  %v9190_v55 = vpop.f32.mrb[91].mxu1  ;;  %9463 = vmatprep.subr.bf16.mxu1 %v10212_v0 }
 0x5bc   :  { %v5151_v7 = vadd.f32 %v5144_v59, %v5059_v27  ;;  %v9169_v3 = vpop.f32.mrb[89].mxu0  ;;  %v10060_v27 = vld [vmem:[#allocation9 + $0x7b8] sm:$0xff]   ;;  %v7021_v55 = vpack.c.bf16 %v10466_v31, %v11050_v16 }
 0x5bd   :  { %v5147_v23 = vpop.f32.mrb[90].mxu0  ;;  %9442 = vmatpush3.bf16.msra.mxu0 %v10041_v51  ;;  %v10069_v59 = vld [vmem:[#allocation9 + $0x7f8] sm:$0xff]  }
 0x5be   :  { %v5152_v14 = vadd.f32 %v5147_v23, %v5060_v47  ;;  %v9170_v1 = vpop.f32.mrb[91].mxu0  ;;  %9464 = vmatpush3.bf16.msra.mxu1 %v10042_v53  ;;  %9443 = vmatprep.subr.bf16.mxu0 %v10212_v0  ;;  %v5243_v15 = vadd.f32 %v5236_v56, %v5151_v7  ;;  %v10068_v56 = vld [vmem:[#allocation9 + $0x7f0] sm:$0xff]  }
 0x5bf   :  { %9465 = vmatprep.subr.bf16.mxu1 %v10212_v0 }
 0x5c0   :  { %v5244_v50 = vadd.f32 %v5239_v52, %v5152_v14 }
 0x5c1   :  { %9444 = vmatpush3.bf16.msra.mxu0 %v10043_v63 }
 0x5c2   :  { %9466 = vmatpush3.bf16.msra.mxu1 %v10044_v37  ;;  %9445 = vmatprep.subr.bf16.mxu0 %v10212_v0 }
 0x5c3   :  { %9491 = vmatprep.subr.bf16.mxu1 %v10212_v0 }
 0x5c5   :  { %9446 = vmatpush3.bf16.msra.mxu0 %v10045_v2  ;;  %9468 = vmatmul.mubr.bf16.vlgmr.msra.gmra.mrb[116].mxu1 %v6745_v32 }
 0x5c6   :  { %9492 = vmatpush3.bf16.msra.mxu1 %v10046_v6  ;;  %9471 = vmatprep.subr.bf16.mxu0 %v10212_v0 }
 0x5c7   :  { %9493 = vmatprep.subr.bf16.mxu1 %v10212_v0  ;;  %9507 = vmatprep.mubr.msk.bf16.mxu1 %vm10213_vm0, %v10212_v0 }
 0x5c8   :  { %9448 = vmatmul.mubr.bf16.vlgmr.msra.gmra.mrb[116].mxu0 %v6577_v28 }
 0x5c9   :  { %9472 = vmatpush3.bf16.msra.mxu0 %v10047_v41  ;;  %9487 = vmatprep.mubr.msk.bf16.mxu0 %vm10213_vm0, %v10212_v0 }
 0x5ca   :  { %9494 = vmatpush3.bf16.msra.mxu1 %v10048_v10  ;;  %9473 = vmatprep.subr.bf16.mxu0 %v10212_v0 }
 0x5cb   :  { %9495 = vmatprep.subr.bf16.mxu1 %v10212_v0 }
 0x5cd   :  { %9474 = vmatpush3.bf16.msra.mxu0 %v10049_v4 }
 0x5ce   :  { %9496 = vmatpush3.bf16.msra.mxu1 %v10050_v5  ;;  %9475 = vmatprep.subr.bf16.mxu0 %v10212_v0 }
 0x5cf   :  { %9497 = vmatprep.subr.bf16.mxu1 %v10212_v0 }
 0x5d1   :  { %9476 = vmatpush3.bf16.msra.mxu0 %v10051_v19 }
 0x5d2   :  { %9498 = vmatpush3.bf16.msra.mxu1 %v10052_v49  ;;  %9477 = vmatprep.subr.bf16.mxu0 %v10212_v0 }
 0x5d3   :  { %9499 = vmatprep.subr.bf16.mxu1 %v10212_v0 }
 0x5d5   :  { %9478 = vmatpush3.bf16.msra.mxu0 %v10053_v20 }
 0x5d6   :  { %9500 = vmatpush3.bf16.msra.mxu1 %v10054_v44  ;;  %9479 = vmatprep.subr.bf16.mxu0 %v10212_v0 }
 0x5d7   :  { %9501 = vmatprep.subr.bf16.mxu1 %v10212_v0 }
 0x5d8   :  { %v5496_v8 = vpop.f32.mrb[92].mxu1 }
 0x5d9   :  { %9480 = vmatpush3.bf16.msra.mxu0 %v10055_v57  ;;  %v9229_v17 = vpop.f32.mrb[93].mxu1 }
 0x5da   :  { %v5499_v33 = vpop.f32.mrb[94].mxu1  ;;  %9502 = vmatpush3.bf16.msra.mxu1 %v10056_v34  ;;  %9481 = vmatprep.subr.bf16.mxu0 %v10212_v0 }
 0x5db   :  { %v5328_v9 = vpop.f32.mrb[92].mxu0  ;;  %v9230_v46 = vpop.f32.mrb[95].mxu1  ;;  %9503 = vmatprep.subr.bf16.mxu1 %v10212_v0 }
 0x5dc   :  { %v5335_v43 = vadd.f32 %v5328_v9, %v5243_v15  ;;  %v9209_v39 = vpop.f32.mrb[93].mxu0 }
 0x5dd   :  { %v5331_v48 = vpop.f32.mrb[94].mxu0  ;;  %9482 = vmatpush3.bf16.msra.mxu0 %v10057_v35 }
 0x5de   :  { %v5336_v45 = vadd.f32 %v5331_v48, %v5244_v50  ;;  %v9210_v42 = vpop.f32.mrb[95].mxu0  ;;  %9504 = vmatpush3.bf16.msra.mxu1 %v10058_v18  ;;  %9483 = vmatprep.subr.bf16.mxu0 %v10212_v0  ;;  %v5503_v47 = vadd.f32 %v5496_v8, %v5335_v43 }
 0x5df   :  { %9505 = vmatprep.subr.bf16.mxu1 %v10212_v0 }
 0x5e0   :  { %v5504_v38 = vadd.f32 %v5499_v33, %v5336_v45 }
 0x5e1   :  { %9484 = vmatpush3.bf16.msra.mxu0 %v10059_v29 }
 0x5e2   :  { %9506 = vmatpush3.bf16.msra.mxu1 %v10060_v27  ;;  %9485 = vmatprep.subr.bf16.mxu0 %v10212_v0 }
 0x5e5   :  { %9486 = vmatpush3.bf16.msra.mxu0 %v10061_v24  ;;  %9508 = vmatmul.mubr.bf16.vlgmr.msra.gmra.mrb[120].mxu1 %v6929_v22  ;;  %v10065_v22 = vld [vmem:[#allocation9 + $0x7d8] sm:$0xff]  }
 0x5e6   :  { %9511 = vmatprep.subr.bf16.mxu0 %v10212_v0 }
 0x5e8   :  { %9488 = vmatmul.mubr.bf16.vlgmr.msra.gmra.mrb[120].mxu0 %v6837_v26  ;;  %v10067_v26 = vld [vmem:[#allocation9 + $0x7e8] sm:$0xff]  }
 0x5e9   :  { %9512 = vmatpush3.bf16.msra.mxu0 %v10062_v13  ;;  %9527 = vmatprep.mubr.msk.bf16.mxu0 %vm10213_vm0, %v10212_v0 }
 0x5ea   :  { %9513 = vmatprep.subr.bf16.mxu0 %v10212_v0 }
 0x5ed   :  { %9514 = vmatpush3.bf16.msra.mxu0 %v10063_v30 }
 0x5ee   :  { %9515 = vmatprep.subr.bf16.mxu0 %v10212_v0 }
 0x5f1   :  { %9516 = vmatpush3.bf16.msra.mxu0 %v10064_v60 }
 0x5f2   :  { %9517 = vmatprep.subr.bf16.mxu0 %v10212_v0 }
 0x5f5   :  { %9518 = vmatpush3.bf16.msra.mxu0 %v10065_v22 }
 0x5f6   :  { %9519 = vmatprep.subr.bf16.mxu0 %v10212_v0 }
 0x5f8   :  { %v5680_v21 = vpop.f32.mrb[96].mxu1 }
 0x5f9   :  { %9520 = vmatpush3.bf16.msra.mxu0 %v10066_v40  ;;  %v9269_v25 = vpop.f32.mrb[97].mxu1 }
 0x5fa   :  { %v5683_v54 = vpop.f32.mrb[98].mxu1  ;;  %9521 = vmatprep.subr.bf16.mxu0 %v10212_v0 }
 0x5fb   :  { %v5588_v62 = vpop.f32.mrb[96].mxu0  ;;  %v9270_v11 = vpop.f32.mrb[99].mxu1 }
 0x5fc   :  { %v5595_v12 = vadd.f32 %v5588_v62, %v5503_v47  ;;  %v9249_v36 = vpop.f32.mrb[97].mxu0 }
 0x5fd   :  { %v5591_v61 = vpop.f32.mrb[98].mxu0  ;;  %9522 = vmatpush3.bf16.msra.mxu0 %v10067_v26 }
 0x5fe   :  { %v5596_v58 = vadd.f32 %v5591_v61, %v5504_v38  ;;  %v9250_v51 = vpop.f32.mrb[99].mxu0  ;;  %9523 = vmatprep.subr.bf16.mxu0 %v10212_v0  ;;  %v5687_v52 = vadd.f32 %v5680_v21, %v5595_v12 }
 0x600   :  { %v5688_v53 = vadd.f32 %v5683_v54, %v5596_v58 }
 0x601   :  { %9524 = vmatpush3.bf16.msra.mxu0 %v10068_v56 }
 0x602   :  { %9525 = vmatprep.subr.bf16.mxu0 %v10212_v0 }
 0x605   :  { %9526 = vmatpush3.bf16.msra.mxu0 %v10069_v59 }
 0x608   :  { %9528 = vmatmul.mubr.bf16.vlgmr.msra.gmra.mrb[124].mxu0 %v7021_v55 }
 0x618   :  { %v5940_v7 = vpop.f32.mrb[100].mxu1 }
 0x619   :  { %v9309_v3 = vpop.f32.mrb[101].mxu1 }
 0x61a   :  { %v5943_v23 = vpop.f32.mrb[102].mxu1 }
 0x61b   :  { %v5772_v63 = vpop.f32.mrb[100].mxu0  ;;  %v9310_v14 = vpop.f32.mrb[103].mxu1 }
 0x61c   :  { %v5779_v1 = vadd.f32 %v5772_v63, %v5687_v52  ;;  %v9289_v37 = vpop.f32.mrb[101].mxu0 }
 0x61d   :  { %v5775_v15 = vpop.f32.mrb[102].mxu0 }
 0x61e   :  { %v5780_v50 = vadd.f32 %v5775_v15, %v5688_v53  ;;  %v9290_v2 = vpop.f32.mrb[103].mxu0  ;;  %v5947_v6 = vadd.f32 %v5940_v7, %v5779_v1 }
 0x61f   :  { %v7679_v2 = vld [vmem:[%s11450_s6] ss:$0 sm:$0xff]  ;;  %s10214_s6 = smov [#allocation11]  }
 0x620   :  { %v5948_v32 = vadd.f32 %v5943_v23, %v5780_v50  ;;  %s7167_s9 = sshll.u32 %s10214_s6, 4  ;;  %s7168_s9 = int_to_ptr.vmem [resolvable:$true] %s7167_s9 }
 0x621   :  { %s10174_s10 = scalar_lea.vmem %s7168_s9, 256  ;;  %p10179_p5 = scmp.lt.s32.totalorder %s7168_s9, %s7168_s9 }
 0x622   :  { %p10175_p4 = scmp.ne.s32.totalorder %s7168_s9, %s10174_s10  ;;  %p10180_p6 = scmp.lt.s32.totalorder %s10174_s10, %s10174_s10 }
 0x624   :  { %p10181_p7 = por %p10180_p6, %p10179_p5 }
 0x626   :  { %p10182_p8 = pnand %p10181_p7, %p10175_p4 }
 0x638   :  { %v6124_v41 = vpop.f32.mrb[104].mxu1 }
 0x639   :  { %v9349_v28 = vpop.f32.mrb[105].mxu1 }
 0x63a   :  { %v6127_v0 = vpop.f32.mrb[106].mxu1 }
 0x63b   :  { %v6032_v10 = vpop.f32.mrb[104].mxu0  ;;  %v9350_v4 = vpop.f32.mrb[107].mxu1 }
 0x63c   :  { %v6039_v5 = vadd.f32 %v6032_v10, %v5947_v6  ;;  %v9329_v31 = vpop.f32.mrb[105].mxu0 }
 0x63d   :  { %v6035_v16 = vpop.f32.mrb[106].mxu0 }
 0x63e   :  { %v6040_v19 = vadd.f32 %v6035_v16, %v5948_v32  ;;  %v9330_v49 = vpop.f32.mrb[107].mxu0  ;;  %v6131_v20 = vadd.f32 %v6124_v41, %v6039_v5 }
 0x640   :  { %v6132_v44 = vadd.f32 %v6127_v0, %v6040_v19 }
 0x658   :  { %v6384_v57 = vpop.f32.mrb[108].mxu1 }
 0x659   :  { %v9389_v34 = vpop.f32.mrb[109].mxu1 }
 0x65a   :  { %v6387_v8 = vpop.f32.mrb[110].mxu1 }
 0x65b   :  { %v6216_v17 = vpop.f32.mrb[108].mxu0  ;;  %v9390_v35 = vpop.f32.mrb[111].mxu1 }
 0x65c   :  { %v6223_v33 = vadd.f32 %v6216_v17, %v6131_v20  ;;  %v9369_v18 = vpop.f32.mrb[109].mxu0 }
 0x65d   :  { %v6219_v9 = vpop.f32.mrb[110].mxu0 }
 0x65e   :  { %v6224_v46 = vadd.f32 %v6219_v9, %v6132_v44  ;;  %v9370_v43 = vpop.f32.mrb[111].mxu0  ;;  %v6391_v39 = vadd.f32 %v6384_v57, %v6223_v33 }
 0x660   :  { %v6392_v48 = vadd.f32 %v6387_v8, %v6224_v46 }
 0x678   :  { %v6568_v29 = vpop.f32.mrb[112].mxu1 }
 0x679   :  { %v9429_v45 = vpop.f32.mrb[113].mxu1 }
 0x67a   :  { %v6571_v42 = vpop.f32.mrb[114].mxu1 }
 0x67b   :  { %v6476_v27 = vpop.f32.mrb[112].mxu0  ;;  %v9430_v47 = vpop.f32.mrb[115].mxu1 }
 0x67c   :  { %v6483_v38 = vadd.f32 %v6476_v27, %v6391_v39  ;;  %v9409_v24 = vpop.f32.mrb[113].mxu0 }
 0x67d   :  { %v6479_v13 = vpop.f32.mrb[114].mxu0 }
 0x67e   :  { %v6484_v30 = vadd.f32 %v6479_v13, %v6392_v48  ;;  %v9410_v60 = vpop.f32.mrb[115].mxu0  ;;  %v6575_v22 = vadd.f32 %v6568_v29, %v6483_v38 }
 0x680   :  { %v6576_v40 = vadd.f32 %v6571_v42, %v6484_v30 }
 0x698   :  { %v6828_v21 = vpop.f32.mrb[116].mxu1 }
 0x699   :  { %v9469_v25 = vpop.f32.mrb[117].mxu1 }
 0x69a   :  { %v6831_v26 = vpop.f32.mrb[118].mxu1 }
 0x69b   :  { %v6660_v54 = vpop.f32.mrb[116].mxu0  ;;  %v9470_v62 = vpop.f32.mrb[119].mxu1 }
 0x69c   :  { %v6667_v11 = vadd.f32 %v6660_v54, %v6575_v22  ;;  %v9449_v12 = vpop.f32.mrb[117].mxu0  ;;  %v7157_v54 = vld [vmem:[#allocation11 + $0x8] sm:$0xff] }
 0x69d   :  { %v6663_v36 = vpop.f32.mrb[118].mxu0 }
 0x69e   :  { %v6668_v61 = vadd.f32 %v6663_v36, %v6576_v40  ;;  %v9450_v56 = vpop.f32.mrb[119].mxu0  ;;  %v6835_v58 = vadd.f32 %v6828_v21, %v6667_v11  ;;  %v7156_v40 = vld [vmem:[#allocation11] sm:$0xff] }
 0x6a0   :  { %v6836_v51 = vadd.f32 %v6831_v26, %v6668_v61 }
 0x6b8   :  { %v7012_v52 = vpop.f32.mrb[120].mxu1 }
 0x6b9   :  { %v9509_v53 = vpop.f32.mrb[121].mxu1 }
 0x6ba   :  { %v7015_v59 = vpop.f32.mrb[122].mxu1 }
 0x6bb   :  { %v6920_v55 = vpop.f32.mrb[120].mxu0  ;;  %v9510_v7 = vpop.f32.mrb[123].mxu1 }
 0x6bc   :  { %v6927_v3 = vadd.f32 %v6920_v55, %v6835_v58  ;;  %v9489_v23 = vpop.f32.mrb[121].mxu0 }
 0x6bd   :  { %v6923_v63 = vpop.f32.mrb[122].mxu0 }
 0x6be   :  { %v6928_v14 = vadd.f32 %v6923_v63, %v6836_v51  ;;  %v9490_v1 = vpop.f32.mrb[123].mxu0  ;;  %v7019_v37 = vadd.f32 %v7012_v52, %v6927_v3 }
 0x6c0   :  { %v7020_v15 = vadd.f32 %v7015_v59, %v6928_v14 }
 0x6db   :  { %v7104_v50 = vpop.f32.mrb[124].mxu0 }
 0x6dc   :  { %v7111_v6 = vadd.f32 %v7104_v50, %v7019_v37  ;;  %v9529_v32 = vpop.f32.mrb[125].mxu0 }
 0x6dd   :  { %v7107_v41 = vpop.f32.mrb[126].mxu0 }
 0x6de   :  { %v7120_v28 = vadd.f32 %v7679_v2, %v7111_v6  ;;  %v7112_v0 = vadd.f32 %v7107_v41, %v7020_v15  ;;  %v9530_v10 = vpop.f32.mrb[127].mxu0 }
 0x6e0   :  { %v7122_v4 = vand.u32 2147483647, %v7120_v28  ;;  %v7121_v5 = vadd.f32 %v7679_v2, %v7112_v0  ;;  %vm7144_vm10 = vcmp.ge.f32.partialorder %v7120_v28, 0.0 }
 0x6e2   :  { %v7124_v31 = vsub.f32 0.0, %v7122_v4  ;;  %v7123_v16 = vand.u32 2147483647, %v7121_v5  ;;  %vm7145_vm11 = vcmp.ge.f32.partialorder %v7121_v5, 0.0 }
 0x6e4   :  { %v7126_v19 = vmul.f32 1.442695, %v7124_v31  ;;  %v7125_v49 = vsub.f32 0.0, %v7123_v16 }
 0x6e6   :  { %10078 = vpow2.f32 %v7126_v19  ;;  %v7128_v20 = vmul.f32 1.442695, %v7125_v49 }
 0x6e8   :  { %10080 = vpow2.f32 %v7128_v20 }
 0x6f0   :  { %v10079_v44 = vpop.eup %10078 }
 0x6f1   :  { %v7130_v57 = vmul.f32 2.0, %v10079_v44  ;;  %v7138_v34 = vadd.f32 2.0, %v10079_v44 }
 0x6f2   :  { %v10081_v8 = vpop.eup %10080 }
 0x6f3   :  { %v7132_v17 = vadd.f32 1.0, %v7130_v57  ;;  %v7134_v35 = vmul.f32 %v10079_v44, %v7130_v57  ;;  %v7140_v33 = vmul.f32 %v10079_v44, %v7138_v34  ;;  %v7131_v18 = vmul.f32 2.0, %v10081_v8 }
 0x6f4   :  { %v7139_v9 = vadd.f32 2.0, %v10081_v8 }
 0x6f5   :  { %v7136_v46 = vadd.f32 %v7134_v35, %v7132_v17  ;;  %v7142_v43 = vadd.f32 2.0, %v7140_v33  ;;  %v7133_v39 = vadd.f32 1.0, %v7131_v18  ;;  %v7135_v48 = vmul.f32 %v10081_v8, %v7131_v18 }
 0x6f6   :  { %v7141_v29 = vmul.f32 %v10081_v8, %v7139_v9  ;;  %v7146_v38 = vsel %vm7144_vm10, %v7132_v17, %v7140_v33 }
 0x6f7   :  { %v7148_v45 = vsel %vm7144_vm10, %v7136_v46, %v7142_v43  ;;  %v7137_v42 = vadd.f32 %v7135_v48, %v7133_v39  ;;  %v7150_v24 = vmul.f32 %v7146_v38, %v7120_v28 }
 0x6f8   :  { %10082 = vrcp.f32 %v7148_v45  ;;  %v7143_v27 = vadd.f32 2.0, %v7141_v29  ;;  %v7147_v13 = vsel %vm7145_vm11, %v7133_v39, %v7141_v29 }
 0x6f9   :  { %v7151_v22 = vmul.f32 %v7147_v13, %v7121_v5 }
 0x6fa   :  { %v7149_v47 = vsel %vm7145_vm11, %v7137_v42, %v7143_v27 }
 0x6fb   :  { %10084 = vrcp.f32 %v7149_v47 }
 0x702   :  { %v10083_v30 = vpop.eup %10082 }
 0x703   :  { %v7154_v60 = vmul.f32 %v10083_v30, %v7150_v24 }
 0x705   :  { %v10085_v21 = vpop.eup %10084  ;;  %v7158_v25 = vadd.f32 %v7156_v40, %v7154_v60 }
 0x706   :  { %v7155_v26 = vmul.f32 %v10085_v21, %v7151_v22 }
 0x707   :  { %7160 = vst [vmem:[#allocation11] sm:$0xff] %v7158_v25 }
 0x708   :  { %v7159_v62 = vadd.f32 %v7157_v54, %v7155_v26 }
 0x70a   :  { %7161 = vst [vmem:[#allocation11 + $0x8] sm:$0xff] %v7159_v62 }
 0x70b   :  { %10185 = shalt.err (!%p10182_p8)
}
 0x70c   :  { %s10186_s15 = scalar_lea.hbm %s11451_s7, 256 }
 0x70d   :  { %p10187_p9 = scmp.ne.s32.totalorder %s11451_s7, %s10186_s15  ;;  %p10190_p10 = scmp.lt.u32.totalorder %s10186_s15, %s11451_s7 }
 0x70f   :  { %p10192_p11 = pnand %p10190_p10, %p10187_p9 }
 0x711   :  { %10195 = shalt.err (!%p10192_p11)
}
 0x712   :  { %7173 = dma.vmem_to_hbm [thread:$0]  %s7168_s9, 256, %s11451_s7, [#allocation5], %s10206_s13, %s10206_s13, %s10207_s14  }
 0x713   :  { %10202 = dma.done.wait [#allocation5], 256  }
 0x714   :  { %10203 = vsyncadd [#allocation5], 4294967040 }
 0x715   :  { %7177 = vsyncpa [#allocation4], 1 }
 0x716   :  { %7178 = vsyncpa [#allocation7], 1 }
 0x717   :  { %7179 = vsyncpa [#allocation10], 1 }
 0x718   :  { %7180 = vsyncpa [#allocation5], 1 }

</bundles_post_ra>
